<compile_context>
chip_gen: v7x
topology: tpu7x:2x2x1
jax: 0.10.0
libtpu: 0.0.40
codegen_flags: <defaults>
</compile_context>

<pallas_src>
import jax
import jax.numpy as jnp
import numpy as np
from jax import lax
from jax.experimental import pallas as pl
from jax.experimental.pallas import tpu as pltpu

PAD = 8            # zero rows above the packed images (sublane-aligned)
EXTRA = 8          # trailing scratch rows so the dy=+1 tap never reads OOB
ACC_BUDGET = 96 * 1024   # target bytes for the per-chunk f32 accumulator


def _banded_weights(w, scale, w_in, w_out, s):
    """Fold BN scale + 3 dx taps + W zero-padding (+ W-upsample when s>1) into
    three banded (w_in*Cin, w_out*Cout) matrices, one per dy tap.

    w: (Cout, Cin, 3, 3); scale: (Cout,).  Output column x of the conv reads
    input column (x - 1 + dx) // s.  Built by scattering (Cin, Cout) blocks
    along the band instead of a dense 0/1-mask einsum (review item).
    """
    c_out, c_in = w.shape[0], w.shape[1]
    ws = w.astype(jnp.float32) * scale[:, None, None, None]      # (Cout,Cin,3,3)
    per_dy = []
    for dy in range(3):
        t = jnp.zeros((w_in, c_in, w_out, c_out), jnp.float32)
        for dx in range(3):
            lo, hi = max(0, 1 - dx), min(w_out, w_out + 1 - dx)   # valid out cols
            xs = np.arange(lo, hi)
            rows = (xs - 1 + dx) // s                             # source cols
            blk = jnp.broadcast_to(ws[:, :, dy, dx].T, (xs.size, c_in, c_out))
            t = t.at[rows, :, xs, :].add(blk)
        per_dy.append(t.reshape(w_in * c_in, w_out * c_out))
    return jnp.stack(per_dy).astype(jnp.bfloat16)                 # (3, K, WC)


def upblock_pallas(x_nchw, params, stride, eps=1e-5):
    """UpBlock forward: nearest-upsample(stride) -> [conv3x3 -> BN(eval) -> ReLU] x2.

    x_nchw: (N, Cin, H0, W0) f32  ->  (N, Cout, stride*H0, stride*W0) f32.
    """
    assert isinstance(stride, int) and stride >= 1
    N, Cin, H0, W0 = x_nchw.shape
    Cout = params["w1"].shape[0]
    s = stride
    H, W = s * H0, s * W0
    W0C, WC = W0 * Cin, W * Cout

    # ---- packing geometry: NB images per grid step, 8-aligned row pitch ----
    HP = -(-(H + 1) // 8) * 8            # per-image pitch (>= H+1 zero gutter)
    GUT = HP - H                         # 1..8 zero rows below each image
    NB = max(1, min(N, -(-128 // HP)))   # images/step -> matmul M ~ 128+ rows
    G = -(-N // NB)                      # grid steps over the batch
    Npad = G * NB
    HPACK = NB * HP                      # packed rows per grid step
    SPAN = (NB - 1) * HP + H             # rows actually convolved (skip last gutter)
    ROWS_IN = PAD + HPACK + EXTRA

    # ---- fold eval-mode BatchNorm into per-channel scale / bias ----
    s1 = params["g1"] / jnp.sqrt(params["rv1"] + eps)
    b1f = params["b1"] - params["rm1"] * s1
    s2 = params["g2"] / jnp.sqrt(params["rv2"] + eps)
    b2f = params["b2"] - params["rm2"] * s2

    # ---- banded weights (BN scale, dx taps, W padding, W-upsample folded) ----
    b1w = _banded_weights(params["w1"], s1, W0, W, s)     # (3, W0C, WC)
    b2w = _banded_weights(params["w2"], s2, W, W, 1)      # (3, WC,  WC)
    bias1 = jnp.tile(b1f.astype(jnp.float32), W).reshape(1, WC)
    bias2 = jnp.tile(b2f.astype(jnp.float32), W).reshape(1, WC)

    # ---- lane-dense packed input slab: H-upsample + gutters + pads in XLA ----
    xu = jnp.transpose(x_nchw, (0, 2, 3, 1)).reshape(N, H0, W0C)
    if s > 1:
        xu = jnp.repeat(xu, s, axis=1)                     # nearest along H
    xu = xu.astype(jnp.bfloat16)
    if Npad != N:
        xu = jnp.concatenate(
            [xu, jnp.zeros((Npad - N, H, W0C), xu.dtype)], axis=0)
    xu = jnp.pad(xu, ((0, 0), (0, GUT), (0, 0)))           # per-image zero gutter
    xpack = xu.reshape(G, HPACK, W0C)
    xpack = jnp.pad(xpack, ((0, 0), (PAD, EXTRA), (0, 0))) # top pad + trailing rows

    # ---- row chunking: cap f32 accumulator footprint (~<=96KiB of vregs) ----
    rc = min(SPAN, max(32, ((ACC_BUDGET // (WC * 4)) // 8) * 8))
    chunks = [(r0, min(rc, SPAN - r0)) for r0 in range(0, SPAN, rc)]
    # TODO(synk): switch the chunk loops to lax.fori_loop / a grid axis if
    #             len(chunks) ever grows large (live ranges / code bloat), and
    #             tile the WC axis of b2w into the grid at production widths
    #             (O(W^2) weights exceed v7x's 64 MiB VMEM).

    def kernel(x_ref, w1_ref, b1_ref, w2_ref, b2_ref, out_ref, h1p_ref):
        # x_ref  : (ROWS_IN, W0C) bf16  packed, H-upsampled, zero-padded input rows
        # w1_ref : (3, W0C, WC)  bf16   banded conv1 weights (BN1 scale folded)
        # w2_ref : (3, WC,  WC)  bf16   banded conv2 weights (BN2 scale folded)
        # b*_ref : (1, WC)       f32    folded BN bias, tiled over W
        # out_ref: (HPACK, WC)   f32    packed output rows (gutters discarded)
        # h1p_ref: VMEM (ROWS_IN, WC) bf16  conv1 output with zero pad/gutter rows
        bias_a = b1_ref[...]                     # hoisted: loaded once per step
        bias_b = b2_ref[...]

        # conv1 (+BN1+ReLU): 3 back-to-back MXU passes per chunk over the whole
        # packed slab (big M); f32 accumulation, bf16 result into scratch.
        for r0, m in chunks:
            acc = (
                jnp.dot(x_ref[pl.ds(PAD - 1 + r0, m), :], w1_ref[0],
                        preferred_element_type=jnp.float32)
                + jnp.dot(x_ref[pl.ds(PAD + r0, m), :], w1_ref[1],
                          preferred_element_type=jnp.float32)
                + jnp.dot(x_ref[pl.ds(PAD + 1 + r0, m), :], w1_ref[2],
                          preferred_element_type=jnp.float32)
            )
            h1p_ref[pl.ds(PAD + r0, m), :] = (
                jnp.maximum(acc + bias_a, 0.0).astype(jnp.bfloat16))

        # conv1 swept across the inter-image gutters (for M-efficiency), so
        # restore the zero rows conv2's H padding relies on.  Done every step
        # (scratch is per-core) -> safe under megacore "parallel" semantics.
        zrow = jnp.zeros((PAD, WC), jnp.bfloat16)
        h1p_ref[pl.ds(0, PAD), :] = zrow
        for i in range(NB):
            h1p_ref[pl.ds(PAD + i * HP + H, GUT), :] = zrow[:GUT]

        # conv2 (+BN2+ReLU): full-width (lane-dense) f32 stores to the output.
        for r0, m in chunks:
            acc = (
                jnp.dot(h1p_ref[pl.ds(PAD - 1 + r0, m), :], w2_ref[0],
                        preferred_element_type=jnp.float32)
                + jnp.dot(h1p_ref[pl.ds(PAD + r0, m), :], w2_ref[1],
                          preferred_element_type=jnp.float32)
                + jnp.dot(h1p_ref[pl.ds(PAD + 1 + r0, m), :], w2_ref[2],
                          preferred_element_type=jnp.float32)
            )
            out_ref[pl.ds(r0, m), :] = jnp.maximum(acc + bias_b, 0.0)

    def run(single_buffer_weights):
        if single_buffer_weights:
            wmode = dict(pipeline_mode=pl.Buffered(1))   # grid-invariant blocks
        else:
            wmode = {}
        grid_spec = pltpu.PrefetchScalarGridSpec(
            num_scalar_prefetch=0,
            grid=(G,),
            in_specs=[
                pl.BlockSpec((None, ROWS_IN, W0C), lambda g: (g, 0, 0)),
                pl.BlockSpec((3, W0C, WC), lambda g: (0, 0, 0), **wmode),
                pl.BlockSpec((1, WC), lambda g: (0, 0), **wmode),
                pl.BlockSpec((3, WC, WC), lambda g: (0, 0, 0), **wmode),
                pl.BlockSpec((1, WC), lambda g: (0, 0), **wmode),
            ],
            out_specs=pl.BlockSpec((None, HPACK, WC), lambda g: (g, 0, 0)),
            scratch_shapes=[pltpu.VMEM((ROWS_IN, WC), jnp.bfloat16)],
        )
        call = pl.pallas_call(
            kernel,
            out_shape=jax.ShapeDtypeStruct((G, HPACK, WC), jnp.float32),
            grid_spec=grid_spec,
            compiler_params=pltpu.CompilerParams(
                dimension_semantics=("parallel",)),
        )
        return jax.block_until_ready(call(xpack, b1w, bias1, b2w, bias2))

    try:
        out_packed = run(True)
    except Exception:
        # pl.Buffered(1) not supported on this jax build -> default buffering.
        out_packed = run(False)

    out = out_packed.reshape(G, NB, HP, WC)[:, :, :H, :]     # drop gutters
    out = out.reshape(Npad, H, W, Cout)[:N]                  # NHWC
    return jnp.transpose(out, (0, 3, 1, 2))                  # back to NCHW, f32


def _ref_forward(x_nchw, p, stride, eps=1e-5):
    """Pure-JAX f32 reference matching the PyTorch module (BN in eval mode)."""
    x = x_nchw
    if stride != 1:
        x = jnp.repeat(jnp.repeat(x, stride, axis=2), stride, axis=3)

    def conv_bn_relu(x, w, g, b, rm, rv):
        y = lax.conv_general_dilated(
            x, w, window_strides=(1, 1), padding=((1, 1), (1, 1)),
            dimension_numbers=("NCHW", "OIHW", "NCHW"))
        y = (g[None, :, None, None] * (y - rm[None, :, None, None])
             / jnp.sqrt(rv[None, :, None, None] + eps) + b[None, :, None, None])
        return jnp.maximum(y, 0.0)

    x = conv_bn_relu(x, p["w1"], p["g1"], p["b1"], p["rm1"], p["rv1"])
    x = conv_bn_relu(x, p["w2"], p["g2"], p["b2"], p["rm2"], p["rv2"])
    return x


if __name__ == "__main__":
    N, inplanes, planes, Hin, Win, stride = 2, 4, 8, 16, 16, 2

    key = jax.random.PRNGKey(0)
    ks = jax.random.split(key, 11)
    x = jax.random.normal(ks[0], (N, inplanes, Hin, Win), jnp.float32)  # NCHW

    params = {
        "w1": 0.2 * jax.random.normal(ks[1], (planes, inplanes, 3, 3), jnp.float32),
        "g1": 1.0 + 0.1 * jax.random.normal(ks[2], (planes,), jnp.float32),
        "b1": 0.1 * jax.random.normal(ks[3], (planes,), jnp.float32),
        "rm1": 0.1 * jax.random.normal(ks[4], (planes,), jnp.float32),
        "rv1": 0.9 + 0.1 * jnp.abs(jax.random.normal(ks[5], (planes,), jnp.float32)),
        "w2": 0.2 * jax.random.normal(ks[6], (planes, planes, 3, 3), jnp.float32),
        "g2": 1.0 + 0.1 * jax.random.normal(ks[7], (planes,), jnp.float32),
        "b2": 0.1 * jax.random.normal(ks[8], (planes,), jnp.float32),
        "rm2": 0.1 * jax.random.normal(ks[9], (planes,), jnp.float32),
        "rv2": 0.9 + 0.1 * jnp.abs(jax.random.normal(ks[10], (planes,), jnp.float32)),
    }

    out = upblock_pallas(x, params, stride)
    out = jax.block_until_ready(out)

    ref = _ref_forward(x, params, stride)
    assert out.shape == (N, planes, Hin * stride, Win * stride), out.shape
    # bf16 matmul operands (f32 accumulation) -> scale-aware tolerance.
    err = float(jnp.max(jnp.abs(out - ref)))
    tol = 5e-2 * float(jnp.max(jnp.abs(ref))) + 5e-2
    assert err <= tol, (err, tol)

    print("KERNEL_OK")
</pallas_src>

<mosaic_0001>
module attributes {stable_mosaic.version = 11 : i64} {
  func.func @kernel(%arg0: i32, %arg1: memref<1x96x64xbf16, #tpu.memory_space<vmem>>, %arg2: memref<3x64x256xbf16, #tpu.memory_space<vmem>>, %arg3: memref<1x256xf32, #tpu.memory_space<vmem>>, %arg4: memref<3x256x256xbf16, #tpu.memory_space<vmem>>, %arg5: memref<1x256xf32, #tpu.memory_space<vmem>>, %arg6: memref<1x80x256xf32, #tpu.memory_space<vmem>>, %arg7: memref<96x256xbf16, #tpu.memory_space<vmem>>) attributes {dimension_semantics = [#tpu.dimension_semantics<parallel>], iteration_bounds = array<i64: 1>, scalar_prefetch = 0 : i64, scratch_operands = 1 : i64, tpu.core_type = #tpu.core_type<tc>, window_params = [{transform_indices = @transform_0, window_bounds = array<i64: 1, 96, 64>}, {pipeline_mode = #tpu.pipeline_mode<synchronous>, transform_indices = @transform_1, window_bounds = array<i64: 3, 64, 256>}, {pipeline_mode = #tpu.pipeline_mode<synchronous>, transform_indices = @transform_2, window_bounds = array<i64: 1, 256>}, {pipeline_mode = #tpu.pipeline_mode<synchronous>, transform_indices = @transform_3, window_bounds = array<i64: 3, 256, 256>}, {pipeline_mode = #tpu.pipeline_mode<synchronous>, transform_indices = @transform_4, window_bounds = array<i64: 1, 256>}, {transform_indices = @transform_5, window_bounds = array<i64: 1, 80, 256>}]} {
    %c0 = arith.constant 0 : index
    %c0_0 = arith.constant 0 : index
    %0 = vector.load %arg3[%c0, %c0_0] : memref<1x256xf32, #tpu.memory_space<vmem>>, vector<1x256xf32>
    %c0_1 = arith.constant 0 : index
    %c0_2 = arith.constant 0 : index
    %1 = vector.load %arg5[%c0_1, %c0_2] : memref<1x256xf32, #tpu.memory_space<vmem>>, vector<1x256xf32>
    %c0_3 = arith.constant 0 : index
    %c7 = arith.constant 7 : index
    %c0_4 = arith.constant 0 : index
    %2 = vector.load %arg1[%c0_3, %c7, %c0_4] : memref<1x96x64xbf16, #tpu.memory_space<vmem>>, vector<1x72x64xbf16>
    %3 = vector.shape_cast %2 : vector<1x72x64xbf16> to vector<72x64xbf16>
    %c0_5 = arith.constant 0 : index
    %c0_6 = arith.constant 0 : index
    %c0_7 = arith.constant 0 : index
    %4 = vector.load %arg2[%c0_5, %c0_6, %c0_7] : memref<3x64x256xbf16, #tpu.memory_space<vmem>>, vector<1x64x256xbf16>
    %5 = vector.shape_cast %4 : vector<1x64x256xbf16> to vector<64x256xbf16>
    %cst = arith.constant dense<0.000000e+00> : vector<72x256xf32>
    %6 = tpu.matmul %3, %5, %cst {dimension_numbers = #tpu.dot_dimension_numbers<[1], [0], [0], [1], [0, 0, 1, 1], [], []>} : vector<72x64xbf16>, vector<64x256xbf16>, vector<72x256xf32> -> vector<72x256xf32>
    %c0_8 = arith.constant 0 : index
    %c8 = arith.constant 8 : index
    %c0_9 = arith.constant 0 : index
    %7 = vector.load %arg1[%c0_8, %c8, %c0_9] : memref<1x96x64xbf16, #tpu.memory_space<vmem>>, vector<1x72x64xbf16>
    %8 = vector.shape_cast %7 : vector<1x72x64xbf16> to vector<72x64xbf16>
    %c1 = arith.constant 1 : index
    %c0_10 = arith.constant 0 : index
    %c0_11 = arith.constant 0 : index
    %9 = vector.load %arg2[%c1, %c0_10, %c0_11] : memref<3x64x256xbf16, #tpu.memory_space<vmem>>, vector<1x64x256xbf16>
    %10 = vector.shape_cast %9 : vector<1x64x256xbf16> to vector<64x256xbf16>
    %cst_12 = arith.constant dense<0.000000e+00> : vector<72x256xf32>
    %11 = tpu.matmul %8, %10, %cst_12 {dimension_numbers = #tpu.dot_dimension_numbers<[1], [0], [0], [1], [0, 0, 1, 1], [], []>} : vector<72x64xbf16>, vector<64x256xbf16>, vector<72x256xf32> -> vector<72x256xf32>
    %12 = arith.addf %6, %11 : vector<72x256xf32>
    %c0_13 = arith.constant 0 : index
    %c9 = arith.constant 9 : index
    %c0_14 = arith.constant 0 : index
    %13 = vector.load %arg1[%c0_13, %c9, %c0_14] : memref<1x96x64xbf16, #tpu.memory_space<vmem>>, vector<1x72x64xbf16>
    %14 = vector.shape_cast %13 : vector<1x72x64xbf16> to vector<72x64xbf16>
    %c2 = arith.constant 2 : index
    %c0_15 = arith.constant 0 : index
    %c0_16 = arith.constant 0 : index
    %15 = vector.load %arg2[%c2, %c0_15, %c0_16] : memref<3x64x256xbf16, #tpu.memory_space<vmem>>, vector<1x64x256xbf16>
    %16 = vector.shape_cast %15 : vector<1x64x256xbf16> to vector<64x256xbf16>
    %cst_17 = arith.constant dense<0.000000e+00> : vector<72x256xf32>
    %17 = tpu.matmul %14, %16, %cst_17 {dimension_numbers = #tpu.dot_dimension_numbers<[1], [0], [0], [1], [0, 0, 1, 1], [], []>} : vector<72x64xbf16>, vector<64x256xbf16>, vector<72x256xf32> -> vector<72x256xf32>
    %18 = arith.addf %12, %17 : vector<72x256xf32>
    %19 = vector.broadcast %0 : vector<1x256xf32> to vector<72x256xf32>
    %20 = arith.addf %18, %19 : vector<72x256xf32>
    %cst_18 = arith.constant 0.000000e+00 : f32
    %21 = vector.broadcast %cst_18 : f32 to vector<72x256xf32>
    %22 = arith.maximumf %20, %21 : vector<72x256xf32>
    %23 = arith.truncf %22 : vector<72x256xf32> to vector<72x256xbf16>
    %c8_19 = arith.constant 8 : index
    %c0_20 = arith.constant 0 : index
    %24 = vector.load %arg7[%c8_19, %c0_20] : memref<96x256xbf16, #tpu.memory_space<vmem>>, vector<72x256xbf16>
    tpu.vector_store %arg7[%c8_19, %c0_20], %23 {strides = array<i32>} : memref<96x256xbf16, #tpu.memory_space<vmem>>, vector<72x256xbf16>,
    %cst_21 = arith.constant 0.000000e+00 : bf16
    %25 = vector.broadcast %cst_21 : bf16 to vector<8x256xbf16>
    %c0_22 = arith.constant 0 : index
    %c0_23 = arith.constant 0 : index
    %26 = vector.load %arg7[%c0_22, %c0_23] : memref<96x256xbf16, #tpu.memory_space<vmem>>, vector<8x256xbf16>
    tpu.vector_store %arg7[%c0_22, %c0_23], %25 {strides = array<i32>} : memref<96x256xbf16, #tpu.memory_space<vmem>>, vector<8x256xbf16>,
    %c40 = arith.constant 40 : index
    %c0_24 = arith.constant 0 : index
    %27 = vector.load %arg7[%c40, %c0_24] : memref<96x256xbf16, #tpu.memory_space<vmem>>, vector<8x256xbf16>
    tpu.vector_store %arg7[%c40, %c0_24], %25 {strides = array<i32>} : memref<96x256xbf16, #tpu.memory_space<vmem>>, vector<8x256xbf16>,
    %c80 = arith.constant 80 : index
    %c0_25 = arith.constant 0 : index
    %28 = vector.load %arg7[%c80, %c0_25] : memref<96x256xbf16, #tpu.memory_space<vmem>>, vector<8x256xbf16>
    tpu.vector_store %arg7[%c80, %c0_25], %25 {strides = array<i32>} : memref<96x256xbf16, #tpu.memory_space<vmem>>, vector<8x256xbf16>,
    %c7_26 = arith.constant 7 : index
    %c0_27 = arith.constant 0 : index
    %29 = vector.load %arg7[%c7_26, %c0_27] : memref<96x256xbf16, #tpu.memory_space<vmem>>, vector<72x256xbf16>
    %c0_28 = arith.constant 0 : index
    %c0_29 = arith.constant 0 : index
    %c0_30 = arith.constant 0 : index
    %30 = vector.load %arg4[%c0_28, %c0_29, %c0_30] : memref<3x256x256xbf16, #tpu.memory_space<vmem>>, vector<1x256x256xbf16>
    %31 = vector.shape_cast %30 : vector<1x256x256xbf16> to vector<256x256xbf16>
    %cst_31 = arith.constant dense<0.000000e+00> : vector<72x256xf32>
    %32 = tpu.matmul %29, %31, %cst_31 {dimension_numbers = #tpu.dot_dimension_numbers<[1], [0], [0], [1], [0, 0, 1, 1], [], []>} : vector<72x256xbf16>, vector<256x256xbf16>, vector<72x256xf32> -> vector<72x256xf32>
    %c8_32 = arith.constant 8 : index
    %c0_33 = arith.constant 0 : index
    %33 = vector.load %arg7[%c8_32, %c0_33] : memref<96x256xbf16, #tpu.memory_space<vmem>>, vector<72x256xbf16>
    %c1_34 = arith.constant 1 : index
    %c0_35 = arith.constant 0 : index
    %c0_36 = arith.constant 0 : index
    %34 = vector.load %arg4[%c1_34, %c0_35, %c0_36] : memref<3x256x256xbf16, #tpu.memory_space<vmem>>, vector<1x256x256xbf16>
    %35 = vector.shape_cast %34 : vector<1x256x256xbf16> to vector<256x256xbf16>
    %cst_37 = arith.constant dense<0.000000e+00> : vector<72x256xf32>
    %36 = tpu.matmul %33, %35, %cst_37 {dimension_numbers = #tpu.dot_dimension_numbers<[1], [0], [0], [1], [0, 0, 1, 1], [], []>} : vector<72x256xbf16>, vector<256x256xbf16>, vector<72x256xf32> -> vector<72x256xf32>
    %37 = arith.addf %32, %36 : vector<72x256xf32>
    %c9_38 = arith.constant 9 : index
    %c0_39 = arith.constant 0 : index
    %38 = vector.load %arg7[%c9_38, %c0_39] : memref<96x256xbf16, #tpu.memory_space<vmem>>, vector<72x256xbf16>
    %c2_40 = arith.constant 2 : index
    %c0_41 = arith.constant 0 : index
    %c0_42 = arith.constant 0 : index
    %39 = vector.load %arg4[%c2_40, %c0_41, %c0_42] : memref<3x256x256xbf16, #tpu.memory_space<vmem>>, vector<1x256x256xbf16>
    %40 = vector.shape_cast %39 : vector<1x256x256xbf16> to vector<256x256xbf16>
    %cst_43 = arith.constant dense<0.000000e+00> : vector<72x256xf32>
    %41 = tpu.matmul %38, %40, %cst_43 {dimension_numbers = #tpu.dot_dimension_numbers<[1], [0], [0], [1], [0, 0, 1, 1], [], []>} : vector<72x256xbf16>, vector<256x256xbf16>, vector<72x256xf32> -> vector<72x256xf32>
    %42 = arith.addf %37, %41 : vector<72x256xf32>
    %43 = vector.broadcast %1 : vector<1x256xf32> to vector<72x256xf32>
    %44 = arith.addf %42, %43 : vector<72x256xf32>
    %cst_44 = arith.constant 0.000000e+00 : f32
    %45 = vector.broadcast %cst_44 : f32 to vector<72x256xf32>
    %46 = arith.maximumf %44, %45 : vector<72x256xf32>
    %c0_45 = arith.constant 0 : index
    %c0_46 = arith.constant 0 : index
    %c0_47 = arith.constant 0 : index
    %47 = vector.load %arg6[%c0_45, %c0_46, %c0_47] : memref<1x80x256xf32, #tpu.memory_space<vmem>>, vector<1x72x256xf32>
    %48 = vector.shape_cast %47 : vector<1x72x256xf32> to vector<72x256xf32>
    %49 = vector.shape_cast %46 : vector<72x256xf32> to vector<1x72x256xf32>
    tpu.vector_store %arg6[%c0_45, %c0_46, %c0_47], %49 {strides = array<i32>} : memref<1x80x256xf32, #tpu.memory_space<vmem>>, vector<1x72x256xf32>,
    return
  }
  func.func @transform_0(%arg0: i32) -> (i32, i32, i32) {
    %c0_i32 = arith.constant 0 : i32
    %c0_i32_0 = arith.constant 0 : i32
    %c0_i32_1 = arith.constant 0 : i32
    return %arg0, %c0_i32, %c0_i32_0 : i32, i32, i32
  }
  func.func @transform_1(%arg0: i32) -> (i32, i32, i32) {
    %c0_i32 = arith.constant 0 : i32
    %c0_i32_0 = arith.constant 0 : i32
    %c0_i32_1 = arith.constant 0 : i32
    %c0_i32_2 = arith.constant 0 : i32
    return %c0_i32, %c0_i32_0, %c0_i32_1 : i32, i32, i32
  }
  func.func @transform_2(%arg0: i32) -> (i32, i32) {
    %c0_i32 = arith.constant 0 : i32
    %c0_i32_0 = arith.constant 0 : i32
    %c0_i32_1 = arith.constant 0 : i32
    return %c0_i32, %c0_i32_0 : i32, i32
  }
  func.func @transform_3(%arg0: i32) -> (i32, i32, i32) {
    %c0_i32 = arith.constant 0 : i32
    %c0_i32_0 = arith.constant 0 : i32
    %c0_i32_1 = arith.constant 0 : i32
    %c0_i32_2 = arith.constant 0 : i32
    return %c0_i32, %c0_i32_0, %c0_i32_1 : i32, i32, i32
  }
  func.func @transform_4(%arg0: i32) -> (i32, i32) {
    %c0_i32 = arith.constant 0 : i32
    %c0_i32_0 = arith.constant 0 : i32
    %c0_i32_1 = arith.constant 0 : i32
    return %c0_i32, %c0_i32_0 : i32, i32
  }
  func.func @transform_5(%arg0: i32) -> (i32, i32, i32) {
    %c0_i32 = arith.constant 0 : i32
    %c0_i32_0 = arith.constant 0 : i32
    %c0_i32_1 = arith.constant 0 : i32
    return %arg0, %c0_i32, %c0_i32_0 : i32, i32, i32
  }
}

module attributes {stable_mosaic.version = 11 : i64} {
  func.func @kernel(%arg0: i32, %arg1: memref<1x96x64xbf16, #tpu.memory_space<vmem>>, %arg2: memref<3x64x256xbf16, #tpu.memory_space<vmem>>, %arg3: memref<1x256xf32, #tpu.memory_space<vmem>>, %arg4: memref<3x256x256xbf16, #tpu.memory_space<vmem>>, %arg5: memref<1x256xf32, #tpu.memory_space<vmem>>, %arg6: memref<1x80x256xf32, #tpu.memory_space<vmem>>, %arg7: memref<96x256xbf16, #tpu.memory_space<vmem>>) attributes {dimension_semantics = [#tpu.dimension_semantics<parallel>], iteration_bounds = array<i64: 1>, scalar_prefetch = 0 : i64, scratch_operands = 1 : i64, tpu.core_type = #tpu.core_type<tc>, window_params = [{transform_indices = @transform_0, window_bounds = array<i64: 1, 96, 64>}, {pipeline_mode = #tpu.pipeline_mode<synchronous>, transform_indices = @transform_1, window_bounds = array<i64: 3, 64, 256>}, {pipeline_mode = #tpu.pipeline_mode<synchronous>, transform_indices = @transform_2, window_bounds = array<i64: 1, 256>}, {pipeline_mode = #tpu.pipeline_mode<synchronous>, transform_indices = @transform_3, window_bounds = array<i64: 3, 256, 256>}, {pipeline_mode = #tpu.pipeline_mode<synchronous>, transform_indices = @transform_4, window_bounds = array<i64: 1, 256>}, {transform_indices = @transform_5, window_bounds = array<i64: 1, 80, 256>}]} {
    %c0 = arith.constant 0 : index
    %c0_0 = arith.constant 0 : index
    %0 = vector.load %arg3[%c0, %c0_0] : memref<1x256xf32, #tpu.memory_space<vmem>>, vector<1x256xf32>
    %c0_1 = arith.constant 0 : index
    %c0_2 = arith.constant 0 : index
    %1 = vector.load %arg5[%c0_1, %c0_2] : memref<1x256xf32, #tpu.memory_space<vmem>>, vector<1x256xf32>
    %c0_3 = arith.constant 0 : index
    %c7 = arith.constant 7 : index
    %c0_4 = arith.constant 0 : index
    %2 = vector.load %arg1[%c0_3, %c7, %c0_4] : memref<1x96x64xbf16, #tpu.memory_space<vmem>>, vector<1x72x64xbf16>
    %3 = vector.shape_cast %2 : vector<1x72x64xbf16> to vector<72x64xbf16>
    %c0_5 = arith.constant 0 : index
    %c0_6 = arith.constant 0 : index
    %c0_7 = arith.constant 0 : index
    %4 = vector.load %arg2[%c0_5, %c0_6, %c0_7] : memref<3x64x256xbf16, #tpu.memory_space<vmem>>, vector<1x64x256xbf16>
    %5 = vector.shape_cast %4 : vector<1x64x256xbf16> to vector<64x256xbf16>
    %cst = arith.constant dense<0.000000e+00> : vector<72x256xf32>
    %6 = tpu.matmul %3, %5, %cst {dimension_numbers = #tpu.dot_dimension_numbers<[1], [0], [0], [1], [0, 0, 1, 1], [], []>} : vector<72x64xbf16>, vector<64x256xbf16>, vector<72x256xf32> -> vector<72x256xf32>
    %c0_8 = arith.constant 0 : index
    %c8 = arith.constant 8 : index
    %c0_9 = arith.constant 0 : index
    %7 = vector.load %arg1[%c0_8, %c8, %c0_9] : memref<1x96x64xbf16, #tpu.memory_space<vmem>>, vector<1x72x64xbf16>
    %8 = vector.shape_cast %7 : vector<1x72x64xbf16> to vector<72x64xbf16>
    %c1 = arith.constant 1 : index
    %c0_10 = arith.constant 0 : index
    %c0_11 = arith.constant 0 : index
    %9 = vector.load %arg2[%c1, %c0_10, %c0_11] : memref<3x64x256xbf16, #tpu.memory_space<vmem>>, vector<1x64x256xbf16>
    %10 = vector.shape_cast %9 : vector<1x64x256xbf16> to vector<64x256xbf16>
    %cst_12 = arith.constant dense<0.000000e+00> : vector<72x256xf32>
    %11 = tpu.matmul %8, %10, %cst_12 {dimension_numbers = #tpu.dot_dimension_numbers<[1], [0], [0], [1], [0, 0, 1, 1], [], []>} : vector<72x64xbf16>, vector<64x256xbf16>, vector<72x256xf32> -> vector<72x256xf32>
    %12 = arith.addf %6, %11 : vector<72x256xf32>
    %c0_13 = arith.constant 0 : index
    %c9 = arith.constant 9 : index
    %c0_14 = arith.constant 0 : index
    %13 = vector.load %arg1[%c0_13, %c9, %c0_14] : memref<1x96x64xbf16, #tpu.memory_space<vmem>>, vector<1x72x64xbf16>
    %14 = vector.shape_cast %13 : vector<1x72x64xbf16> to vector<72x64xbf16>
    %c2 = arith.constant 2 : index
    %c0_15 = arith.constant 0 : index
    %c0_16 = arith.constant 0 : index
    %15 = vector.load %arg2[%c2, %c0_15, %c0_16] : memref<3x64x256xbf16, #tpu.memory_space<vmem>>, vector<1x64x256xbf16>
    %16 = vector.shape_cast %15 : vector<1x64x256xbf16> to vector<64x256xbf16>
    %cst_17 = arith.constant dense<0.000000e+00> : vector<72x256xf32>
    %17 = tpu.matmul %14, %16, %cst_17 {dimension_numbers = #tpu.dot_dimension_numbers<[1], [0], [0], [1], [0, 0, 1, 1], [], []>} : vector<72x64xbf16>, vector<64x256xbf16>, vector<72x256xf32> -> vector<72x256xf32>
    %18 = arith.addf %12, %17 : vector<72x256xf32>
    %19 = vector.broadcast %0 : vector<1x256xf32> to vector<72x256xf32>
    %20 = arith.addf %18, %19 : vector<72x256xf32>
    %cst_18 = arith.constant 0.000000e+00 : f32
    %21 = vector.broadcast %cst_18 : f32 to vector<72x256xf32>
    %22 = arith.maximumf %20, %21 : vector<72x256xf32>
    %23 = arith.truncf %22 : vector<72x256xf32> to vector<72x256xbf16>
    %c8_19 = arith.constant 8 : index
    %c0_20 = arith.constant 0 : index
    %24 = vector.load %arg7[%c8_19, %c0_20] : memref<96x256xbf16, #tpu.memory_space<vmem>>, vector<72x256xbf16>
    tpu.vector_store %arg7[%c8_19, %c0_20], %23 {strides = array<i32>} : memref<96x256xbf16, #tpu.memory_space<vmem>>, vector<72x256xbf16>,
    %cst_21 = arith.constant 0.000000e+00 : bf16
    %25 = vector.broadcast %cst_21 : bf16 to vector<8x256xbf16>
    %c0_22 = arith.constant 0 : index
    %c0_23 = arith.constant 0 : index
    %26 = vector.load %arg7[%c0_22, %c0_23] : memref<96x256xbf16, #tpu.memory_space<vmem>>, vector<8x256xbf16>
    tpu.vector_store %arg7[%c0_22, %c0_23], %25 {strides = array<i32>} : memref<96x256xbf16, #tpu.memory_space<vmem>>, vector<8x256xbf16>,
    %c40 = arith.constant 40 : index
    %c0_24 = arith.constant 0 : index
    %27 = vector.load %arg7[%c40, %c0_24] : memref<96x256xbf16, #tpu.memory_space<vmem>>, vector<8x256xbf16>
    tpu.vector_store %arg7[%c40, %c0_24], %25 {strides = array<i32>} : memref<96x256xbf16, #tpu.memory_space<vmem>>, vector<8x256xbf16>,
    %c80 = arith.constant 80 : index
    %c0_25 = arith.constant 0 : index
    %28 = vector.load %arg7[%c80, %c0_25] : memref<96x256xbf16, #tpu.memory_space<vmem>>, vector<8x256xbf16>
    tpu.vector_store %arg7[%c80, %c0_25], %25 {strides = array<i32>} : memref<96x256xbf16, #tpu.memory_space<vmem>>, vector<8x256xbf16>,
    %c7_26 = arith.constant 7 : index
    %c0_27 = arith.constant 0 : index
    %29 = vector.load %arg7[%c7_26, %c0_27] : memref<96x256xbf16, #tpu.memory_space<vmem>>, vector<72x256xbf16>
    %c0_28 = arith.constant 0 : index
    %c0_29 = arith.constant 0 : index
    %c0_30 = arith.constant 0 : index
    %30 = vector.load %arg4[%c0_28, %c0_29, %c0_30] : memref<3x256x256xbf16, #tpu.memory_space<vmem>>, vector<1x256x256xbf16>
    %31 = vector.shape_cast %30 : vector<1x256x256xbf16> to vector<256x256xbf16>
    %cst_31 = arith.constant dense<0.000000e+00> : vector<72x256xf32>
    %32 = tpu.matmul %29, %31, %cst_31 {dimension_numbers = #tpu.dot_dimension_numbers<[1], [0], [0], [1], [0, 0, 1, 1], [], []>} : vector<72x256xbf16>, vector<256x256xbf16>, vector<72x256xf32> -> vector<72x256xf32>
    %c8_32 = arith.constant 8 : index
    %c0_33 = arith.constant 0 : index
    %33 = vector.load %arg7[%c8_32, %c0_33] : memref<96x256xbf16, #tpu.memory_space<vmem>>, vector<72x256xbf16>
    %c1_34 = arith.constant 1 : index
    %c0_35 = arith.constant 0 : index
    %c0_36 = arith.constant 0 : index
    %34 = vector.load %arg4[%c1_34, %c0_35, %c0_36] : memref<3x256x256xbf16, #tpu.memory_space<vmem>>, vector<1x256x256xbf16>
    %35 = vector.shape_cast %34 : vector<1x256x256xbf16> to vector<256x256xbf16>
    %cst_37 = arith.constant dense<0.000000e+00> : vector<72x256xf32>
    %36 = tpu.matmul %33, %35, %cst_37 {dimension_numbers = #tpu.dot_dimension_numbers<[1], [0], [0], [1], [0, 0, 1, 1], [], []>} : vector<72x256xbf16>, vector<256x256xbf16>, vector<72x256xf32> -> vector<72x256xf32>
    %37 = arith.addf %32, %36 : vector<72x256xf32>
    %c9_38 = arith.constant 9 : index
    %c0_39 = arith.constant 0 : index
    %38 = vector.load %arg7[%c9_38, %c0_39] : memref<96x256xbf16, #tpu.memory_space<vmem>>, vector<72x256xbf16>
    %c2_40 = arith.constant 2 : index
    %c0_41 = arith.constant 0 : index
    %c0_42 = arith.constant 0 : index
    %39 = vector.load %arg4[%c2_40, %c0_41, %c0_42] : memref<3x256x256xbf16, #tpu.memory_space<vmem>>, vector<1x256x256xbf16>
    %40 = vector.shape_cast %39 : vector<1x256x256xbf16> to vector<256x256xbf16>
    %cst_43 = arith.constant dense<0.000000e+00> : vector<72x256xf32>
    %41 = tpu.matmul %38, %40, %cst_43 {dimension_numbers = #tpu.dot_dimension_numbers<[1], [0], [0], [1], [0, 0, 1, 1], [], []>} : vector<72x256xbf16>, vector<256x256xbf16>, vector<72x256xf32> -> vector<72x256xf32>
    %42 = arith.addf %37, %41 : vector<72x256xf32>
    %43 = vector.broadcast %1 : vector<1x256xf32> to vector<72x256xf32>
    %44 = arith.addf %42, %43 : vector<72x256xf32>
    %cst_44 = arith.constant 0.000000e+00 : f32
    %45 = vector.broadcast %cst_44 : f32 to vector<72x256xf32>
    %46 = arith.maximumf %44, %45 : vector<72x256xf32>
    %c0_45 = arith.constant 0 : index
    %c0_46 = arith.constant 0 : index
    %c0_47 = arith.constant 0 : index
    %47 = vector.load %arg6[%c0_45, %c0_46, %c0_47] : memref<1x80x256xf32, #tpu.memory_space<vmem>>, vector<1x72x256xf32>
    %48 = vector.shape_cast %47 : vector<1x72x256xf32> to vector<72x256xf32>
    %49 = vector.shape_cast %46 : vector<72x256xf32> to vector<1x72x256xf32>
    tpu.vector_store %arg6[%c0_45, %c0_46, %c0_47], %49 {strides = array<i32>} : memref<1x80x256xf32, #tpu.memory_space<vmem>>, vector<1x72x256xf32>,
    return
  }
  func.func @transform_0(%arg0: i32) -> (i32, i32, i32) {
    %c0_i32 = arith.constant 0 : i32
    %c0_i32_0 = arith.constant 0 : i32
    %c0_i32_1 = arith.constant 0 : i32
    return %arg0, %c0_i32, %c0_i32_0 : i32, i32, i32
  }
  func.func @transform_1(%arg0: i32) -> (i32, i32, i32) {
    %c0_i32 = arith.constant 0 : i32
    %c0_i32_0 = arith.constant 0 : i32
    %c0_i32_1 = arith.constant 0 : i32
    %c0_i32_2 = arith.constant 0 : i32
    return %c0_i32, %c0_i32_0, %c0_i32_1 : i32, i32, i32
  }
  func.func @transform_2(%arg0: i32) -> (i32, i32) {
    %c0_i32 = arith.constant 0 : i32
    %c0_i32_0 = arith.constant 0 : i32
    %c0_i32_1 = arith.constant 0 : i32
    return %c0_i32, %c0_i32_0 : i32, i32
  }
  func.func @transform_3(%arg0: i32) -> (i32, i32, i32) {
    %c0_i32 = arith.constant 0 : i32
    %c0_i32_0 = arith.constant 0 : i32
    %c0_i32_1 = arith.constant 0 : i32
    %c0_i32_2 = arith.constant 0 : i32
    return %c0_i32, %c0_i32_0, %c0_i32_1 : i32, i32, i32
  }
  func.func @transform_4(%arg0: i32) -> (i32, i32) {
    %c0_i32 = arith.constant 0 : i32
    %c0_i32_0 = arith.constant 0 : i32
    %c0_i32_1 = arith.constant 0 : i32
    return %c0_i32, %c0_i32_0 : i32, i32
  }
  func.func @transform_5(%arg0: i32) -> (i32, i32, i32) {
    %c0_i32 = arith.constant 0 : i32
    %c0_i32_0 = arith.constant 0 : i32
    %c0_i32_1 = arith.constant 0 : i32
    return %arg0, %c0_i32, %c0_i32_0 : i32, i32, i32
  }
}

</mosaic_0001>

<bundles_post_ra>
// kernel: tpu_custom_call.1
= control target key start
LH: loop header
LB: loop body
LE: loop exit
PB: predicated region body
PF: predicated region fallthrough
CT: control target
= control target key end

     0   :  { %10 = vsyncpa [#allocation4], 0  ;;  %s2910_s0 = inlined_call_operand.vmem [shape: bf16[1,96,64], index: 0, kind: input, shape index: {}]   ;;  %s2911_s1 = inlined_call_operand.hbm [shape: bf16[3,64,256], index: 1, kind: input, shape index: {}]   ;;  %s2912_s2 = inlined_call_operand.vmem [shape: f32[1,256], index: 2, kind: input, shape index: {}]   ;;  %s2913_s3 = inlined_call_operand.hbm [shape: bf16[3,256,256], index: 3, kind: input, shape index: {}]   ;;  %s2914_s4 = inlined_call_operand.vmem [shape: f32[1,256], index: 4, kind: input, shape index: {}]   ;;  %s2915_s5 = inlined_call_operand.hbm [shape: f32[1,80,256], index: 5, kind: output, shape index: {}]  }
   0x1   :  { %11 = vsyncpa [#allocation7], 0 }
   0x2   :  { %12 = vsyncpa [#allocation5], 0  ;;  %s2457_s18 = smov [#allocation3]   ;;  %s2385_s22 = scalar_lea.hbm %s2911_s1, 3072 }
   0x3   :  { %s20_s19 = sshll.u32 %s2457_s18, 4  ;;  %p2386_p0 = scmp.ne.s32.totalorder %s2911_s1, %s2385_s22  ;;  %s21_s19 = int_to_ptr.vmem [resolvable:$true] %s20_s19 }
   0x4   :  { %p2389_p1 = scmp.lt.u32.totalorder %s2385_s22, %s2911_s1 }
   0x6   :  { %p2391_p2 = pnand %p2389_p1, %p2386_p0 }
   0x8   :  { %2394 = shalt.err (!%p2391_p2)
}
   0x9   :  { %s2395_s27 = scalar_lea.vmem %s21_s19, 3072  ;;  %p2400_p4 = scmp.lt.s32.totalorder %s21_s19, %s21_s19 }
   0xa   :  { %p2396_p3 = scmp.ne.s32.totalorder %s21_s19, %s2395_s27  ;;  %p2401_p5 = scmp.lt.s32.totalorder %s2395_s27, %s2395_s27 }
   0xc   :  { %p2402_p6 = por %p2401_p5, %p2400_p4 }
   0xe   :  { %p2403_p7 = pnand %p2402_p6, %p2396_p3 }
  0x10   :  { %2406 = shalt.err (!%p2403_p7)
}
  0x11   :  { %s2458_s28 = smov 128   ;;  %s2459_s29 = smov 8  }
  0x12   :  { %26 = dma.hbm_to_vmem [thread:$0]  %s2911_s1, 3072, %s21_s19, [#allocation4], %s2458_s28, %s2458_s28, %s2459_s29  }
  0x13   :  { %s2460_s7 = smov [#allocation6]   ;;  %s2407_s11 = scalar_lea.hbm %s2913_s3, 12288 }
  0x14   :  { %s34_s8 = sshll.u32 %s2460_s7, 4  ;;  %p2408_p8 = scmp.ne.s32.totalorder %s2913_s3, %s2407_s11  ;;  %s35_s8 = int_to_ptr.vmem [resolvable:$true] %s34_s8 }
  0x15   :  { %p2411_p9 = scmp.lt.u32.totalorder %s2407_s11, %s2913_s3 }
  0x17   :  { %p2413_p10 = pnand %p2411_p9, %p2408_p8 }
  0x19   :  { %2416 = shalt.err (!%p2413_p10)
}
  0x1a   :  { %s2417_s16 = scalar_lea.vmem %s35_s8, 12288  ;;  %p2422_p12 = scmp.lt.s32.totalorder %s35_s8, %s35_s8 }
  0x1b   :  { %p2418_p11 = scmp.ne.s32.totalorder %s35_s8, %s2417_s16  ;;  %p2423_p13 = scmp.lt.s32.totalorder %s2417_s16, %s2417_s16 }
  0x1d   :  { %p2424_p0 = por %p2423_p13, %p2422_p12 }
  0x1f   :  { %p2425_p1 = pnand %p2424_p0, %p2418_p11 }
  0x21   :  { %2428 = shalt.err (!%p2425_p1)
}
  0x22   :  { %40 = dma.hbm_to_vmem [thread:$0]  %s2913_s3, 12288, %s35_s8, [#allocation7], %s2458_s28, %s2458_s28, %s2459_s29  }
  0x23   :  { %2451 = dma.done.wait [#allocation4], 3072  }
  0x24   :  { %2452 = vsyncadd [#allocation4], 4294964224 }
  0x25   :  { %2453 = dma.done.wait [#allocation7], 12288  }
  0x26   :  { %2454 = vsyncadd [#allocation7], 4294955008  ;;  %v2461_v0 = vmov 0   ;;  %v2190_v1 = vld [vmem:[#allocation3 + $0x44] ss:$8 sps:$4 sm:$0xff]   ;;  %vm142_vm0 = vcmask 523264  }
  0x27   :  { %190 = vmatprep.mubr.bf16.mxu1 %v2461_v0  ;;  %771 = vst [vmem:[#allocation2] sm:$0xf] %v2461_v0  ;;  %772 = vst [vmem:[#allocation2 + $0x8] sm:$0xf] %v2461_v0  ;;  %378 = vmatprep.mubr.bf16.mxu0 %v2461_v0  ;;  %v2192_v2 = vld [vmem:[#allocation3 + $0x4] ss:$8 sps:$4 sm:$0xff]  }
  0x28   :  { %775 = vst [vmem:[#allocation2 + $0x50] sm:$0xf] %v2461_v0  ;;  %776 = vst [vmem:[#allocation2 + $0x58] sm:$0xf] %v2461_v0  ;;  %158 = vmatprep.subr.bf16.mxu1 %v2190_v1  ;;  %v2194_v3 = vld [vmem:[#allocation3 + $0x40] ss:$8 sps:$4 sm:$0xff]   ;;  %346 = vmatprep.subr.bf16.mxu0 %v2192_v2 }
  0x29   :  { %v2195_v4 = vld [vmem:[#allocation3] ss:$8 sps:$4 sm:$0xff]   ;;  %v2196_v5 = vld [vmem:[#allocation3 + $0x54] ss:$8 sps:$4 sm:$0xff]   ;;  %159 = vmatpush1.bf16.msra.mxu1 %v2194_v3  ;;  %v2200_v7 = vld [vmem:[#allocation3 + $0x50] ss:$8 sps:$4 sm:$0xff]  }
  0x2a   :  { %347 = vmatpush1.bf16.msra.mxu0 %v2195_v4  ;;  %v2198_v6 = vld [vmem:[#allocation3 + $0x14] ss:$8 sps:$4 sm:$0xff]   ;;  %160 = vmatprep.subr.bf16.mxu1 %v2196_v5  ;;  %v2201_v8 = vld [vmem:[#allocation3 + $0x10] ss:$8 sps:$4 sm:$0xff]   ;;  %v2202_v9 = vld [vmem:[#allocation3 + $0x64] ss:$8 sps:$4 sm:$0xff]  }
  0x2b   :  { %348 = vmatprep.subr.bf16.mxu0 %v2198_v6  ;;  %v2204_v10 = vld [vmem:[#allocation3 + $0x24] ss:$8 sps:$4 sm:$0xff]   ;;  %v2206_v11 = vld [vmem:[#allocation3 + $0x60] ss:$8 sps:$4 sm:$0xff]   ;;  %v2208_v13 = vld [vmem:[#allocation3 + $0x74] ss:$8 sps:$4 sm:$0xff]  }
  0x2c   :  { %v2207_v12 = vld [vmem:[#allocation3 + $0x20] ss:$8 sps:$4 sm:$0xff]   ;;  %v2210_v14 = vld [vmem:[#allocation3 + $0x34] ss:$8 sps:$4 sm:$0xff]   ;;  %v2212_v15 = vld [vmem:[#allocation3 + $0x70] ss:$8 sps:$4 sm:$0xff]  }
  0x2d   :  { %161 = vmatpush1.bf16.msra.mxu1 %v2200_v7  ;;  %v52_v16 = vld [vmem:[%s2910_s0] sm:$0x8]  ;;  %v53_v17 = vld [vmem:[%s2910_s0 + $0x4] sm:$0xf]  ;;  %v54_v18 = vld [vmem:[%s2910_s0 + $0x8] sm:$0xf] }
  0x2e   :  { %349 = vmatpush1.bf16.msra.mxu0 %v2201_v8  ;;  %162 = vmatprep.subr.bf16.mxu1 %v2202_v9  ;;  %v55_v19 = vld [vmem:[%s2910_s0 + $0xc] sm:$0xf]  ;;  %v2213_v20 = vld [vmem:[#allocation3 + $0x30] ss:$8 sps:$4 sm:$0xff]   ;;  %v1986_v21 = vcombine.low %v52_v16, %v53_v17  ;;  %v2543_v25 = vld [vmem:[%s2910_s0 + $0x14] sm:$0xf]  ;;  %v1968_v30 = vcombine.low %v53_v17, %v54_v18 }
  0x2f   :  { %350 = vmatprep.subr.bf16.mxu0 %v2204_v10  ;;  %v1987_v22 = vcombine.low %v54_v18, %v55_v19  ;;  %v2219_v23 = vld [vmem:[#allocation3 + $0x84] ss:$8 sps:$4 sm:$0xff]   ;;  %v56_v24 = vld [vmem:[%s2910_s0 + $0x10] sm:$0xf]  ;;  %v2549_v32 = vld [vmem:[%s2910_s0 + $0x18] sm:$0xf] }
  0x30   :  { %v248_v26 = vshrl.u32 %v1986_v21, 16  ;;  %v251_v27 = vshll.u32 %v1986_v21, 16  ;;  %v1988_v31 = vcombine.low %v56_v24, %v2543_v25  ;;  %v2554_v37 = vld [vmem:[%s2910_s0 + $0x1c] sm:$0xf]  ;;  %vm246_vm1 = vsmask.f32 4352 }
  0x31   :  { %163 = vmatpush1.bf16.msra.mxu1 %v2206_v11  ;;  %v256_v28 = vshrl.u32 %v1987_v22, 16  ;;  %v259_v29 = vshll.u32 %v1987_v22, 16  ;;  %v2217_v42 = vld [vmem:[#allocation3 + $0x80] ss:$8 sps:$4 sm:$0xff]   ;;  %v1989_v43 = vcombine.low %v2549_v32, %v2554_v37  ;;  %v2224_v46 = vld [vmem:[#allocation3 + $0x94] ss:$8 sps:$4 sm:$0xff]   ;;  %v1969_v54 = vcombine.low %v55_v19, %v56_v24 }
  0x32   :  { %351 = vmatpush1.bf16.msra.mxu0 %v2207_v12  ;;  %164 = vmatprep.subr.bf16.mxu1 %v2208_v13  ;;  %v250_v33 = vrot.slane %v248_v26, 3  ;;  %v253_v34 = vrot.slane %v251_v27, 4  ;;  %v265_v38 = vshrl.u32 %v1988_v31, 16  ;;  %v268_v39 = vshll.u32 %v1988_v31, 16  ;;  %v2222_v48 = vld [vmem:[#allocation3 + $0x90] ss:$8 sps:$4 sm:$0xff]  }
  0x33   :  { %352 = vmatprep.subr.bf16.mxu0 %v2210_v14  ;;  %v258_v35 = vrot.slane %v256_v28, 3  ;;  %v261_v36 = vrot.slane %v259_v29, 4  ;;  %v60_v49 = vld [vmem:[%s2910_s0 + $0x20] sm:$0xf]  ;;  %v274_v51 = vshrl.u32 %v1989_v43, 16  ;;  %v277_v52 = vshll.u32 %v1989_v43, 16 }
  0x34   :  { %v254_v40 = vor.u32 %v253_v34, %v250_v33  ;;  %v267_v44 = vrot.slane %v265_v38, 3  ;;  %v270_v45 = vrot.slane %v268_v39, 4  ;;  %v61_v53 = vld [vmem:[%s2910_s0 + $0x24] sm:$0xf]  ;;  %v2227_v56 = vld [vmem:[#allocation3 + $0xa0] ss:$8 sps:$4 sm:$0xff]   ;;  %v1970_v5 = vcombine.low %v2543_v25, %v2549_v32 }
  0x35   :  { %165 = vmatpush1.bf16.msra.mxu1 %v2212_v15  ;;  %v262_v41 = vor.u32 %v261_v36, %v258_v35  ;;  %v2229_v55 = vld [vmem:[#allocation3 + $0xa4] ss:$8 sps:$4 sm:$0xff]   ;;  %v1990_v57 = vcombine.low %v60_v49, %v61_v53  ;;  %v276_v59 = vrot.slane %v274_v51, 3  ;;  %v279_v60 = vrot.slane %v277_v52, 4  ;;  %v2234_v61 = vld [vmem:[#allocation3 + $0xb4] ss:$8 sps:$4 sm:$0xff]  }
  0x36   :  { %353 = vmatpush1.bf16.msra.mxu0 %v2213_v20  ;;  %v271_v50 = vor.u32 %v270_v45, %v267_v44  ;;  %v2232_v63 = vld [vmem:[#allocation3 + $0xb0] ss:$8 sps:$4 sm:$0xff]   ;;  %v2244_v3 = vld [vmem:[#allocation6] ss:$8 sps:$4 sm:$0xff]   ;;  %v2246_v4 = vld [vmem:[#allocation6 + $0x4] ss:$8 sps:$4 sm:$0xff]   ;;  %v1971_v11 = vcombine.low %v2554_v37, %v60_v49  ;;  %v1972_v16 = vcombine.low %v61_v53, %v61_v53 }
  0x37   :  { %566 = vmatprep.subr.bf16.mxu0 %v2219_v23  ;;  %v263_v47 = vsel %vm246_vm1, %v254_v40, %v262_v41  ;;  %v283_v62 = vshrl.u32 %v1990_v57, 16  ;;  %v280_v1 = vor.u32 %v279_v60, %v276_v59  ;;  %v286_v2 = vshll.u32 %v1990_v57, 16  ;;  %v2243_v6 = vld [vmem:[#allocation6 + $0x104] ss:$8 sps:$4 sm:$0xff]   ;;  %1391 = vmatprep.subr.bf16.mxu1 %v2246_v4  ;;  %v2238_v20 = vld [vmem:[%s2910_s0 + $0x14] sm:$0xff]  }
  0x38   :  { %1981 = vmatmul.mubr.msk.bf16.vlgmr.msra.gmra.mrb[0].mxu1 %vm142_vm0, %v1968_v30  ;;  %v272_v58 = vsel %vm246_vm1, %v262_v41, %v271_v50  ;;  %v2236_v12 = vld [vmem:[%s2910_s0 + $0x4] sm:$0xff]   ;;  %v2237_v14 = vld [vmem:[%s2910_s0 + $0xc] sm:$0xff]   ;;  %vm471_vm2 = vsmask.f32 7424  ;;  %v2249_v24 = vld [vmem:[#allocation6 + $0x114] ss:$8 sps:$4 sm:$0xff]  }
  0x39   :  { %200 = vmatprep.mubr.bf16.mxu1 %v2461_v0  ;;  %1999 = vmatmul.mubr.msk.bf16.vlgmr.msra.gmra.mrb[0].mxu0 %vm142_vm0, %v263_v47  ;;  %v281_v7 = vsel %vm246_vm1, %v271_v50, %v280_v1  ;;  %v285_v8 = vrot.slane %v283_v62, 3  ;;  %v288_v9 = vrot.slane %v286_v2, 4  ;;  %v475_v15 = vshll.u32 %v2236_v12, 16  ;;  %v2241_v23 = vld [vmem:[#allocation6 + $0x100] ss:$8 sps:$4 sm:$0xff]  }
  0x3a   :  { %567 = vmatpush1.bf16.msra.mxu0 %v2217_v42  ;;  %388 = vmatprep.mubr.bf16.mxu0 %v2461_v0  ;;  %v473_v17 = vshrl.u32 %v2236_v12, 16  ;;  %v480_v19 = vshll.u32 %v2237_v14, 16  ;;  %v484_v26 = vshrl.u32 %v2237_v14, 16  ;;  %v488_v27 = vshll.u32 %v2238_v20, 16  ;;  %v2239_v30 = vld [vmem:[%s2910_s0 + $0x1c] sm:$0xff]  }
  0x3b   :  { %568 = vmatprep.subr.bf16.mxu0 %v2224_v46  ;;  %1392 = vmatpush1.bf16.msra.mxu1 %v2244_v3  ;;  %v289_v10 = vor.u32 %v288_v9, %v285_v8  ;;  %v477_v18 = vrot.slane %v475_v15, 1  ;;  %v2247_v31 = vld [vmem:[#allocation6 + $0x110] ss:$8 sps:$4 sm:$0xff]   ;;  %v492_v33 = vshrl.u32 %v2238_v20, 16  ;;  %v496_v34 = vshll.u32 %v2239_v30, 16 }
  0x3c   :  { %v482_v22 = vrot.slane %v480_v19, 1  ;;  %v490_v29 = vrot.slane %v488_v27, 1  ;;  %v2240_v37 = vld [vmem:[%s2910_s0 + $0x24] sm:$0x1f]   ;;  %v500_v39 = vshrl.u32 %v2239_v30, 16  ;;  %vm732_vm3 = vcmask 1043456  }
  0x3d   :  { %v290_v13 = vsel %vm246_vm1, %v280_v1, %v289_v10  ;;  %v478_v21 = vor.u32 %v477_v18, %v473_v17  ;;  %v498_v36 = vrot.slane %v496_v34, 1  ;;  %v504_v40 = vshll.u32 %v2240_v37, 16  ;;  %v2250_v46 = vld [vmem:[#allocation6 + $0x10] ss:$8 sps:$4 sm:$0xff]   ;;  %v2252_v47 = vld [vmem:[#allocation6 + $0x14] ss:$8 sps:$4 sm:$0xff]  }
  0x3e   :  { %569 = vmatpush1.bf16.msra.mxu0 %v2222_v48  ;;  %v486_v28 = vor.u32 %v484_v26, %v482_v22  ;;  %v494_v35 = vor.u32 %v492_v33, %v490_v29  ;;  %v508_v44 = vshrl.u32 %v2240_v37, 16  ;;  %v2253_v48 = vld [vmem:[#allocation6 + $0x120] ss:$8 sps:$4 sm:$0xff]   ;;  %v2255_v49 = vld [vmem:[#allocation6 + $0x124] ss:$8 sps:$4 sm:$0xff]   ;;  %1393 = vmatprep.subr.bf16.mxu1 %v2252_v47 }
  0x3f   :  { %570 = vmatprep.subr.bf16.mxu0 %v2229_v55  ;;  %v483_v25 = vsel %vm471_vm2, %v478_v21, %v482_v22  ;;  %v502_v41 = vor.u32 %v500_v39, %v498_v36  ;;  %v506_v42 = vrot.slane %v504_v40, 1  ;;  %1394 = vmatpush1.bf16.msra.mxu1 %v2250_v46  ;;  %v2256_v50 = vld [vmem:[#allocation6 + $0x20] ss:$8 sps:$4 sm:$0xff]   ;;  %v2258_v51 = vld [vmem:[#allocation6 + $0x24] ss:$8 sps:$4 sm:$0xff]  }
  0x40   :  { %1982 = vmatmul.mubr.msk.bf16.gmra.mrb[4].mxu1 %vm142_vm0, %v1969_v54  ;;  %v491_v32 = vsel %vm471_vm2, %v486_v28, %v490_v29  ;;  %v499_v38 = vsel %vm471_vm2, %v494_v35, %v498_v36  ;;  %v2259_v52 = vld [vmem:[#allocation6 + $0x130] ss:$8 sps:$4 sm:$0xff]   ;;  %v2261_v53 = vld [vmem:[#allocation6 + $0x134] ss:$8 sps:$4 sm:$0xff]   ;;  %1395 = vmatprep.subr.bf16.mxu1 %v2258_v51  ;;  %v2267_v57 = vld [vmem:[#allocation6 + $0x144] ss:$8 sps:$4 sm:$0xff]  }
  0x41   :  { %210 = vmatprep.mubr.bf16.mxu1 %v2461_v0  ;;  %2000 = vmatmul.mubr.msk.bf16.gmra.mrb[4].mxu0 %vm142_vm0, %v272_v58  ;;  %v507_v43 = vsel %vm471_vm2, %v502_v41, %v506_v42  ;;  %v510_v45 = vor.u32 %v508_v44, %v506_v42  ;;  %v2262_v54 = vld [vmem:[#allocation6 + $0x30] ss:$8 sps:$4 sm:$0xff]   ;;  %v2264_v55 = vld [vmem:[#allocation6 + $0x34] ss:$8 sps:$4 sm:$0xff]   ;;  %v2270_v58 = vld [vmem:[#allocation6 + $0x44] ss:$8 sps:$4 sm:$0xff]  }
  0x42   :  { %398 = vmatprep.mubr.bf16.mxu0 %v2461_v0  ;;  %571 = vmatpush1.bf16.msra.mxu0 %v2227_v56  ;;  %v2265_v56 = vld [vmem:[#allocation6 + $0x140] ss:$8 sps:$4 sm:$0xff]   ;;  %v2273_v60 = vld [vmem:[#allocation6 + $0x154] ss:$8 sps:$4 sm:$0xff]   ;;  %v2279_v1 = vld [vmem:[#allocation6 + $0x164] ss:$8 sps:$4 sm:$0xff]  }
  0x43   :  { %572 = vmatprep.subr.bf16.mxu0 %v2234_v61  ;;  %1396 = vmatpush1.bf16.msra.mxu1 %v2256_v50  ;;  %v2268_v59 = vld [vmem:[#allocation6 + $0x40] ss:$8 sps:$4 sm:$0xff]   ;;  %v2271_v61 = vld [vmem:[#allocation6 + $0x150] ss:$8 sps:$4 sm:$0xff]   ;;  %v2276_v62 = vld [vmem:[#allocation6 + $0x54] ss:$8 sps:$4 sm:$0xff]  }
  0x44   :  { %1397 = vmatprep.subr.bf16.mxu1 %v2264_v55  ;;  %v2277_v2 = vld [vmem:[#allocation6 + $0x160] ss:$8 sps:$4 sm:$0xff]   ;;  %v2282_v3 = vld [vmem:[#allocation6 + $0x64] ss:$8 sps:$4 sm:$0xff]   ;;  %v2286_v8 = vld [vmem:[#allocation6 + $0x70] ss:$8 sps:$4 sm:$0xff]  }
  0x45   :  { %v2280_v4 = vld [vmem:[#allocation6 + $0x60] ss:$8 sps:$4 sm:$0xff]   ;;  %v2291_v9 = vld [vmem:[#allocation6 + $0x184] ss:$8 sps:$4 sm:$0xff]   ;;  %v2295_v14 = vld [vmem:[#allocation6 + $0x190] ss:$8 sps:$4 sm:$0xff]  }
  0x46   :  { %573 = vmatpush1.bf16.msra.mxu0 %v2232_v63  ;;  %v2274_v63 = vld [vmem:[#allocation6 + $0x50] ss:$8 sps:$4 sm:$0xff]   ;;  %v2292_v12 = vld [vmem:[#allocation6 + $0x80] ss:$8 sps:$4 sm:$0xff]   ;;  %v2300_v15 = vld [vmem:[#allocation6 + $0x94] ss:$8 sps:$4 sm:$0xff]  }
  0x47   :  { %1052 = vmatprep.subr.bf16.mxu0 %v2243_v6  ;;  %1398 = vmatpush1.bf16.msra.mxu1 %v2262_v54  ;;  %v2283_v6 = vld [vmem:[#allocation6 + $0x170] ss:$8 sps:$4 sm:$0xff]   ;;  %v2303_v17 = vld [vmem:[#allocation6 + $0x1a4] ss:$8 sps:$4 sm:$0xff]   ;;  %v2301_v18 = vld [vmem:[#allocation6 + $0x1a0] ss:$8 sps:$4 sm:$0xff]  }
  0x48   :  { %1983 = vmatmul.mubr.msk.bf16.gmra.mrb[8].mxu1 %vm142_vm0, %v1970_v5  ;;  %1399 = vmatprep.subr.bf16.mxu1 %v2270_v58  ;;  %v2285_v5 = vld [vmem:[#allocation6 + $0x174] ss:$8 sps:$4 sm:$0xff]   ;;  %v2306_v19 = vld [vmem:[#allocation6 + $0xa4] ss:$8 sps:$4 sm:$0xff]   ;;  %v2304_v20 = vld [vmem:[#allocation6 + $0xa0] ss:$8 sps:$4 sm:$0xff]   ;;  %v666_v58 = vlaneseq }
  0x49   :  { %220 = vmatprep.mubr.bf16.mxu1 %v2461_v0  ;;  %2001 = vmatmul.mubr.msk.bf16.gmra.mrb[8].mxu0 %vm142_vm0, %v281_v7  ;;  %v2288_v7 = vld [vmem:[#allocation6 + $0x74] ss:$8 sps:$4 sm:$0xff]   ;;  %v2307_v22 = vld [vmem:[#allocation6 + $0x1b0] ss:$8 sps:$4 sm:$0xff]   ;;  %v2313_v26 = vld [vmem:[#allocation6 + $0x1c0] ss:$8 sps:$4 sm:$0xff]  }
  0x4a   :  { %408 = vmatprep.mubr.bf16.mxu0 %v2461_v0  ;;  %v2309_v21 = vld [vmem:[#allocation6 + $0x1b4] ss:$8 sps:$4 sm:$0xff]   ;;  %v2318_v27 = vld [vmem:[#allocation6 + $0xc4] ss:$8 sps:$4 sm:$0xff]   ;;  %v2316_v28 = vld [vmem:[#allocation6 + $0xc0] ss:$8 sps:$4 sm:$0xff]  }
  0x4b   :  { %1400 = vmatpush1.bf16.msra.mxu1 %v2268_v59  ;;  %v2321_v29 = vld [vmem:[#allocation6 + $0x1d4] ss:$8 sps:$4 sm:$0xff]   ;;  %v2319_v30 = vld [vmem:[#allocation6 + $0x1d0] ss:$8 sps:$4 sm:$0xff]   ;;  %v2327_v33 = vld [vmem:[#allocation6 + $0x1e4] ss:$8 sps:$4 sm:$0xff]  }
  0x4c   :  { %1401 = vmatprep.subr.bf16.mxu1 %v2276_v62  ;;  %v2325_v34 = vld [vmem:[#allocation6 + $0x1e0] ss:$8 sps:$4 sm:$0xff]   ;;  %v2330_v35 = vld [vmem:[#allocation6 + $0xe4] ss:$8 sps:$4 sm:$0xff]   ;;  %v2333_v37 = vld [vmem:[#allocation6 + $0x1f4] ss:$8 sps:$4 sm:$0xff]  }
  0x4d   :  { %v2328_v36 = vld [vmem:[#allocation6 + $0xe0] ss:$8 sps:$4 sm:$0xff]   ;;  %v2336_v39 = vld [vmem:[#allocation6 + $0xf4] ss:$8 sps:$4 sm:$0xff]   ;;  %v2334_v40 = vld [vmem:[#allocation6 + $0xf0] ss:$8 sps:$4 sm:$0xff]  }
  0x4e   :  { %v2339_v41 = vld [vmem:[#allocation6 + $0x204] ss:$8 sps:$4 sm:$0xff]   ;;  %vm1517_vm4 = vsmask.f32 3328 }
  0x4f   :  { %1402 = vmatpush1.bf16.msra.mxu1 %v2274_v63 }
  0x50   :  { %1984 = vmatmul.mubr.msk.bf16.gmra.mrb[12].mxu1 %vm142_vm0, %v1971_v11  ;;  %1403 = vmatprep.subr.bf16.mxu1 %v2282_v3  ;;  %v2294_v11 = vld [vmem:[#allocation6 + $0x84] ss:$8 sps:$4 sm:$0xff]  }
  0x51   :  { %230 = vmatprep.mubr.bf16.mxu1 %v2461_v0  ;;  %2002 = vmatmul.mubr.msk.bf16.gmra.mrb[12].mxu0 %vm142_vm0, %v290_v13  ;;  %v2297_v13 = vld [vmem:[#allocation6 + $0x194] ss:$8 sps:$4 sm:$0xff]  }
  0x52   :  { %418 = vmatprep.mubr.bf16.mxu0 %v2461_v0 }
  0x53   :  { %1404 = vmatpush1.bf16.msra.mxu1 %v2280_v4 }
  0x54   :  { %1405 = vmatprep.subr.bf16.mxu1 %v2288_v7 }
  0x57   :  { %1406 = vmatpush1.bf16.msra.mxu1 %v2286_v8  ;;  %v50_v8 = vld [vmem:[%s2912_s2] sm:$0x3] }
  0x58   :  { %1985 = vmatmul.mubr.msk.bf16.gmra.mrb[16].mxu1 %vm142_vm0, %v1972_v16  ;;  %1407 = vmatprep.subr.bf16.mxu1 %v2294_v11  ;;  %v2298_v16 = vld [vmem:[#allocation6 + $0x90] ss:$8 sps:$4 sm:$0xff]  }
  0x59   :  { %2003 = vmatmul.mubr.msk.bf16.gmra.mrb[16].mxu0 %vm142_vm0, %v289_v10  ;;  %v2289_v10 = vld [vmem:[#allocation6 + $0x180] ss:$8 sps:$4 sm:$0xff]  }
  0x5a   :  { %598 = vmatprep.mubr.bf16.mxu0 %v2461_v0 }
  0x5b   :  { %1408 = vmatpush1.bf16.msra.mxu1 %v2292_v12 }
  0x5c   :  { %1409 = vmatprep.subr.bf16.mxu1 %v2300_v15 }
  0x5f   :  { %1410 = vmatpush1.bf16.msra.mxu1 %v2298_v16 }
  0x60   :  { %1411 = vmatprep.subr.bf16.mxu1 %v2306_v19 }
  0x61   :  { %2017 = vmatmul.mubr.msk.bf16.vlgmr.msra.gmra.mrb[0].mxu0 %vm142_vm0, %v483_v25  ;;  %v2315_v25 = vld [vmem:[#allocation6 + $0x1c4] ss:$8 sps:$4 sm:$0xff]  }
  0x62   :  { %608 = vmatprep.mubr.bf16.mxu0 %v2461_v0  ;;  %1053 = vmatpush1.bf16.msra.mxu0 %v2241_v23  ;;  %v2312_v23 = vld [vmem:[#allocation6 + $0xb4] ss:$8 sps:$4 sm:$0xff]  }
  0x63   :  { %1054 = vmatprep.subr.bf16.mxu0 %v2249_v24  ;;  %1412 = vmatpush1.bf16.msra.mxu1 %v2304_v20  ;;  %v2310_v24 = vld [vmem:[#allocation6 + $0xb0] ss:$8 sps:$4 sm:$0xff]  }
  0x64   :  { %1413 = vmatprep.subr.bf16.mxu1 %v2312_v23 }
  0x66   :  { %1055 = vmatpush1.bf16.msra.mxu0 %v2247_v31  ;;  %v2324_v31 = vld [vmem:[#allocation6 + $0xd4] ss:$8 sps:$4 sm:$0xff]  }
  0x67   :  { %1056 = vmatprep.subr.bf16.mxu0 %v2255_v49  ;;  %1414 = vmatpush1.bf16.msra.mxu1 %v2310_v24 }
  0x68   :  { %1415 = vmatprep.subr.bf16.mxu1 %v2318_v27 }
  0x69   :  { %2018 = vmatmul.mubr.msk.bf16.gmra.mrb[4].mxu0 %vm142_vm0, %v491_v32  ;;  %v2322_v32 = vld [vmem:[#allocation6 + $0xd0] ss:$8 sps:$4 sm:$0xff]  }
  0x6a   :  { %618 = vmatprep.mubr.bf16.mxu0 %v2461_v0  ;;  %1057 = vmatpush1.bf16.msra.mxu0 %v2253_v48 }
  0x6b   :  { %1058 = vmatprep.subr.bf16.mxu0 %v2261_v53  ;;  %1416 = vmatpush1.bf16.msra.mxu1 %v2316_v28 }
  0x6c   :  { %1417 = vmatprep.subr.bf16.mxu1 %v2324_v31 }
  0x6e   :  { %1059 = vmatpush1.bf16.msra.mxu0 %v2259_v52 }
  0x6f   :  { %1060 = vmatprep.subr.bf16.mxu0 %v2267_v57  ;;  %1418 = vmatpush1.bf16.msra.mxu1 %v2322_v32 }
  0x70   :  { %1419 = vmatprep.subr.bf16.mxu1 %v2330_v35 }
  0x71   :  { %2019 = vmatmul.mubr.msk.bf16.gmra.mrb[8].mxu0 %vm142_vm0, %v499_v38  ;;  %v2331_v38 = vld [vmem:[#allocation6 + $0x1f0] ss:$8 sps:$4 sm:$0xff]  }
  0x72   :  { %628 = vmatprep.mubr.bf16.mxu0 %v2461_v0  ;;  %1061 = vmatpush1.bf16.msra.mxu0 %v2265_v56 }
  0x73   :  { %1062 = vmatprep.subr.bf16.mxu0 %v2273_v60  ;;  %1420 = vmatpush1.bf16.msra.mxu1 %v2328_v36 }
  0x74   :  { %1421 = vmatprep.subr.bf16.mxu1 %v2336_v39 }
  0x76   :  { %1063 = vmatpush1.bf16.msra.mxu0 %v2271_v61  ;;  %v2634_v61 = vshrl.u32 %v666_v58, 7 }
  0x77   :  { %1064 = vmatprep.subr.bf16.mxu0 %v2279_v1  ;;  %1422 = vmatpush1.bf16.msra.mxu1 %v2334_v40 }
  0x78   :  { %1786 = vmatprep.subr.bf16.mxu1 %v2339_v41  ;;  %v668_v7 = vsub.s32 0, %v2634_v61 }
  0x79   :  { %2020 = vmatmul.mubr.msk.bf16.gmra.mrb[12].mxu0 %vm142_vm0, %v507_v43 }
  0x7a   :  { %638 = vmatprep.mubr.bf16.mxu0 %v2461_v0  ;;  %1065 = vmatpush1.bf16.msra.mxu0 %v2277_v2 }
  0x7b   :  { %1066 = vmatprep.subr.bf16.mxu0 %v2285_v5 }
  0x7e   :  { %1067 = vmatpush1.bf16.msra.mxu0 %v2283_v6 }
  0x7f   :  { %1068 = vmatprep.subr.bf16.mxu0 %v2291_v9  ;;  %v672_v9 = vsub.s32 1, %v2634_v61 }
  0x81   :  { %2021 = vmatmul.mubr.msk.bf16.gmra.mrb[20].mxu0 %vm142_vm0, %v510_v45  ;;  %v2651_v12 = vrot.slane %v50_v8, %v672_v9 }
  0x82   :  { %1069 = vmatpush1.bf16.msra.mxu0 %v2289_v10  ;;  %v2647_v10 = vrot.slane %v50_v8, %v668_v7 }
  0x83   :  { %1070 = vmatprep.subr.bf16.mxu0 %v2297_v13 }
  0x86   :  { %1071 = vmatpush1.bf16.msra.mxu0 %v2295_v14 }
  0x87   :  { %1072 = vmatprep.subr.bf16.mxu0 %v2303_v17 }
  0x8a   :  { %1073 = vmatpush1.bf16.msra.mxu0 %v2301_v18 }
  0x8b   :  { %1074 = vmatprep.subr.bf16.mxu0 %v2309_v21 }
  0x8e   :  { %1075 = vmatpush1.bf16.msra.mxu0 %v2307_v22 }
  0x8f   :  { %1076 = vmatprep.subr.bf16.mxu0 %v2315_v25 }
  0x92   :  { %1077 = vmatpush1.bf16.msra.mxu0 %v2313_v26 }
  0x93   :  { %1078 = vmatprep.subr.bf16.mxu0 %v2321_v29 }
  0x96   :  { %1079 = vmatpush1.bf16.msra.mxu0 %v2319_v30 }
  0x97   :  { %1080 = vmatprep.subr.bf16.mxu0 %v2327_v33 }
  0x9a   :  { %1081 = vmatpush1.bf16.msra.mxu0 %v2325_v34 }
  0x9b   :  { %1082 = vmatprep.subr.bf16.mxu0 %v2333_v37 }
  0x9e   :  { %1083 = vmatpush1.bf16.msra.mxu0 %v2331_v38 }
 0x10b   :  { %v192_v42 = vpop.f32.mrb[0].mxu1 }
 0x10c   :  { %v194_v43 = vpop.f32.mrb[1].mxu1 }
 0x10d   :  { %v196_v44 = vpop.f32.mrb[2].mxu1 }
 0x10e   :  { %v198_v45 = vpop.f32.mrb[3].mxu1 }
 0x113   :  { %v202_v46 = vpop.f32.mrb[4].mxu1 }
 0x114   :  { %v204_v47 = vpop.f32.mrb[5].mxu1 }
 0x115   :  { %v206_v48 = vpop.f32.mrb[6].mxu1 }
 0x116   :  { %v208_v49 = vpop.f32.mrb[7].mxu1 }
 0x11b   :  { %v2618_v50 = vpop.f32.mrb[8].mxu1 }
 0x11c   :  { %v2620_v51 = vpop.f32.mrb[9].mxu1 }
 0x11d   :  { %v2622_v52 = vpop.f32.mrb[10].mxu1 }
 0x11e   :  { %v2624_v53 = vpop.f32.mrb[11].mxu1 }
 0x123   :  { %v2626_v54 = vpop.f32.mrb[12].mxu1 }
 0x124   :  { %v2628_v55 = vpop.f32.mrb[13].mxu1 }
 0x125   :  { %v2630_v56 = vpop.f32.mrb[14].mxu1 }
 0x126   :  { %v2632_v57 = vpop.f32.mrb[15].mxu1 }
 0x12b   :  { %v232_v59 = vpop.f32.mrb[16].mxu1 }
 0x12c   :  { %v234_v60 = vpop.f32.mrb[17].mxu1  ;;  %v420_v62 = vpop.f32.mrb[16].mxu0 }
 0x12d   :  { %v236_v63 = vpop.f32.mrb[18].mxu1  ;;  %v2636_v1 = vadd.f32 %v420_v62, %v232_v59  ;;  %v422_v2 = vpop.f32.mrb[17].mxu0 }
 0x12e   :  { %v237_v3 = vpop.f32.mrb[19].mxu1  ;;  %v2638_v4 = vadd.f32 %v422_v2, %v234_v60  ;;  %v424_v5 = vpop.f32.mrb[18].mxu0 }
 0x12f   :  { %v425_v6 = vpop.f32.mrb[19].mxu0 }
 0x134   :  { %v600_v11 = vpop.f32.mrb[0].mxu0 }
 0x135   :  { %v2118_v13 = vadd.f32 %v600_v11, %v192_v42  ;;  %v602_v14 = vpop.f32.mrb[1].mxu0 }
 0x136   :  { %v2119_v15 = vadd.f32 %v602_v14, %v194_v43  ;;  %v604_v16 = vpop.f32.mrb[2].mxu0 }
 0x137   :  { %v676_v17 = vadd.f32 %v2118_v13, %v2647_v10  ;;  %v2120_v18 = vadd.f32 %v604_v16, %v196_v44  ;;  %v606_v19 = vpop.f32.mrb[3].mxu0 }
 0x138   :  { %v677_v20 = vadd.f32 %v2119_v15, %v2651_v12  ;;  %v2121_v21 = vadd.f32 %v606_v19, %v198_v45 }
 0x139   :  { %v678_v22 = vadd.f32 %v2120_v18, %v2647_v10  ;;  %v694_v24 = vmax.f32 %v676_v17, 0.0 }
 0x13a   :  { %v679_v23 = vadd.f32 %v2121_v21, %v2651_v12  ;;  %v695_v26 = vmax.f32 %v677_v20, 0.0 }
 0x13b   :  { %v696_v25 = vmax.f32 %v678_v22, 0.0 }
 0x13c   :  { %v697_v27 = vmax.f32 %v679_v23, 0.0  ;;  %v610_v28 = vpop.f32.mrb[4].mxu0 }
 0x13d   :  { %v712_v29 = vpack.c.bf16 %v696_v25, %v694_v24  ;;  %v2122_v30 = vadd.f32 %v610_v28, %v202_v46  ;;  %v612_v31 = vpop.f32.mrb[5].mxu0 }
 0x13e   :  { %v713_v32 = vpack.c.bf16 %v697_v27, %v695_v26  ;;  %v2123_v33 = vadd.f32 %v612_v31, %v204_v47  ;;  %v614_v34 = vpop.f32.mrb[6].mxu0 }
 0x13f   :  { %v733_v35 = vrot.slane %v712_v29, 4  ;;  %v680_v36 = vadd.f32 %v2122_v30, %v2647_v10  ;;  %v2124_v37 = vadd.f32 %v614_v34, %v206_v48  ;;  %v616_v38 = vpop.f32.mrb[7].mxu0 }
 0x140   :  { %v734_v39 = vrot.slane %v713_v32, 4  ;;  %v681_v40 = vadd.f32 %v2123_v33, %v2651_v12  ;;  %v2125_v41 = vadd.f32 %v616_v38, %v208_v49 }
 0x141   :  { %761 = vst [vmem:[#allocation2] sm:$0xf0] %v733_v35  ;;  %v682_v42 = vadd.f32 %v2124_v37, %v2647_v10  ;;  %v698_v44 = vmax.f32 %v680_v36, 0.0 }
 0x142   :  { %762 = vst [vmem:[#allocation2 + $0x8] sm:$0xf0] %v734_v39  ;;  %v683_v43 = vadd.f32 %v2125_v41, %v2651_v12  ;;  %v699_v46 = vmax.f32 %v681_v40, 0.0 }
 0x143   :  { %v700_v45 = vmax.f32 %v682_v42, 0.0 }
 0x144   :  { %v701_v47 = vmax.f32 %v683_v43, 0.0  ;;  %v620_v58 = vpop.f32.mrb[8].mxu0 }
 0x145   :  { %v714_v59 = vpack.c.bf16 %v700_v45, %v698_v44  ;;  %v2126_v60 = vadd.f32 %v620_v58, %v2618_v50  ;;  %v622_v48 = vpop.f32.mrb[9].mxu0 }
 0x146   :  { %v715_v62 = vpack.c.bf16 %v701_v47, %v699_v46  ;;  %v2127_v63 = vadd.f32 %v622_v48, %v2620_v51  ;;  %v624_v49 = vpop.f32.mrb[10].mxu0 }
 0x147   :  { %v735_v2 = vrot.slane %v714_v59, 4  ;;  %v684_v3 = vadd.f32 %v2126_v60, %v2647_v10  ;;  %v2128_v5 = vadd.f32 %v624_v49, %v2622_v52  ;;  %v626_v6 = vpop.f32.mrb[11].mxu0 }
 0x148   :  { %v737_v8 = vrot.slane %v715_v62, 4  ;;  %v685_v11 = vadd.f32 %v2127_v63, %v2651_v12  ;;  %v2129_v13 = vadd.f32 %v626_v6, %v2624_v53  ;;  %v819_v14 = vld [vmem:[#allocation2] sm:$0xf0] }
 0x149   :  { %v2668_v50 = vsel %vm732_vm3, %v733_v35, %v735_v2  ;;  %v702_v15 = vmax.f32 %v684_v3, 0.0  ;;  %v686_v16 = vadd.f32 %v2128_v5, %v2647_v10  ;;  %v820_v51 = vld [vmem:[#allocation2 + $0x8] sm:$0xf0]  ;;  %v864_v17 = vrot.slane %v819_v14, 4  ;;  %v777_v44 = vld [vmem:[#allocation2] sm:$0xf8] }
 0x14a   :  { %v778_v18 = vld [vmem:[#allocation2 + $0x8] sm:$0xf8]  ;;  %v2672_v19 = vsel %vm732_vm3, %v734_v39, %v737_v8  ;;  %v703_v52 = vmax.f32 %v685_v11, 0.0  ;;  %v687_v20 = vadd.f32 %v2129_v13, %v2651_v12  ;;  %v867_v21 = vrot.slane %v820_v51, 4 }
 0x14b   :  { %v704_v22 = vmax.f32 %v686_v16, 0.0  ;;  %v868_v53 = vrot.slane %v2672_v19, 4  ;;  %v865_v23 = vrot.slane %v2668_v50, 4  ;;  %v1151_v24 = vshrl.u32 %v778_v18, 16 }
 0x14c   :  { %v705_v25 = vmax.f32 %v687_v20, 0.0  ;;  %v630_v26 = vpop.f32.mrb[12].mxu0  ;;  %v1154_v27 = vshll.u32 %v778_v18, 16  ;;  %v1159_v28 = vshrl.u32 %v2672_v19, 16  ;;  %v1162_v29 = vshll.u32 %v2672_v19, 16 }
 0x14d   :  { %v2679_v30 = vpack.c.bf16 %v704_v22, %v702_v15  ;;  %v2130_v31 = vadd.f32 %v630_v26, %v2626_v54  ;;  %v632_v32 = vpop.f32.mrb[13].mxu0  ;;  %v869_v33 = vsel %vm732_vm3, %v867_v21, %v868_v53  ;;  %v866_v34 = vsel %vm732_vm3, %v864_v17, %v865_v23  ;;  %v2367_v19 = vld [vmem:[#allocation6 + $0x2a0] ss:$8 sps:$4 sm:$0xff]  }
 0x14e   :  { %v717_v35 = vpack.c.bf16 %v705_v25, %v703_v52  ;;  %v2131_v36 = vadd.f32 %v632_v32, %v2628_v55  ;;  %v634_v37 = vpop.f32.mrb[14].mxu0  ;;  %1084 = vmatprep.mubr.bf16.mxu0 %v869_v33  ;;  %v1153_v38 = vrot.slane %v1151_v24, 3  ;;  %v1156_v39 = vrot.slane %v1154_v27, 4  ;;  %v2342_v33 = vld [vmem:[#allocation6 + $0x214] ss:$8 sps:$4 sm:$0xff]  }
 0x14f   :  { %v739_v40 = vrot.slane %v2679_v30, 4  ;;  %v688_v54 = vadd.f32 %v2130_v31, %v2647_v10  ;;  %v2132_v41 = vadd.f32 %v634_v37, %v2630_v56  ;;  %v636_v42 = vpop.f32.mrb[15].mxu0  ;;  %1085 = vmatmul.mubr.bf16.vlgmr.msra.gmra.mrb[24].mxu0 %v866_v34  ;;  %v1161_v43 = vrot.slane %v1159_v28, 3  ;;  %v2337_v30 = vld [vmem:[#allocation6 + $0x200] ss:$8 sps:$4 sm:$0xff]  }
 0x150   :  { %v741_v45 = vrot.slane %v717_v35, 4  ;;  %v689_v46 = vadd.f32 %v2131_v36, %v2651_v12  ;;  %v2133_v55 = vadd.f32 %v636_v42, %v2632_v57  ;;  %v1157_v59 = vor.u32 %v1156_v39, %v1153_v38 }
 0x151   :  { %v740_v47 = vsel %vm732_vm3, %v735_v2, %v739_v40  ;;  %v690_v58 = vadd.f32 %v2132_v41, %v2647_v10  ;;  %v1164_v60 = vrot.slane %v1162_v29, 4  ;;  %v706_v48 = vmax.f32 %v688_v54, 0.0  ;;  %v2340_v41 = vld [vmem:[#allocation6 + $0x210] ss:$8 sps:$4 sm:$0xff]  }
 0x152   :  { %765 = vst [vmem:[#allocation2 + $0x20] sm:$0xff] %v740_v47  ;;  %v742_v56 = vsel %vm732_vm3, %v737_v8, %v741_v45  ;;  %v691_v62 = vadd.f32 %v2133_v55, %v2651_v12  ;;  %v1134_v63 = vshrl.u32 %v777_v44, 16  ;;  %v1137_v2 = vshll.u32 %v777_v44, 16 }
 0x153   :  { %773 = vst [vmem:[#allocation2 + $0x20] sm:$0xf0] %v2461_v0  ;;  %766 = vst [vmem:[#allocation2 + $0x28] sm:$0xff] %v742_v56  ;;  %v708_v49 = vmax.f32 %v690_v58, 0.0  ;;  %v2703_v57 = vor.u32 %v1164_v60, %v1161_v43  ;;  %v1142_v3 = vshrl.u32 %v2668_v50, 16  ;;  %v707_v5 = vmax.f32 %v689_v46, 0.0 }
 0x154   :  { %774 = vst [vmem:[#allocation2 + $0x28] sm:$0xf0] %v2461_v0  ;;  %v709_v6 = vmax.f32 %v691_v62, 0.0  ;;  %v640_v11 = vpop.f32.mrb[20].mxu0  ;;  %v1136_v13 = vrot.slane %v1134_v63, 3  ;;  %v1145_v8 = vshll.u32 %v2668_v50, 16 }
 0x155   :  { %v718_v14 = vpack.c.bf16 %v708_v49, %v706_v48  ;;  %v663_v15 = vadd.f32 %v640_v11, %v2636_v1  ;;  %v642_v16 = vpop.f32.mrb[21].mxu0  ;;  %v1166_v51 = vsel %vm246_vm1, %v1157_v59, %v2703_v57  ;;  %v1139_v17 = vrot.slane %v1137_v2, 4  ;;  %v2345_v46 = vld [vmem:[#allocation6 + $0x224] ss:$8 sps:$4 sm:$0xff]  }
 0x156   :  { %v719_v18 = vpack.c.bf16 %v709_v6, %v707_v5  ;;  %v664_v52 = vadd.f32 %v642_v16, %v2638_v4  ;;  %1423 = vmatprep.mubr.bf16.mxu1 %v1166_v51  ;;  %v1144_v0 = vrot.slane %v1142_v3, 3  ;;  %v1147_v20 = vrot.slane %v1145_v8, 4  ;;  %v644_v21 = vpop.f32.mrb[22].mxu0  ;;  %v2343_v5 = vld [vmem:[#allocation6 + $0x220] ss:$8 sps:$4 sm:$0xff]  }
 0x157   :  { %v743_v22 = vrot.slane %v718_v14, 4  ;;  %v692_v24 = vadd.f32 %v2647_v10, %v663_v15  ;;  %v1140_v1 = vor.u32 %v1139_v17, %v1136_v13  ;;  %v645_v25 = vpop.f32.mrb[23].mxu0  ;;  %v1473_v50 = vld [vmem:[#allocation2 + $0x8] sm:$0xf0] }
 0x158   :  { %v745_v26 = vrot.slane %v719_v18, 4  ;;  %v693_v27 = vadd.f32 %v2651_v12, %v664_v52  ;;  %v1148_v31 = vor.u32 %v1147_v20, %v1144_v0 }
 0x159   :  { %v2719_v4 = vsel %vm732_vm3, %v739_v40, %v743_v22  ;;  %v710_v32 = vmax.f32 %v692_v24, 0.0 }
 0x15a   :  { %v2722_v34 = vsel %vm732_vm3, %v741_v45, %v745_v26  ;;  %v711_v35 = vmax.f32 %v693_v27, 0.0  ;;  %v1149_v36 = vsel %vm246_vm1, %v1140_v1, %v1148_v31  ;;  %v2725_v37 = vld [vmem:[#allocation2 + $0x20] sm:$0xff]  ;;  %v874_v58 = vrot.slane %v2719_v4, 4  ;;  %v2346_v1 = vld [vmem:[#allocation6 + $0x230] ss:$8 sps:$4 sm:$0xff]  }
 0x15b   :  { %v720_v10 = vpack.c.bf16 %v710_v32, %v710_v32  ;;  %1424 = vmatmul.mubr.bf16.vlgmr.msra.gmra.mrb[20].mxu1 %v1149_v36  ;;  %v2727_v38 = vld [vmem:[#allocation2 + $0x28] sm:$0xff]  ;;  %v870_v12 = vrot.slane %v2725_v37, 4  ;;  %v1168_v39 = vshrl.u32 %v2725_v37, 16  ;;  %v1171_v40 = vshll.u32 %v2725_v37, 16 }
 0x15c   :  { %v721_v54 = vpack.c.bf16 %v711_v35, %v711_v35  ;;  %1787 = vmatpush1.bf16.msra.mxu1 %v2337_v30  ;;  %v872_v42 = vrot.slane %v2727_v38, 4  ;;  %v1177_v43 = vshrl.u32 %v2727_v38, 16  ;;  %v1180_v44 = vshll.u32 %v2727_v38, 16  ;;  %v2351_v30 = vld [vmem:[#allocation6 + $0x244] ss:$8 sps:$4 sm:$0xff]  }
 0x15d   :  { %v747_v45 = vrot.slane %v720_v10, 4  ;;  %1788 = vmatprep.subr.bf16.mxu1 %v2342_v33  ;;  %v1170_v55 = vrot.slane %v1168_v39, 3  ;;  %v1173_v47 = vrot.slane %v1171_v40, 4  ;;  %v871_v63 = vsel %vm732_vm3, %v865_v23, %v870_v12  ;;  %v2348_v23 = vld [vmem:[#allocation6 + $0x234] ss:$8 sps:$4 sm:$0xff]  }
 0x15e   :  { %v749_v59 = vrot.slane %v721_v54, 4  ;;  %v873_v60 = vsel %vm732_vm3, %v868_v53, %v872_v42  ;;  %v1179_v56 = vrot.slane %v1177_v43, 3  ;;  %v1182_v48 = vrot.slane %v1180_v44, 4  ;;  %v2349_v54 = vld [vmem:[#allocation6 + $0x240] ss:$8 sps:$4 sm:$0xff]  }
 0x15f   :  { %v2748_v62 = vsel %vm732_vm3, %v743_v22, %v747_v45  ;;  %1094 = vmatprep.mubr.bf16.mxu0 %v873_v60  ;;  %v1174_v49 = vor.u32 %v1173_v47, %v1170_v55  ;;  %v876_v2 = vrot.slane %v2722_v34, 4  ;;  %v1195_v11 = vshrl.u32 %v2722_v34, 16 }
 0x160   :  { %v2757_v53 = vsel %vm732_vm3, %v745_v26, %v749_v59  ;;  %1789 = vmatpush1.bf16.msra.mxu1 %v2340_v41  ;;  %1095 = vmatmul.mubr.bf16.gmra.mrb[28].mxu0 %v871_v63  ;;  %v1183_v6 = vor.u32 %v1182_v48, %v1179_v56  ;;  %v1198_v13 = vshll.u32 %v2722_v34, 16  ;;  %v1186_v51 = vshrl.u32 %v2719_v4, 16  ;;  %v2352_v56 = vld [vmem:[#allocation6 + $0x250] ss:$8 sps:$4 sm:$0xff]  }
 0x161   :  { %1790 = vmatprep.subr.bf16.mxu1 %v2345_v46  ;;  %v1175_v14 = vsel %vm246_vm1, %v1148_v31, %v1174_v49  ;;  %v877_v15 = vsel %vm732_vm3, %v872_v42, %v876_v2  ;;  %v880_v16 = vrot.slane %v2757_v53, 4  ;;  %v1197_v18 = vrot.slane %v1195_v11, 3  ;;  %v2354_v46 = vld [vmem:[#allocation6 + $0x254] ss:$8 sps:$4 sm:$0xff]  }
 0x162   :  { %v1184_v17 = vsel %vm246_vm1, %v2703_v57, %v1183_v6  ;;  %1104 = vmatprep.mubr.bf16.mxu0 %v877_v15  ;;  %v1200_v52 = vrot.slane %v1198_v13, 4  ;;  %v1189_v0 = vshll.u32 %v2719_v4, 16  ;;  %v1188_v21 = vrot.slane %v1186_v51, 3 }
 0x163   :  { %1433 = vmatprep.mubr.bf16.mxu1 %v1184_v17  ;;  %v881_v20 = vsel %vm732_vm3, %v876_v2, %v880_v16  ;;  %v878_v22 = vrot.slane %v2748_v62, 4  ;;  %v1213_v24 = vshrl.u32 %v2757_v53, 16  ;;  %v1216_v57 = vshll.u32 %v2757_v53, 16  ;;  %v2358_v53 = vld [vmem:[#allocation6 + $0x270] ss:$8 sps:$4 sm:$0xff]  }
 0x164   :  { %1791 = vmatpush1.bf16.msra.mxu1 %v2343_v5  ;;  %v1201_v25 = vor.u32 %v1200_v52, %v1197_v18  ;;  %v1191_v26 = vrot.slane %v1189_v0, 4  ;;  %v1204_v27 = vshrl.u32 %v2748_v62, 16  ;;  %v1207_v32 = vshll.u32 %v2748_v62, 16  ;;  %v2370_v62 = vld [vmem:[#allocation6 + $0x2b0] ss:$8 sps:$4 sm:$0xff]  }
 0x165   :  { %1434 = vmatmul.mubr.bf16.gmra.mrb[24].mxu1 %v1175_v14  ;;  %1792 = vmatprep.subr.bf16.mxu1 %v2348_v23  ;;  %v879_v31 = vsel %vm732_vm3, %v874_v58, %v878_v22  ;;  %v1215_v4 = vrot.slane %v1213_v24, 3  ;;  %v1218_v34 = vrot.slane %v1216_v57, 4  ;;  %v875_v36 = vsel %vm732_vm3, %v870_v12, %v874_v58  ;;  %v2355_v23 = vld [vmem:[#allocation6 + $0x260] ss:$8 sps:$4 sm:$0xff]  }
 0x166   :  { %v1202_v33 = vsel %vm246_vm1, %v1183_v6, %v1201_v25  ;;  %v1206_v35 = vrot.slane %v1204_v27, 3  ;;  %v1209_v10 = vrot.slane %v1207_v32, 4  ;;  %v1192_v41 = vor.u32 %v1191_v26, %v1188_v21  ;;  %v2361_v26 = vld [vmem:[#allocation6 + $0x280] ss:$8 sps:$4 sm:$0xff]  }
 0x167   :  { %1443 = vmatprep.mubr.bf16.mxu1 %v1202_v33  ;;  %v1219_v42 = vor.u32 %v1218_v34, %v1215_v4  ;;  %v1529_v45 = vrot.slane %v1142_v3, 4  ;;  %v1532_v47 = vrot.slane %v1145_v8, 5  ;;  %v1582_v48 = vrot.slane %v1195_v11, 4  ;;  %v2357_v3 = vld [vmem:[#allocation6 + $0x264] ss:$8 sps:$4 sm:$0xff]  }
 0x168   :  { %1793 = vmatpush1.bf16.msra.mxu1 %v2346_v1  ;;  %1105 = vmatmul.mubr.bf16.gmra.mrb[32].mxu0 %v875_v36  ;;  %v1210_v55 = vor.u32 %v1209_v10, %v1206_v35  ;;  %v1193_v60 = vsel %vm246_vm1, %v1174_v49, %v1192_v41  ;;  %v1585_v63 = vrot.slane %v1198_v13, 5  ;;  %v1573_v2 = vrot.slane %v1186_v51, 4  ;;  %v2360_v11 = vld [vmem:[#allocation6 + $0x274] ss:$8 sps:$4 sm:$0xff]   ;;  %v1472_v34 = vld [vmem:[#allocation2] sm:$0xf0] }
 0x169   :  { %1794 = vmatprep.subr.bf16.mxu1 %v2351_v30  ;;  %1114 = vmatprep.mubr.bf16.mxu0 %v881_v20  ;;  %v1220_v59 = vsel %vm246_vm1, %v1201_v25, %v1219_v42  ;;  %v2789_v58 = vor.u32 %v1532_v47, %v1529_v45  ;;  %v1576_v5 = vrot.slane %v1189_v0, 5  ;;  %v1600_v6 = vrot.slane %v1213_v24, 4  ;;  %v2366_v30 = vld [vmem:[#allocation6 + $0x294] ss:$8 sps:$4 sm:$0xff]   ;;  %v2376_v35 = vld [vmem:[#allocation6 + $0x2d0] ss:$8 sps:$4 sm:$0xff]  }
 0x16a   :  { %v1211_v12 = vsel %vm246_vm1, %v1192_v41, %v1210_v55  ;;  %v1603_v8 = vrot.slane %v1216_v57, 5  ;;  %v1591_v14 = vrot.slane %v1204_v27, 4  ;;  %v1594_v15 = vrot.slane %v1207_v32, 5  ;;  %v2373_v32 = vld [vmem:[#allocation6 + $0x2c0] ss:$8 sps:$4 sm:$0xff]  }
 0x16b   :  { %v2792_v17 = vor.u32 %v1585_v63, %v1582_v48  ;;  %v1536_v13 = vshrl.u32 %v1473_v50, 16  ;;  %v1539_v51 = vshll.u32 %v1473_v50, 16  ;;  %v2798_v18 = vor.u32 %v1576_v5, %v1573_v2  ;;  %v2378_v33 = vld [vmem:[#allocation6 + $0x2d4] ss:$8 sps:$4 sm:$0xff]   ;;  %v2381_v36 = vld [vmem:[#allocation6 + $0x2e4] ss:$8 sps:$4 sm:$0xff]  }
 0x16c   :  { %1795 = vmatpush1.bf16.msra.mxu1 %v2349_v54  ;;  %v2794_v49 = vor.u32 %v1603_v8, %v1600_v6  ;;  %v2800_v52 = vor.u32 %v1594_v15, %v1591_v14  ;;  %v1546_v1 = vrot.slane %v1159_v28, 4  ;;  %v1549_v25 = vrot.slane %v1162_v29, 5  ;;  %v2369_v28 = vld [vmem:[#allocation6 + $0x2a4] ss:$8 sps:$4 sm:$0xff]   ;;  %v2372_v29 = vld [vmem:[#allocation6 + $0x2b4] ss:$8 sps:$4 sm:$0xff]  }
 0x16d   :  { %1444 = vmatmul.mubr.bf16.gmra.mrb[28].mxu1 %v1193_v60  ;;  %1796 = vmatprep.subr.bf16.mxu1 %v2354_v46  ;;  %v1538_v21 = vrot.slane %v1536_v13, 4  ;;  %v1541_v24 = vrot.slane %v1539_v51, 5  ;;  %v1519_v10 = vshrl.u32 %v1472_v34, 16  ;;  %v1522_v54 = vshll.u32 %v1472_v34, 16  ;;  %v2379_v41 = vld [vmem:[#allocation6 + $0x2e0] ss:$8 sps:$4 sm:$0xff]  }
 0x16e   :  { %1453 = vmatprep.mubr.bf16.mxu1 %v1220_v59  ;;  %v2805_v0 = vsel %vm1517_vm4, %v2792_v17, %v2794_v49  ;;  %v2810_v20 = vsel %vm1517_vm4, %v2798_v18, %v2800_v52  ;;  %v1550_v27 = vor.u32 %v1549_v25, %v1546_v1  ;;  %v1567_v47 = vrot.slane %v1180_v44, 5  ;;  %v2382_v59 = vld [vmem:[#allocation6 + $0x2f0] ss:$8 sps:$4 sm:$0xff]  }
 0x16f   :  { %v1542_v57 = vor.u32 %v1541_v24, %v1538_v21  ;;  %v1521_v45 = vrot.slane %v1519_v10, 4  ;;  %v1524_v46 = vrot.slane %v1522_v54, 5  ;;  %v1555_v48 = vrot.slane %v1168_v39, 4  ;;  %v1483_v2 = vld [vmem:[#allocation2 + $0x58] sm:$0x1] }
 0x170   :  { %1797 = vmatpush1.bf16.msra.mxu1 %v2352_v56  ;;  %1115 = vmatmul.mubr.bf16.gmra.mrb[36].mxu0 %v879_v31  ;;  %v2364_v31 = vld [vmem:[#allocation6 + $0x290] ss:$8 sps:$4 sm:$0xff]   ;;  %v1558_v63 = vrot.slane %v1171_v40, 5  ;;  %v1612_v37 = vshll.u32 %v1483_v2, 16 }
 0x171   :  { %1124 = vmatprep.mubr.bf16.mxu0 %v880_v16  ;;  %1798 = vmatprep.subr.bf16.mxu1 %v2357_v3  ;;  %v2363_v16 = vld [vmem:[#allocation6 + $0x284] ss:$8 sps:$4 sm:$0xff]   ;;  %v1551_v4 = vsel %vm1517_vm4, %v1542_v57, %v1550_v27  ;;  %v1482_v5 = vld [vmem:[#allocation2 + $0x50] sm:$0x1] }
 0x172   :  { %v1559_v38 = vor.u32 %v1558_v63, %v1555_v48  ;;  %v1614_v40 = vrot.slane %v1612_v37, 5  ;;  %v1607_v6 = vshll.u32 %v1482_v5, 16 }
 0x174   :  { %1799 = vmatpush1.bf16.msra.mxu1 %v2355_v23  ;;  %v1560_v44 = vsel %vm1517_vm4, %v2789_v58, %v1559_v38  ;;  %v1578_v39 = vsel %vm1517_vm4, %v1559_v38, %v2798_v18  ;;  %v1609_v50 = vrot.slane %v1607_v6, 5 }
 0x175   :  { %1454 = vmatmul.mubr.bf16.gmra.mrb[32].mxu1 %v1211_v12  ;;  %1800 = vmatprep.subr.bf16.mxu1 %v2360_v11  ;;  %v1525_v12 = vor.u32 %v1524_v46, %v1521_v45 }
 0x176   :  { %1463 = vmatprep.mubr.bf16.mxu1 %v1219_v42  ;;  %v2384_v42 = vld [vmem:[#allocation6 + $0x2f4] ss:$8 sps:$4 sm:$0xff]   ;;  %v1610_v8 = vsel %vm1517_vm4, %v2800_v52, %v1609_v50 }
 0x177   :  { %v1534_v56 = vsel %vm1517_vm4, %v1525_v12, %v2789_v58  ;;  %v1615_v58 = vsel %vm1517_vm4, %v2794_v49, %v1614_v40 }
 0x178   :  { %1801 = vmatpush1.bf16.msra.mxu1 %v2358_v53  ;;  %1125 = vmatmul.mubr.bf16.gmra.mrb[40].mxu0 %v878_v22  ;;  %v2375_v22 = vld [vmem:[#allocation6 + $0x2c4] ss:$8 sps:$4 sm:$0xff]  }
 0x179   :  { %1802 = vmatprep.subr.bf16.mxu1 %v2363_v16 }
 0x17c   :  { %1803 = vmatpush1.bf16.msra.mxu1 %v2361_v26 }
 0x17d   :  { %1464 = vmatmul.mubr.bf16.gmra.mrb[36].mxu1 %v1210_v55  ;;  %1804 = vmatprep.subr.bf16.mxu1 %v2366_v30  ;;  %v1564_v55 = vrot.slane %v1177_v43, 4 }
 0x17e   :  { %1818 = vmatprep.mubr.bf16.mxu1 %v1551_v4 }
 0x17f   :  { %v1568_v60 = vor.u32 %v1567_v47, %v1564_v55 }
 0x180   :  { %1805 = vmatpush1.bf16.msra.mxu1 %v2364_v31 }
 0x181   :  { %1806 = vmatprep.subr.bf16.mxu1 %v2369_v28  ;;  %v1569_v43 = vsel %vm1517_vm4, %v1550_v27, %v1568_v60  ;;  %v1587_v3 = vsel %vm1517_vm4, %v1568_v60, %v2792_v17 }
 0x184   :  { %1807 = vmatpush1.bf16.msra.mxu1 %v2367_v19 }
 0x185   :  { %1808 = vmatprep.subr.bf16.mxu1 %v2372_v29  ;;  %v51_v29 = vld [vmem:[%s2914_s4] sm:$0x3]  ;;  %s2462_s4 = smov [#allocation8]  }
 0x186   :  { %s1955_s22 = sshll.u32 %s2462_s4, 4  ;;  %s1956_s22 = int_to_ptr.vmem [resolvable:$true] %s1955_s22 }
 0x187   :  { %s2429_s23 = scalar_lea.vmem %s1956_s22, 2560  ;;  %p2434_p3 = scmp.lt.s32.totalorder %s1956_s22, %s1956_s22 }
 0x188   :  { %1809 = vmatpush1.bf16.msra.mxu1 %v2370_v62  ;;  %v2865_v62 = vrot.slane %v51_v29, %v668_v7  ;;  %p2430_p2 = scmp.ne.s32.totalorder %s1956_s22, %s2429_s23  ;;  %p2435_p4 = scmp.lt.s32.totalorder %s2429_s23, %s2429_s23 }
 0x189   :  { %1810 = vmatprep.subr.bf16.mxu1 %v2375_v22 }
 0x18a   :  { %p2436_p5 = por %p2435_p4, %p2434_p3 }
 0x18c   :  { %1811 = vmatpush1.bf16.msra.mxu1 %v2373_v32  ;;  %v2869_v32 = vrot.slane %v51_v29, %v672_v9  ;;  %p2437_p6 = pnand %p2436_p5, %p2430_p2 }
 0x18d   :  { %1812 = vmatprep.subr.bf16.mxu1 %v2378_v33 }
 0x190   :  { %1813 = vmatpush1.bf16.msra.mxu1 %v2376_v35 }
 0x191   :  { %1814 = vmatprep.subr.bf16.mxu1 %v2381_v36 }
 0x194   :  { %1815 = vmatpush1.bf16.msra.mxu1 %v2379_v41 }
 0x195   :  { %1816 = vmatprep.subr.bf16.mxu1 %v2384_v42 }
 0x198   :  { %1817 = vmatpush1.bf16.msra.mxu1 %v2382_v59 }
 0x19b   :  { %1819 = vmatmul.mubr.bf16.vlgmr.msra.gmra.mrb[20].mxu1 %v1534_v56 }
 0x19c   :  { %1828 = vmatprep.mubr.bf16.mxu1 %v1569_v43 }
 0x1a3   :  { %1829 = vmatmul.mubr.bf16.gmra.mrb[24].mxu1 %v1560_v44 }
 0x1a4   :  { %1838 = vmatprep.mubr.bf16.mxu1 %v1587_v3 }
 0x1ab   :  { %1839 = vmatmul.mubr.bf16.gmra.mrb[28].mxu1 %v1578_v39 }
 0x1ac   :  { %1848 = vmatprep.mubr.bf16.mxu1 %v2805_v0 }
 0x1b3   :  { %1849 = vmatmul.mubr.bf16.gmra.mrb[32].mxu1 %v2810_v20 }
 0x1b4   :  { %1858 = vmatprep.mubr.bf16.mxu1 %v1615_v58 }
 0x1bb   :  { %1859 = vmatmul.mubr.bf16.gmra.mrb[40].mxu1 %v1610_v8 }
 0x222   :  { %v1086_v14 = vpop.f32.mrb[24].mxu0 }
 0x223   :  { %v1088_v15 = vpop.f32.mrb[25].mxu0 }
 0x224   :  { %v1090_v23 = vpop.f32.mrb[26].mxu0 }
 0x225   :  { %v1092_v17 = vpop.f32.mrb[27].mxu0 }
 0x233   :  { %v1096_v11 = vpop.f32.mrb[28].mxu0 }
 0x234   :  { %v1098_v13 = vpop.f32.mrb[29].mxu0 }
 0x235   :  { %v1100_v51 = vpop.f32.mrb[30].mxu0 }
 0x236   :  { %v1102_v18 = vpop.f32.mrb[31].mxu0 }
 0x23b   :  { %v1106_v0 = vpop.f32.mrb[32].mxu0 }
 0x23c   :  { %v2842_v53 = vpop.f32.mrb[33].mxu0 }
 0x23d   :  { %v2844_v20 = vpop.f32.mrb[34].mxu0 }
 0x23e   :  { %v2846_v49 = vpop.f32.mrb[35].mxu0 }
 0x243   :  { %v2848_v16 = vpop.f32.mrb[36].mxu0 }
 0x244   :  { %v2850_v21 = vpop.f32.mrb[37].mxu0 }
 0x245   :  { %v2852_v52 = vpop.f32.mrb[38].mxu0 }
 0x246   :  { %v2854_v24 = vpop.f32.mrb[39].mxu0 }
 0x24b   :  { %v1126_v1 = vpop.f32.mrb[40].mxu0 }
 0x24c   :  { %v1128_v25 = vpop.f32.mrb[41].mxu0 }
 0x24d   :  { %v1130_v26 = vpop.f32.mrb[42].mxu0 }
 0x24e   :  { %v1131_v57 = vpop.f32.mrb[43].mxu0 }
 0x250   :  { %v1465_v27 = vpop.f32.mrb[36].mxu1 }
 0x251   :  { %v2856_v30 = vadd.f32 %v1465_v27, %v1126_v1  ;;  %v1467_v31 = vpop.f32.mrb[37].mxu1 }
 0x252   :  { %v2858_v4 = vadd.f32 %v1467_v31, %v1128_v25  ;;  %v1469_v28 = vpop.f32.mrb[38].mxu1 }
 0x253   :  { %v1470_v19 = vpop.f32.mrb[39].mxu1 }
 0x26e   :  { %v1820_v22 = vpop.f32.mrb[20].mxu1 }
 0x26f   :  { %v2134_v33 = vadd.f32 %v1820_v22, %v1086_v14  ;;  %v1822_v34 = vpop.f32.mrb[21].mxu1 }
 0x270   :  { %v2135_v35 = vadd.f32 %v1822_v34, %v1088_v15  ;;  %v1824_v36 = vpop.f32.mrb[22].mxu1 }
 0x271   :  { %v1896_v10 = vadd.f32 %v2134_v33, %v2865_v62  ;;  %v2136_v54 = vadd.f32 %v1824_v36, %v1090_v23  ;;  %v1826_v41 = vpop.f32.mrb[23].mxu1 }
 0x272   :  { %v1897_v42 = vadd.f32 %v2135_v35, %v2869_v32  ;;  %v2137_v45 = vadd.f32 %v1826_v41, %v1092_v17 }
 0x273   :  { %v1914_v46 = vmax.f32 %v1896_v10, 0.0  ;;  %v1898_v7 = vadd.f32 %v2136_v54, %v2865_v62 }
 0x274   :  { %v1915_v55 = vmax.f32 %v1897_v42, 0.0  ;;  %v1899_v47 = vadd.f32 %v2137_v45, %v2869_v32 }
 0x275   :  { %1932 = vst [vmem:[#allocation8] sm:$0xff] %v1914_v46  ;;  %v1916_v61 = vmax.f32 %v1898_v7, 0.0 }
 0x276   :  { %1933 = vst [vmem:[#allocation8 + $0x8] sm:$0xff] %v1915_v55  ;;  %v1917_v9 = vmax.f32 %v1899_v47, 0.0  ;;  %v1830_v59 = vpop.f32.mrb[24].mxu1 }
 0x277   :  { %1934 = vst [vmem:[#allocation8 + $0x10] sm:$0xff] %v1916_v61  ;;  %v2138_v12 = vadd.f32 %v1830_v59, %v1096_v11  ;;  %v1832_v60 = vpop.f32.mrb[25].mxu1 }
 0x278   :  { %1935 = vst [vmem:[#allocation8 + $0x18] sm:$0xff] %v1917_v9  ;;  %v2139_v56 = vadd.f32 %v1832_v60, %v1098_v13  ;;  %v1834_v48 = vpop.f32.mrb[26].mxu1 }
 0x279   :  { %v1900_v63 = vadd.f32 %v2138_v12, %v2865_v62  ;;  %v2140_v43 = vadd.f32 %v1834_v48, %v1100_v51  ;;  %v1836_v38 = vpop.f32.mrb[27].mxu1 }
 0x27a   :  { %v1901_v44 = vadd.f32 %v2139_v56, %v2869_v32  ;;  %v2141_v3 = vadd.f32 %v1836_v38, %v1102_v18 }
 0x27b   :  { %v1918_v2 = vmax.f32 %v1900_v63, 0.0  ;;  %v1902_v39 = vadd.f32 %v2140_v43, %v2865_v62 }
 0x27c   :  { %v1919_v37 = vmax.f32 %v1901_v44, 0.0  ;;  %v1903_v40 = vadd.f32 %v2141_v3, %v2869_v32 }
 0x27d   :  { %1936 = vst [vmem:[#allocation8 + $0x20] sm:$0xff] %v1918_v2  ;;  %v1920_v5 = vmax.f32 %v1902_v39, 0.0 }
 0x27e   :  { %1937 = vst [vmem:[#allocation8 + $0x28] sm:$0xff] %v1919_v37  ;;  %v1921_v6 = vmax.f32 %v1903_v40, 0.0  ;;  %v1840_v58 = vpop.f32.mrb[28].mxu1 }
 0x27f   :  { %1938 = vst [vmem:[#allocation8 + $0x30] sm:$0xff] %v1920_v5  ;;  %v2142_v50 = vadd.f32 %v1840_v58, %v1106_v0  ;;  %v1842_v8 = vpop.f32.mrb[29].mxu1 }
 0x280   :  { %1939 = vst [vmem:[#allocation8 + $0x38] sm:$0xff] %v1921_v6  ;;  %v2143_v14 = vadd.f32 %v1842_v8, %v2842_v53  ;;  %v1844_v15 = vpop.f32.mrb[30].mxu1 }
 0x281   :  { %v1904_v23 = vadd.f32 %v2142_v50, %v2865_v62  ;;  %v2144_v17 = vadd.f32 %v1844_v15, %v2844_v20  ;;  %v1846_v11 = vpop.f32.mrb[31].mxu1 }
 0x282   :  { %v1905_v13 = vadd.f32 %v2143_v14, %v2869_v32  ;;  %v2145_v51 = vadd.f32 %v1846_v11, %v2846_v49 }
 0x283   :  { %v1922_v18 = vmax.f32 %v1904_v23, 0.0  ;;  %v1906_v1 = vadd.f32 %v2144_v17, %v2865_v62 }
 0x284   :  { %v1923_v25 = vmax.f32 %v1905_v13, 0.0  ;;  %v1907_v0 = vadd.f32 %v2145_v51, %v2869_v32 }
 0x285   :  { %1940 = vst [vmem:[#allocation8 + $0x40] sm:$0xff] %v1922_v18  ;;  %v1924_v26 = vmax.f32 %v1906_v1, 0.0 }
 0x286   :  { %1941 = vst [vmem:[#allocation8 + $0x48] sm:$0xff] %v1923_v25  ;;  %v1925_v53 = vmax.f32 %v1907_v0, 0.0  ;;  %v1850_v57 = vpop.f32.mrb[32].mxu1 }
 0x287   :  { %1942 = vst [vmem:[#allocation8 + $0x50] sm:$0xff] %v1924_v26  ;;  %v2146_v27 = vadd.f32 %v1850_v57, %v2848_v16  ;;  %v1852_v20 = vpop.f32.mrb[33].mxu1 }
 0x288   :  { %1943 = vst [vmem:[#allocation8 + $0x58] sm:$0xff] %v1925_v53  ;;  %v2147_v31 = vadd.f32 %v1852_v20, %v2850_v21  ;;  %v1854_v28 = vpop.f32.mrb[34].mxu1 }
 0x289   :  { %v1908_v49 = vadd.f32 %v2146_v27, %v2865_v62  ;;  %v2148_v19 = vadd.f32 %v1854_v28, %v2852_v52  ;;  %v1856_v29 = vpop.f32.mrb[35].mxu1 }
 0x28a   :  { %v1909_v22 = vadd.f32 %v2147_v31, %v2869_v32  ;;  %v2149_v33 = vadd.f32 %v1856_v29, %v2854_v24 }
 0x28b   :  { %v1926_v34 = vmax.f32 %v1908_v49, 0.0  ;;  %v1910_v35 = vadd.f32 %v2148_v19, %v2865_v62 }
 0x28c   :  { %v1927_v36 = vmax.f32 %v1909_v22, 0.0  ;;  %v1911_v16 = vadd.f32 %v2149_v33, %v2869_v32 }
 0x28d   :  { %1944 = vst [vmem:[#allocation8 + $0x60] sm:$0xff] %v1926_v34  ;;  %v1928_v10 = vmax.f32 %v1910_v35, 0.0 }
 0x28e   :  { %1945 = vst [vmem:[#allocation8 + $0x68] sm:$0xff] %v1927_v36  ;;  %v1929_v21 = vmax.f32 %v1911_v16, 0.0  ;;  %v1860_v54 = vpop.f32.mrb[40].mxu1 }
 0x28f   :  { %1946 = vst [vmem:[#allocation8 + $0x70] sm:$0xff] %v1928_v10  ;;  %v1883_v41 = vadd.f32 %v1860_v54, %v2856_v30  ;;  %v1862_v52 = vpop.f32.mrb[41].mxu1 }
 0x290   :  { %1947 = vst [vmem:[#allocation8 + $0x78] sm:$0xff] %v1929_v21  ;;  %v1884_v42 = vadd.f32 %v1862_v52, %v2858_v4  ;;  %v1864_v45 = vpop.f32.mrb[42].mxu1 }
 0x291   :  { %v1912_v24 = vadd.f32 %v2865_v62, %v1883_v41  ;;  %v1865_v46 = vpop.f32.mrb[43].mxu1 }
 0x292   :  { %v1913_v7 = vadd.f32 %v2869_v32, %v1884_v42 }
 0x293   :  { %v1930_v55 = vmax.f32 %v1912_v24, 0.0 }
 0x294   :  { %v1931_v47 = vmax.f32 %v1913_v7, 0.0 }
 0x295   :  { %1948 = vst [vmem:[#allocation8 + $0x80] sm:$0xff] %v1930_v55 }
 0x296   :  { %1949 = vst [vmem:[#allocation8 + $0x88] sm:$0xff] %v1931_v47 }
 0x297   :  { %2440 = shalt.err (!%p2437_p6)
}
 0x298   :  { %s2441_s26 = scalar_lea.hbm %s2915_s5, 2560 }
 0x299   :  { %p2442_p7 = scmp.ne.s32.totalorder %s2915_s5, %s2441_s26  ;;  %p2445_p8 = scmp.lt.u32.totalorder %s2441_s26, %s2915_s5 }
 0x29b   :  { %p2447_p9 = pnand %p2445_p8, %p2442_p7 }
 0x29d   :  { %2450 = shalt.err (!%p2447_p9)
}
 0x29e   :  { %s2463_s6 = smov 256   ;;  %s2464_s7 = smov 16  }
 0x29f   :  { %1961 = dma.vmem_to_hbm [thread:$0]  %s1956_s22, 2560, %s2915_s5, [#allocation5], %s2463_s6, %s2463_s6, %s2464_s7  }
 0x2a0   :  { %2455 = dma.done.wait [#allocation5], 2560  }
 0x2a1   :  { %2456 = vsyncadd [#allocation5], 4294964736 }
 0x2a2   :  { %1965 = vsyncpa [#allocation4], 1 }
 0x2a3   :  { %1966 = vsyncpa [#allocation7], 1 }
 0x2a4   :  { %1967 = vsyncpa [#allocation5], 1 }

// kernel: tpu_custom_call.1
= control target key start
LH: loop header
LB: loop body
LE: loop exit
PB: predicated region body
PF: predicated region fallthrough
CT: control target
= control target key end

     0   :  { %10 = vsyncpa [#allocation4], 0  ;;  %s2910_s0 = inlined_call_operand.vmem [shape: bf16[1,96,64], index: 0, kind: input, shape index: {}]   ;;  %s2911_s1 = inlined_call_operand.hbm [shape: bf16[3,64,256], index: 1, kind: input, shape index: {}]   ;;  %s2912_s2 = inlined_call_operand.vmem [shape: f32[1,256], index: 2, kind: input, shape index: {}]   ;;  %s2913_s3 = inlined_call_operand.hbm [shape: bf16[3,256,256], index: 3, kind: input, shape index: {}]   ;;  %s2914_s4 = inlined_call_operand.vmem [shape: f32[1,256], index: 4, kind: input, shape index: {}]   ;;  %s2915_s5 = inlined_call_operand.hbm [shape: f32[1,80,256], index: 5, kind: output, shape index: {}]  }
   0x1   :  { %11 = vsyncpa [#allocation7], 0 }
   0x2   :  { %12 = vsyncpa [#allocation5], 0  ;;  %s2457_s18 = smov [#allocation3]   ;;  %s2385_s22 = scalar_lea.hbm %s2911_s1, 3072 }
   0x3   :  { %s20_s19 = sshll.u32 %s2457_s18, 4  ;;  %p2386_p0 = scmp.ne.s32.totalorder %s2911_s1, %s2385_s22  ;;  %s21_s19 = int_to_ptr.vmem [resolvable:$true] %s20_s19 }
   0x4   :  { %p2389_p1 = scmp.lt.u32.totalorder %s2385_s22, %s2911_s1 }
   0x6   :  { %p2391_p2 = pnand %p2389_p1, %p2386_p0 }
   0x8   :  { %2394 = shalt.err (!%p2391_p2)
}
   0x9   :  { %s2395_s27 = scalar_lea.vmem %s21_s19, 3072  ;;  %p2400_p4 = scmp.lt.s32.totalorder %s21_s19, %s21_s19 }
   0xa   :  { %p2396_p3 = scmp.ne.s32.totalorder %s21_s19, %s2395_s27  ;;  %p2401_p5 = scmp.lt.s32.totalorder %s2395_s27, %s2395_s27 }
   0xc   :  { %p2402_p6 = por %p2401_p5, %p2400_p4 }
   0xe   :  { %p2403_p7 = pnand %p2402_p6, %p2396_p3 }
  0x10   :  { %2406 = shalt.err (!%p2403_p7)
}
  0x11   :  { %s2458_s28 = smov 128   ;;  %s2459_s29 = smov 8  }
  0x12   :  { %26 = dma.hbm_to_vmem [thread:$0]  %s2911_s1, 3072, %s21_s19, [#allocation4], %s2458_s28, %s2458_s28, %s2459_s29  }
  0x13   :  { %s2460_s7 = smov [#allocation6]   ;;  %s2407_s11 = scalar_lea.hbm %s2913_s3, 12288 }
  0x14   :  { %s34_s8 = sshll.u32 %s2460_s7, 4  ;;  %p2408_p8 = scmp.ne.s32.totalorder %s2913_s3, %s2407_s11  ;;  %s35_s8 = int_to_ptr.vmem [resolvable:$true] %s34_s8 }
  0x15   :  { %p2411_p9 = scmp.lt.u32.totalorder %s2407_s11, %s2913_s3 }
  0x17   :  { %p2413_p10 = pnand %p2411_p9, %p2408_p8 }
  0x19   :  { %2416 = shalt.err (!%p2413_p10)
}
  0x1a   :  { %s2417_s16 = scalar_lea.vmem %s35_s8, 12288  ;;  %p2422_p12 = scmp.lt.s32.totalorder %s35_s8, %s35_s8 }
  0x1b   :  { %p2418_p11 = scmp.ne.s32.totalorder %s35_s8, %s2417_s16  ;;  %p2423_p13 = scmp.lt.s32.totalorder %s2417_s16, %s2417_s16 }
  0x1d   :  { %p2424_p0 = por %p2423_p13, %p2422_p12 }
  0x1f   :  { %p2425_p1 = pnand %p2424_p0, %p2418_p11 }
  0x21   :  { %2428 = shalt.err (!%p2425_p1)
}
  0x22   :  { %40 = dma.hbm_to_vmem [thread:$0]  %s2913_s3, 12288, %s35_s8, [#allocation7], %s2458_s28, %s2458_s28, %s2459_s29  }
  0x23   :  { %2451 = dma.done.wait [#allocation4], 3072  }
  0x24   :  { %2452 = vsyncadd [#allocation4], 4294964224 }
  0x25   :  { %2453 = dma.done.wait [#allocation7], 12288  }
  0x26   :  { %2454 = vsyncadd [#allocation7], 4294955008  ;;  %v2461_v0 = vmov 0   ;;  %v2190_v1 = vld [vmem:[#allocation3 + $0x44] ss:$8 sps:$4 sm:$0xff]   ;;  %vm142_vm0 = vcmask 523264  }
  0x27   :  { %190 = vmatprep.mubr.bf16.mxu1 %v2461_v0  ;;  %771 = vst [vmem:[#allocation2] sm:$0xf] %v2461_v0  ;;  %772 = vst [vmem:[#allocation2 + $0x8] sm:$0xf] %v2461_v0  ;;  %378 = vmatprep.mubr.bf16.mxu0 %v2461_v0  ;;  %v2192_v2 = vld [vmem:[#allocation3 + $0x4] ss:$8 sps:$4 sm:$0xff]  }
  0x28   :  { %775 = vst [vmem:[#allocation2 + $0x50] sm:$0xf] %v2461_v0  ;;  %776 = vst [vmem:[#allocation2 + $0x58] sm:$0xf] %v2461_v0  ;;  %158 = vmatprep.subr.bf16.mxu1 %v2190_v1  ;;  %v2194_v3 = vld [vmem:[#allocation3 + $0x40] ss:$8 sps:$4 sm:$0xff]   ;;  %346 = vmatprep.subr.bf16.mxu0 %v2192_v2 }
  0x29   :  { %v2195_v4 = vld [vmem:[#allocation3] ss:$8 sps:$4 sm:$0xff]   ;;  %v2196_v5 = vld [vmem:[#allocation3 + $0x54] ss:$8 sps:$4 sm:$0xff]   ;;  %159 = vmatpush1.bf16.msra.mxu1 %v2194_v3  ;;  %v2200_v7 = vld [vmem:[#allocation3 + $0x50] ss:$8 sps:$4 sm:$0xff]  }
  0x2a   :  { %347 = vmatpush1.bf16.msra.mxu0 %v2195_v4  ;;  %v2198_v6 = vld [vmem:[#allocation3 + $0x14] ss:$8 sps:$4 sm:$0xff]   ;;  %160 = vmatprep.subr.bf16.mxu1 %v2196_v5  ;;  %v2201_v8 = vld [vmem:[#allocation3 + $0x10] ss:$8 sps:$4 sm:$0xff]   ;;  %v2202_v9 = vld [vmem:[#allocation3 + $0x64] ss:$8 sps:$4 sm:$0xff]  }
  0x2b   :  { %348 = vmatprep.subr.bf16.mxu0 %v2198_v6  ;;  %v2204_v10 = vld [vmem:[#allocation3 + $0x24] ss:$8 sps:$4 sm:$0xff]   ;;  %v2206_v11 = vld [vmem:[#allocation3 + $0x60] ss:$8 sps:$4 sm:$0xff]   ;;  %v2208_v13 = vld [vmem:[#allocation3 + $0x74] ss:$8 sps:$4 sm:$0xff]  }
  0x2c   :  { %v2207_v12 = vld [vmem:[#allocation3 + $0x20] ss:$8 sps:$4 sm:$0xff]   ;;  %v2210_v14 = vld [vmem:[#allocation3 + $0x34] ss:$8 sps:$4 sm:$0xff]   ;;  %v2212_v15 = vld [vmem:[#allocation3 + $0x70] ss:$8 sps:$4 sm:$0xff]  }
  0x2d   :  { %161 = vmatpush1.bf16.msra.mxu1 %v2200_v7  ;;  %v52_v16 = vld [vmem:[%s2910_s0] sm:$0x8]  ;;  %v53_v17 = vld [vmem:[%s2910_s0 + $0x4] sm:$0xf]  ;;  %v54_v18 = vld [vmem:[%s2910_s0 + $0x8] sm:$0xf] }
  0x2e   :  { %349 = vmatpush1.bf16.msra.mxu0 %v2201_v8  ;;  %162 = vmatprep.subr.bf16.mxu1 %v2202_v9  ;;  %v55_v19 = vld [vmem:[%s2910_s0 + $0xc] sm:$0xf]  ;;  %v2213_v20 = vld [vmem:[#allocation3 + $0x30] ss:$8 sps:$4 sm:$0xff]   ;;  %v1986_v21 = vcombine.low %v52_v16, %v53_v17  ;;  %v2543_v25 = vld [vmem:[%s2910_s0 + $0x14] sm:$0xf]  ;;  %v1968_v30 = vcombine.low %v53_v17, %v54_v18 }
  0x2f   :  { %350 = vmatprep.subr.bf16.mxu0 %v2204_v10  ;;  %v1987_v22 = vcombine.low %v54_v18, %v55_v19  ;;  %v2219_v23 = vld [vmem:[#allocation3 + $0x84] ss:$8 sps:$4 sm:$0xff]   ;;  %v56_v24 = vld [vmem:[%s2910_s0 + $0x10] sm:$0xf]  ;;  %v2549_v32 = vld [vmem:[%s2910_s0 + $0x18] sm:$0xf] }
  0x30   :  { %v248_v26 = vshrl.u32 %v1986_v21, 16  ;;  %v251_v27 = vshll.u32 %v1986_v21, 16  ;;  %v1988_v31 = vcombine.low %v56_v24, %v2543_v25  ;;  %v2554_v37 = vld [vmem:[%s2910_s0 + $0x1c] sm:$0xf]  ;;  %vm246_vm1 = vsmask.f32 4352 }
  0x31   :  { %163 = vmatpush1.bf16.msra.mxu1 %v2206_v11  ;;  %v256_v28 = vshrl.u32 %v1987_v22, 16  ;;  %v259_v29 = vshll.u32 %v1987_v22, 16  ;;  %v2217_v42 = vld [vmem:[#allocation3 + $0x80] ss:$8 sps:$4 sm:$0xff]   ;;  %v1989_v43 = vcombine.low %v2549_v32, %v2554_v37  ;;  %v2224_v46 = vld [vmem:[#allocation3 + $0x94] ss:$8 sps:$4 sm:$0xff]   ;;  %v1969_v54 = vcombine.low %v55_v19, %v56_v24 }
  0x32   :  { %351 = vmatpush1.bf16.msra.mxu0 %v2207_v12  ;;  %164 = vmatprep.subr.bf16.mxu1 %v2208_v13  ;;  %v250_v33 = vrot.slane %v248_v26, 3  ;;  %v253_v34 = vrot.slane %v251_v27, 4  ;;  %v265_v38 = vshrl.u32 %v1988_v31, 16  ;;  %v268_v39 = vshll.u32 %v1988_v31, 16  ;;  %v2222_v48 = vld [vmem:[#allocation3 + $0x90] ss:$8 sps:$4 sm:$0xff]  }
  0x33   :  { %352 = vmatprep.subr.bf16.mxu0 %v2210_v14  ;;  %v258_v35 = vrot.slane %v256_v28, 3  ;;  %v261_v36 = vrot.slane %v259_v29, 4  ;;  %v60_v49 = vld [vmem:[%s2910_s0 + $0x20] sm:$0xf]  ;;  %v274_v51 = vshrl.u32 %v1989_v43, 16  ;;  %v277_v52 = vshll.u32 %v1989_v43, 16 }
  0x34   :  { %v254_v40 = vor.u32 %v253_v34, %v250_v33  ;;  %v267_v44 = vrot.slane %v265_v38, 3  ;;  %v270_v45 = vrot.slane %v268_v39, 4  ;;  %v61_v53 = vld [vmem:[%s2910_s0 + $0x24] sm:$0xf]  ;;  %v2227_v56 = vld [vmem:[#allocation3 + $0xa0] ss:$8 sps:$4 sm:$0xff]   ;;  %v1970_v5 = vcombine.low %v2543_v25, %v2549_v32 }
  0x35   :  { %165 = vmatpush1.bf16.msra.mxu1 %v2212_v15  ;;  %v262_v41 = vor.u32 %v261_v36, %v258_v35  ;;  %v2229_v55 = vld [vmem:[#allocation3 + $0xa4] ss:$8 sps:$4 sm:$0xff]   ;;  %v1990_v57 = vcombine.low %v60_v49, %v61_v53  ;;  %v276_v59 = vrot.slane %v274_v51, 3  ;;  %v279_v60 = vrot.slane %v277_v52, 4  ;;  %v2234_v61 = vld [vmem:[#allocation3 + $0xb4] ss:$8 sps:$4 sm:$0xff]  }
  0x36   :  { %353 = vmatpush1.bf16.msra.mxu0 %v2213_v20  ;;  %v271_v50 = vor.u32 %v270_v45, %v267_v44  ;;  %v2232_v63 = vld [vmem:[#allocation3 + $0xb0] ss:$8 sps:$4 sm:$0xff]   ;;  %v2244_v3 = vld [vmem:[#allocation6] ss:$8 sps:$4 sm:$0xff]   ;;  %v2246_v4 = vld [vmem:[#allocation6 + $0x4] ss:$8 sps:$4 sm:$0xff]   ;;  %v1971_v11 = vcombine.low %v2554_v37, %v60_v49  ;;  %v1972_v16 = vcombine.low %v61_v53, %v61_v53 }
  0x37   :  { %566 = vmatprep.subr.bf16.mxu0 %v2219_v23  ;;  %v263_v47 = vsel %vm246_vm1, %v254_v40, %v262_v41  ;;  %v283_v62 = vshrl.u32 %v1990_v57, 16  ;;  %v280_v1 = vor.u32 %v279_v60, %v276_v59  ;;  %v286_v2 = vshll.u32 %v1990_v57, 16  ;;  %v2243_v6 = vld [vmem:[#allocation6 + $0x104] ss:$8 sps:$4 sm:$0xff]   ;;  %1391 = vmatprep.subr.bf16.mxu1 %v2246_v4  ;;  %v2238_v20 = vld [vmem:[%s2910_s0 + $0x14] sm:$0xff]  }
  0x38   :  { %1981 = vmatmul.mubr.msk.bf16.vlgmr.msra.gmra.mrb[0].mxu1 %vm142_vm0, %v1968_v30  ;;  %v272_v58 = vsel %vm246_vm1, %v262_v41, %v271_v50  ;;  %v2236_v12 = vld [vmem:[%s2910_s0 + $0x4] sm:$0xff]   ;;  %v2237_v14 = vld [vmem:[%s2910_s0 + $0xc] sm:$0xff]   ;;  %vm471_vm2 = vsmask.f32 7424  ;;  %v2249_v24 = vld [vmem:[#allocation6 + $0x114] ss:$8 sps:$4 sm:$0xff]  }
  0x39   :  { %200 = vmatprep.mubr.bf16.mxu1 %v2461_v0  ;;  %1999 = vmatmul.mubr.msk.bf16.vlgmr.msra.gmra.mrb[0].mxu0 %vm142_vm0, %v263_v47  ;;  %v281_v7 = vsel %vm246_vm1, %v271_v50, %v280_v1  ;;  %v285_v8 = vrot.slane %v283_v62, 3  ;;  %v288_v9 = vrot.slane %v286_v2, 4  ;;  %v475_v15 = vshll.u32 %v2236_v12, 16  ;;  %v2241_v23 = vld [vmem:[#allocation6 + $0x100] ss:$8 sps:$4 sm:$0xff]  }
  0x3a   :  { %567 = vmatpush1.bf16.msra.mxu0 %v2217_v42  ;;  %388 = vmatprep.mubr.bf16.mxu0 %v2461_v0  ;;  %v473_v17 = vshrl.u32 %v2236_v12, 16  ;;  %v480_v19 = vshll.u32 %v2237_v14, 16  ;;  %v484_v26 = vshrl.u32 %v2237_v14, 16  ;;  %v488_v27 = vshll.u32 %v2238_v20, 16  ;;  %v2239_v30 = vld [vmem:[%s2910_s0 + $0x1c] sm:$0xff]  }
  0x3b   :  { %568 = vmatprep.subr.bf16.mxu0 %v2224_v46  ;;  %1392 = vmatpush1.bf16.msra.mxu1 %v2244_v3  ;;  %v289_v10 = vor.u32 %v288_v9, %v285_v8  ;;  %v477_v18 = vrot.slane %v475_v15, 1  ;;  %v2247_v31 = vld [vmem:[#allocation6 + $0x110] ss:$8 sps:$4 sm:$0xff]   ;;  %v492_v33 = vshrl.u32 %v2238_v20, 16  ;;  %v496_v34 = vshll.u32 %v2239_v30, 16 }
  0x3c   :  { %v482_v22 = vrot.slane %v480_v19, 1  ;;  %v490_v29 = vrot.slane %v488_v27, 1  ;;  %v2240_v37 = vld [vmem:[%s2910_s0 + $0x24] sm:$0x1f]   ;;  %v500_v39 = vshrl.u32 %v2239_v30, 16  ;;  %vm732_vm3 = vcmask 1043456  }
  0x3d   :  { %v290_v13 = vsel %vm246_vm1, %v280_v1, %v289_v10  ;;  %v478_v21 = vor.u32 %v477_v18, %v473_v17  ;;  %v498_v36 = vrot.slane %v496_v34, 1  ;;  %v504_v40 = vshll.u32 %v2240_v37, 16  ;;  %v2250_v46 = vld [vmem:[#allocation6 + $0x10] ss:$8 sps:$4 sm:$0xff]   ;;  %v2252_v47 = vld [vmem:[#allocation6 + $0x14] ss:$8 sps:$4 sm:$0xff]  }
  0x3e   :  { %569 = vmatpush1.bf16.msra.mxu0 %v2222_v48  ;;  %v486_v28 = vor.u32 %v484_v26, %v482_v22  ;;  %v494_v35 = vor.u32 %v492_v33, %v490_v29  ;;  %v508_v44 = vshrl.u32 %v2240_v37, 16  ;;  %v2253_v48 = vld [vmem:[#allocation6 + $0x120] ss:$8 sps:$4 sm:$0xff]   ;;  %v2255_v49 = vld [vmem:[#allocation6 + $0x124] ss:$8 sps:$4 sm:$0xff]   ;;  %1393 = vmatprep.subr.bf16.mxu1 %v2252_v47 }
  0x3f   :  { %570 = vmatprep.subr.bf16.mxu0 %v2229_v55  ;;  %v483_v25 = vsel %vm471_vm2, %v478_v21, %v482_v22  ;;  %v502_v41 = vor.u32 %v500_v39, %v498_v36  ;;  %v506_v42 = vrot.slane %v504_v40, 1  ;;  %1394 = vmatpush1.bf16.msra.mxu1 %v2250_v46  ;;  %v2256_v50 = vld [vmem:[#allocation6 + $0x20] ss:$8 sps:$4 sm:$0xff]   ;;  %v2258_v51 = vld [vmem:[#allocation6 + $0x24] ss:$8 sps:$4 sm:$0xff]  }
  0x40   :  { %1982 = vmatmul.mubr.msk.bf16.gmra.mrb[4].mxu1 %vm142_vm0, %v1969_v54  ;;  %v491_v32 = vsel %vm471_vm2, %v486_v28, %v490_v29  ;;  %v499_v38 = vsel %vm471_vm2, %v494_v35, %v498_v36  ;;  %v2259_v52 = vld [vmem:[#allocation6 + $0x130] ss:$8 sps:$4 sm:$0xff]   ;;  %v2261_v53 = vld [vmem:[#allocation6 + $0x134] ss:$8 sps:$4 sm:$0xff]   ;;  %1395 = vmatprep.subr.bf16.mxu1 %v2258_v51  ;;  %v2267_v57 = vld [vmem:[#allocation6 + $0x144] ss:$8 sps:$4 sm:$0xff]  }
  0x41   :  { %210 = vmatprep.mubr.bf16.mxu1 %v2461_v0  ;;  %2000 = vmatmul.mubr.msk.bf16.gmra.mrb[4].mxu0 %vm142_vm0, %v272_v58  ;;  %v507_v43 = vsel %vm471_vm2, %v502_v41, %v506_v42  ;;  %v510_v45 = vor.u32 %v508_v44, %v506_v42  ;;  %v2262_v54 = vld [vmem:[#allocation6 + $0x30] ss:$8 sps:$4 sm:$0xff]   ;;  %v2264_v55 = vld [vmem:[#allocation6 + $0x34] ss:$8 sps:$4 sm:$0xff]   ;;  %v2270_v58 = vld [vmem:[#allocation6 + $0x44] ss:$8 sps:$4 sm:$0xff]  }
  0x42   :  { %398 = vmatprep.mubr.bf16.mxu0 %v2461_v0  ;;  %571 = vmatpush1.bf16.msra.mxu0 %v2227_v56  ;;  %v2265_v56 = vld [vmem:[#allocation6 + $0x140] ss:$8 sps:$4 sm:$0xff]   ;;  %v2273_v60 = vld [vmem:[#allocation6 + $0x154] ss:$8 sps:$4 sm:$0xff]   ;;  %v2279_v1 = vld [vmem:[#allocation6 + $0x164] ss:$8 sps:$4 sm:$0xff]  }
  0x43   :  { %572 = vmatprep.subr.bf16.mxu0 %v2234_v61  ;;  %1396 = vmatpush1.bf16.msra.mxu1 %v2256_v50  ;;  %v2268_v59 = vld [vmem:[#allocation6 + $0x40] ss:$8 sps:$4 sm:$0xff]   ;;  %v2271_v61 = vld [vmem:[#allocation6 + $0x150] ss:$8 sps:$4 sm:$0xff]   ;;  %v2276_v62 = vld [vmem:[#allocation6 + $0x54] ss:$8 sps:$4 sm:$0xff]  }
  0x44   :  { %1397 = vmatprep.subr.bf16.mxu1 %v2264_v55  ;;  %v2277_v2 = vld [vmem:[#allocation6 + $0x160] ss:$8 sps:$4 sm:$0xff]   ;;  %v2282_v3 = vld [vmem:[#allocation6 + $0x64] ss:$8 sps:$4 sm:$0xff]   ;;  %v2286_v8 = vld [vmem:[#allocation6 + $0x70] ss:$8 sps:$4 sm:$0xff]  }
  0x45   :  { %v2280_v4 = vld [vmem:[#allocation6 + $0x60] ss:$8 sps:$4 sm:$0xff]   ;;  %v2291_v9 = vld [vmem:[#allocation6 + $0x184] ss:$8 sps:$4 sm:$0xff]   ;;  %v2295_v14 = vld [vmem:[#allocation6 + $0x190] ss:$8 sps:$4 sm:$0xff]  }
  0x46   :  { %573 = vmatpush1.bf16.msra.mxu0 %v2232_v63  ;;  %v2274_v63 = vld [vmem:[#allocation6 + $0x50] ss:$8 sps:$4 sm:$0xff]   ;;  %v2292_v12 = vld [vmem:[#allocation6 + $0x80] ss:$8 sps:$4 sm:$0xff]   ;;  %v2300_v15 = vld [vmem:[#allocation6 + $0x94] ss:$8 sps:$4 sm:$0xff]  }
  0x47   :  { %1052 = vmatprep.subr.bf16.mxu0 %v2243_v6  ;;  %1398 = vmatpush1.bf16.msra.mxu1 %v2262_v54  ;;  %v2283_v6 = vld [vmem:[#allocation6 + $0x170] ss:$8 sps:$4 sm:$0xff]   ;;  %v2303_v17 = vld [vmem:[#allocation6 + $0x1a4] ss:$8 sps:$4 sm:$0xff]   ;;  %v2301_v18 = vld [vmem:[#allocation6 + $0x1a0] ss:$8 sps:$4 sm:$0xff]  }
  0x48   :  { %1983 = vmatmul.mubr.msk.bf16.gmra.mrb[8].mxu1 %vm142_vm0, %v1970_v5  ;;  %1399 = vmatprep.subr.bf16.mxu1 %v2270_v58  ;;  %v2285_v5 = vld [vmem:[#allocation6 + $0x174] ss:$8 sps:$4 sm:$0xff]   ;;  %v2306_v19 = vld [vmem:[#allocation6 + $0xa4] ss:$8 sps:$4 sm:$0xff]   ;;  %v2304_v20 = vld [vmem:[#allocation6 + $0xa0] ss:$8 sps:$4 sm:$0xff]   ;;  %v666_v58 = vlaneseq }
  0x49   :  { %220 = vmatprep.mubr.bf16.mxu1 %v2461_v0  ;;  %2001 = vmatmul.mubr.msk.bf16.gmra.mrb[8].mxu0 %vm142_vm0, %v281_v7  ;;  %v2288_v7 = vld [vmem:[#allocation6 + $0x74] ss:$8 sps:$4 sm:$0xff]   ;;  %v2307_v22 = vld [vmem:[#allocation6 + $0x1b0] ss:$8 sps:$4 sm:$0xff]   ;;  %v2313_v26 = vld [vmem:[#allocation6 + $0x1c0] ss:$8 sps:$4 sm:$0xff]  }
  0x4a   :  { %408 = vmatprep.mubr.bf16.mxu0 %v2461_v0  ;;  %v2309_v21 = vld [vmem:[#allocation6 + $0x1b4] ss:$8 sps:$4 sm:$0xff]   ;;  %v2318_v27 = vld [vmem:[#allocation6 + $0xc4] ss:$8 sps:$4 sm:$0xff]   ;;  %v2316_v28 = vld [vmem:[#allocation6 + $0xc0] ss:$8 sps:$4 sm:$0xff]  }
  0x4b   :  { %1400 = vmatpush1.bf16.msra.mxu1 %v2268_v59  ;;  %v2321_v29 = vld [vmem:[#allocation6 + $0x1d4] ss:$8 sps:$4 sm:$0xff]   ;;  %v2319_v30 = vld [vmem:[#allocation6 + $0x1d0] ss:$8 sps:$4 sm:$0xff]   ;;  %v2327_v33 = vld [vmem:[#allocation6 + $0x1e4] ss:$8 sps:$4 sm:$0xff]  }
  0x4c   :  { %1401 = vmatprep.subr.bf16.mxu1 %v2276_v62  ;;  %v2325_v34 = vld [vmem:[#allocation6 + $0x1e0] ss:$8 sps:$4 sm:$0xff]   ;;  %v2330_v35 = vld [vmem:[#allocation6 + $0xe4] ss:$8 sps:$4 sm:$0xff]   ;;  %v2333_v37 = vld [vmem:[#allocation6 + $0x1f4] ss:$8 sps:$4 sm:$0xff]  }
  0x4d   :  { %v2328_v36 = vld [vmem:[#allocation6 + $0xe0] ss:$8 sps:$4 sm:$0xff]   ;;  %v2336_v39 = vld [vmem:[#allocation6 + $0xf4] ss:$8 sps:$4 sm:$0xff]   ;;  %v2334_v40 = vld [vmem:[#allocation6 + $0xf0] ss:$8 sps:$4 sm:$0xff]  }
  0x4e   :  { %v2339_v41 = vld [vmem:[#allocation6 + $0x204] ss:$8 sps:$4 sm:$0xff]   ;;  %vm1517_vm4 = vsmask.f32 3328 }
  0x4f   :  { %1402 = vmatpush1.bf16.msra.mxu1 %v2274_v63 }
  0x50   :  { %1984 = vmatmul.mubr.msk.bf16.gmra.mrb[12].mxu1 %vm142_vm0, %v1971_v11  ;;  %1403 = vmatprep.subr.bf16.mxu1 %v2282_v3  ;;  %v2294_v11 = vld [vmem:[#allocation6 + $0x84] ss:$8 sps:$4 sm:$0xff]  }
  0x51   :  { %230 = vmatprep.mubr.bf16.mxu1 %v2461_v0  ;;  %2002 = vmatmul.mubr.msk.bf16.gmra.mrb[12].mxu0 %vm142_vm0, %v290_v13  ;;  %v2297_v13 = vld [vmem:[#allocation6 + $0x194] ss:$8 sps:$4 sm:$0xff]  }
  0x52   :  { %418 = vmatprep.mubr.bf16.mxu0 %v2461_v0 }
  0x53   :  { %1404 = vmatpush1.bf16.msra.mxu1 %v2280_v4 }
  0x54   :  { %1405 = vmatprep.subr.bf16.mxu1 %v2288_v7 }
  0x57   :  { %1406 = vmatpush1.bf16.msra.mxu1 %v2286_v8  ;;  %v50_v8 = vld [vmem:[%s2912_s2] sm:$0x3] }
  0x58   :  { %1985 = vmatmul.mubr.msk.bf16.gmra.mrb[16].mxu1 %vm142_vm0, %v1972_v16  ;;  %1407 = vmatprep.subr.bf16.mxu1 %v2294_v11  ;;  %v2298_v16 = vld [vmem:[#allocation6 + $0x90] ss:$8 sps:$4 sm:$0xff]  }
  0x59   :  { %2003 = vmatmul.mubr.msk.bf16.gmra.mrb[16].mxu0 %vm142_vm0, %v289_v10  ;;  %v2289_v10 = vld [vmem:[#allocation6 + $0x180] ss:$8 sps:$4 sm:$0xff]  }
  0x5a   :  { %598 = vmatprep.mubr.bf16.mxu0 %v2461_v0 }
  0x5b   :  { %1408 = vmatpush1.bf16.msra.mxu1 %v2292_v12 }
  0x5c   :  { %1409 = vmatprep.subr.bf16.mxu1 %v2300_v15 }
  0x5f   :  { %1410 = vmatpush1.bf16.msra.mxu1 %v2298_v16 }
  0x60   :  { %1411 = vmatprep.subr.bf16.mxu1 %v2306_v19 }
  0x61   :  { %2017 = vmatmul.mubr.msk.bf16.vlgmr.msra.gmra.mrb[0].mxu0 %vm142_vm0, %v483_v25  ;;  %v2315_v25 = vld [vmem:[#allocation6 + $0x1c4] ss:$8 sps:$4 sm:$0xff]  }
  0x62   :  { %608 = vmatprep.mubr.bf16.mxu0 %v2461_v0  ;;  %1053 = vmatpush1.bf16.msra.mxu0 %v2241_v23  ;;  %v2312_v23 = vld [vmem:[#allocation6 + $0xb4] ss:$8 sps:$4 sm:$0xff]  }
  0x63   :  { %1054 = vmatprep.subr.bf16.mxu0 %v2249_v24  ;;  %1412 = vmatpush1.bf16.msra.mxu1 %v2304_v20  ;;  %v2310_v24 = vld [vmem:[#allocation6 + $0xb0] ss:$8 sps:$4 sm:$0xff]  }
  0x64   :  { %1413 = vmatprep.subr.bf16.mxu1 %v2312_v23 }
  0x66   :  { %1055 = vmatpush1.bf16.msra.mxu0 %v2247_v31  ;;  %v2324_v31 = vld [vmem:[#allocation6 + $0xd4] ss:$8 sps:$4 sm:$0xff]  }
  0x67   :  { %1056 = vmatprep.subr.bf16.mxu0 %v2255_v49  ;;  %1414 = vmatpush1.bf16.msra.mxu1 %v2310_v24 }
  0x68   :  { %1415 = vmatprep.subr.bf16.mxu1 %v2318_v27 }
  0x69   :  { %2018 = vmatmul.mubr.msk.bf16.gmra.mrb[4].mxu0 %vm142_vm0, %v491_v32  ;;  %v2322_v32 = vld [vmem:[#allocation6 + $0xd0] ss:$8 sps:$4 sm:$0xff]  }
  0x6a   :  { %618 = vmatprep.mubr.bf16.mxu0 %v2461_v0  ;;  %1057 = vmatpush1.bf16.msra.mxu0 %v2253_v48 }
  0x6b   :  { %1058 = vmatprep.subr.bf16.mxu0 %v2261_v53  ;;  %1416 = vmatpush1.bf16.msra.mxu1 %v2316_v28 }
  0x6c   :  { %1417 = vmatprep.subr.bf16.mxu1 %v2324_v31 }
  0x6e   :  { %1059 = vmatpush1.bf16.msra.mxu0 %v2259_v52 }
  0x6f   :  { %1060 = vmatprep.subr.bf16.mxu0 %v2267_v57  ;;  %1418 = vmatpush1.bf16.msra.mxu1 %v2322_v32 }
  0x70   :  { %1419 = vmatprep.subr.bf16.mxu1 %v2330_v35 }
  0x71   :  { %2019 = vmatmul.mubr.msk.bf16.gmra.mrb[8].mxu0 %vm142_vm0, %v499_v38  ;;  %v2331_v38 = vld [vmem:[#allocation6 + $0x1f0] ss:$8 sps:$4 sm:$0xff]  }
  0x72   :  { %628 = vmatprep.mubr.bf16.mxu0 %v2461_v0  ;;  %1061 = vmatpush1.bf16.msra.mxu0 %v2265_v56 }
  0x73   :  { %1062 = vmatprep.subr.bf16.mxu0 %v2273_v60  ;;  %1420 = vmatpush1.bf16.msra.mxu1 %v2328_v36 }
  0x74   :  { %1421 = vmatprep.subr.bf16.mxu1 %v2336_v39 }
  0x76   :  { %1063 = vmatpush1.bf16.msra.mxu0 %v2271_v61  ;;  %v2634_v61 = vshrl.u32 %v666_v58, 7 }
  0x77   :  { %1064 = vmatprep.subr.bf16.mxu0 %v2279_v1  ;;  %1422 = vmatpush1.bf16.msra.mxu1 %v2334_v40 }
  0x78   :  { %1786 = vmatprep.subr.bf16.mxu1 %v2339_v41  ;;  %v668_v7 = vsub.s32 0, %v2634_v61 }
  0x79   :  { %2020 = vmatmul.mubr.msk.bf16.gmra.mrb[12].mxu0 %vm142_vm0, %v507_v43 }
  0x7a   :  { %638 = vmatprep.mubr.bf16.mxu0 %v2461_v0  ;;  %1065 = vmatpush1.bf16.msra.mxu0 %v2277_v2 }
  0x7b   :  { %1066 = vmatprep.subr.bf16.mxu0 %v2285_v5 }
  0x7e   :  { %1067 = vmatpush1.bf16.msra.mxu0 %v2283_v6 }
  0x7f   :  { %1068 = vmatprep.subr.bf16.mxu0 %v2291_v9  ;;  %v672_v9 = vsub.s32 1, %v2634_v61 }
  0x81   :  { %2021 = vmatmul.mubr.msk.bf16.gmra.mrb[20].mxu0 %vm142_vm0, %v510_v45  ;;  %v2651_v12 = vrot.slane %v50_v8, %v672_v9 }
  0x82   :  { %1069 = vmatpush1.bf16.msra.mxu0 %v2289_v10  ;;  %v2647_v10 = vrot.slane %v50_v8, %v668_v7 }
  0x83   :  { %1070 = vmatprep.subr.bf16.mxu0 %v2297_v13 }
  0x86   :  { %1071 = vmatpush1.bf16.msra.mxu0 %v2295_v14 }
  0x87   :  { %1072 = vmatprep.subr.bf16.mxu0 %v2303_v17 }
  0x8a   :  { %1073 = vmatpush1.bf16.msra.mxu0 %v2301_v18 }
  0x8b   :  { %1074 = vmatprep.subr.bf16.mxu0 %v2309_v21 }
  0x8e   :  { %1075 = vmatpush1.bf16.msra.mxu0 %v2307_v22 }
  0x8f   :  { %1076 = vmatprep.subr.bf16.mxu0 %v2315_v25 }
  0x92   :  { %1077 = vmatpush1.bf16.msra.mxu0 %v2313_v26 }
  0x93   :  { %1078 = vmatprep.subr.bf16.mxu0 %v2321_v29 }
  0x96   :  { %1079 = vmatpush1.bf16.msra.mxu0 %v2319_v30 }
  0x97   :  { %1080 = vmatprep.subr.bf16.mxu0 %v2327_v33 }
  0x9a   :  { %1081 = vmatpush1.bf16.msra.mxu0 %v2325_v34 }
  0x9b   :  { %1082 = vmatprep.subr.bf16.mxu0 %v2333_v37 }
  0x9e   :  { %1083 = vmatpush1.bf16.msra.mxu0 %v2331_v38 }
 0x10b   :  { %v192_v42 = vpop.f32.mrb[0].mxu1 }
 0x10c   :  { %v194_v43 = vpop.f32.mrb[1].mxu1 }
 0x10d   :  { %v196_v44 = vpop.f32.mrb[2].mxu1 }
 0x10e   :  { %v198_v45 = vpop.f32.mrb[3].mxu1 }
 0x113   :  { %v202_v46 = vpop.f32.mrb[4].mxu1 }
 0x114   :  { %v204_v47 = vpop.f32.mrb[5].mxu1 }
 0x115   :  { %v206_v48 = vpop.f32.mrb[6].mxu1 }
 0x116   :  { %v208_v49 = vpop.f32.mrb[7].mxu1 }
 0x11b   :  { %v2618_v50 = vpop.f32.mrb[8].mxu1 }
 0x11c   :  { %v2620_v51 = vpop.f32.mrb[9].mxu1 }
 0x11d   :  { %v2622_v52 = vpop.f32.mrb[10].mxu1 }
 0x11e   :  { %v2624_v53 = vpop.f32.mrb[11].mxu1 }
 0x123   :  { %v2626_v54 = vpop.f32.mrb[12].mxu1 }
 0x124   :  { %v2628_v55 = vpop.f32.mrb[13].mxu1 }
 0x125   :  { %v2630_v56 = vpop.f32.mrb[14].mxu1 }
 0x126   :  { %v2632_v57 = vpop.f32.mrb[15].mxu1 }
 0x12b   :  { %v232_v59 = vpop.f32.mrb[16].mxu1 }
 0x12c   :  { %v234_v60 = vpop.f32.mrb[17].mxu1  ;;  %v420_v62 = vpop.f32.mrb[16].mxu0 }
 0x12d   :  { %v236_v63 = vpop.f32.mrb[18].mxu1  ;;  %v2636_v1 = vadd.f32 %v420_v62, %v232_v59  ;;  %v422_v2 = vpop.f32.mrb[17].mxu0 }
 0x12e   :  { %v237_v3 = vpop.f32.mrb[19].mxu1  ;;  %v2638_v4 = vadd.f32 %v422_v2, %v234_v60  ;;  %v424_v5 = vpop.f32.mrb[18].mxu0 }
 0x12f   :  { %v425_v6 = vpop.f32.mrb[19].mxu0 }
 0x134   :  { %v600_v11 = vpop.f32.mrb[0].mxu0 }
 0x135   :  { %v2118_v13 = vadd.f32 %v600_v11, %v192_v42  ;;  %v602_v14 = vpop.f32.mrb[1].mxu0 }
 0x136   :  { %v2119_v15 = vadd.f32 %v602_v14, %v194_v43  ;;  %v604_v16 = vpop.f32.mrb[2].mxu0 }
 0x137   :  { %v676_v17 = vadd.f32 %v2118_v13, %v2647_v10  ;;  %v2120_v18 = vadd.f32 %v604_v16, %v196_v44  ;;  %v606_v19 = vpop.f32.mrb[3].mxu0 }
 0x138   :  { %v677_v20 = vadd.f32 %v2119_v15, %v2651_v12  ;;  %v2121_v21 = vadd.f32 %v606_v19, %v198_v45 }
 0x139   :  { %v678_v22 = vadd.f32 %v2120_v18, %v2647_v10  ;;  %v694_v24 = vmax.f32 %v676_v17, 0.0 }
 0x13a   :  { %v679_v23 = vadd.f32 %v2121_v21, %v2651_v12  ;;  %v695_v26 = vmax.f32 %v677_v20, 0.0 }
 0x13b   :  { %v696_v25 = vmax.f32 %v678_v22, 0.0 }
 0x13c   :  { %v697_v27 = vmax.f32 %v679_v23, 0.0  ;;  %v610_v28 = vpop.f32.mrb[4].mxu0 }
 0x13d   :  { %v712_v29 = vpack.c.bf16 %v696_v25, %v694_v24  ;;  %v2122_v30 = vadd.f32 %v610_v28, %v202_v46  ;;  %v612_v31 = vpop.f32.mrb[5].mxu0 }
 0x13e   :  { %v713_v32 = vpack.c.bf16 %v697_v27, %v695_v26  ;;  %v2123_v33 = vadd.f32 %v612_v31, %v204_v47  ;;  %v614_v34 = vpop.f32.mrb[6].mxu0 }
 0x13f   :  { %v733_v35 = vrot.slane %v712_v29, 4  ;;  %v680_v36 = vadd.f32 %v2122_v30, %v2647_v10  ;;  %v2124_v37 = vadd.f32 %v614_v34, %v206_v48  ;;  %v616_v38 = vpop.f32.mrb[7].mxu0 }
 0x140   :  { %v734_v39 = vrot.slane %v713_v32, 4  ;;  %v681_v40 = vadd.f32 %v2123_v33, %v2651_v12  ;;  %v2125_v41 = vadd.f32 %v616_v38, %v208_v49 }
 0x141   :  { %761 = vst [vmem:[#allocation2] sm:$0xf0] %v733_v35  ;;  %v682_v42 = vadd.f32 %v2124_v37, %v2647_v10  ;;  %v698_v44 = vmax.f32 %v680_v36, 0.0 }
 0x142   :  { %762 = vst [vmem:[#allocation2 + $0x8] sm:$0xf0] %v734_v39  ;;  %v683_v43 = vadd.f32 %v2125_v41, %v2651_v12  ;;  %v699_v46 = vmax.f32 %v681_v40, 0.0 }
 0x143   :  { %v700_v45 = vmax.f32 %v682_v42, 0.0 }
 0x144   :  { %v701_v47 = vmax.f32 %v683_v43, 0.0  ;;  %v620_v58 = vpop.f32.mrb[8].mxu0 }
 0x145   :  { %v714_v59 = vpack.c.bf16 %v700_v45, %v698_v44  ;;  %v2126_v60 = vadd.f32 %v620_v58, %v2618_v50  ;;  %v622_v48 = vpop.f32.mrb[9].mxu0 }
 0x146   :  { %v715_v62 = vpack.c.bf16 %v701_v47, %v699_v46  ;;  %v2127_v63 = vadd.f32 %v622_v48, %v2620_v51  ;;  %v624_v49 = vpop.f32.mrb[10].mxu0 }
 0x147   :  { %v735_v2 = vrot.slane %v714_v59, 4  ;;  %v684_v3 = vadd.f32 %v2126_v60, %v2647_v10  ;;  %v2128_v5 = vadd.f32 %v624_v49, %v2622_v52  ;;  %v626_v6 = vpop.f32.mrb[11].mxu0 }
 0x148   :  { %v737_v8 = vrot.slane %v715_v62, 4  ;;  %v685_v11 = vadd.f32 %v2127_v63, %v2651_v12  ;;  %v2129_v13 = vadd.f32 %v626_v6, %v2624_v53  ;;  %v819_v14 = vld [vmem:[#allocation2] sm:$0xf0] }
 0x149   :  { %v2668_v50 = vsel %vm732_vm3, %v733_v35, %v735_v2  ;;  %v702_v15 = vmax.f32 %v684_v3, 0.0  ;;  %v686_v16 = vadd.f32 %v2128_v5, %v2647_v10  ;;  %v820_v51 = vld [vmem:[#allocation2 + $0x8] sm:$0xf0]  ;;  %v864_v17 = vrot.slane %v819_v14, 4  ;;  %v777_v44 = vld [vmem:[#allocation2] sm:$0xf8] }
 0x14a   :  { %v778_v18 = vld [vmem:[#allocation2 + $0x8] sm:$0xf8]  ;;  %v2672_v19 = vsel %vm732_vm3, %v734_v39, %v737_v8  ;;  %v703_v52 = vmax.f32 %v685_v11, 0.0  ;;  %v687_v20 = vadd.f32 %v2129_v13, %v2651_v12  ;;  %v867_v21 = vrot.slane %v820_v51, 4 }
 0x14b   :  { %v704_v22 = vmax.f32 %v686_v16, 0.0  ;;  %v868_v53 = vrot.slane %v2672_v19, 4  ;;  %v865_v23 = vrot.slane %v2668_v50, 4  ;;  %v1151_v24 = vshrl.u32 %v778_v18, 16 }
 0x14c   :  { %v705_v25 = vmax.f32 %v687_v20, 0.0  ;;  %v630_v26 = vpop.f32.mrb[12].mxu0  ;;  %v1154_v27 = vshll.u32 %v778_v18, 16  ;;  %v1159_v28 = vshrl.u32 %v2672_v19, 16  ;;  %v1162_v29 = vshll.u32 %v2672_v19, 16 }
 0x14d   :  { %v2679_v30 = vpack.c.bf16 %v704_v22, %v702_v15  ;;  %v2130_v31 = vadd.f32 %v630_v26, %v2626_v54  ;;  %v632_v32 = vpop.f32.mrb[13].mxu0  ;;  %v869_v33 = vsel %vm732_vm3, %v867_v21, %v868_v53  ;;  %v866_v34 = vsel %vm732_vm3, %v864_v17, %v865_v23  ;;  %v2367_v19 = vld [vmem:[#allocation6 + $0x2a0] ss:$8 sps:$4 sm:$0xff]  }
 0x14e   :  { %v717_v35 = vpack.c.bf16 %v705_v25, %v703_v52  ;;  %v2131_v36 = vadd.f32 %v632_v32, %v2628_v55  ;;  %v634_v37 = vpop.f32.mrb[14].mxu0  ;;  %1084 = vmatprep.mubr.bf16.mxu0 %v869_v33  ;;  %v1153_v38 = vrot.slane %v1151_v24, 3  ;;  %v1156_v39 = vrot.slane %v1154_v27, 4  ;;  %v2342_v33 = vld [vmem:[#allocation6 + $0x214] ss:$8 sps:$4 sm:$0xff]  }
 0x14f   :  { %v739_v40 = vrot.slane %v2679_v30, 4  ;;  %v688_v54 = vadd.f32 %v2130_v31, %v2647_v10  ;;  %v2132_v41 = vadd.f32 %v634_v37, %v2630_v56  ;;  %v636_v42 = vpop.f32.mrb[15].mxu0  ;;  %1085 = vmatmul.mubr.bf16.vlgmr.msra.gmra.mrb[24].mxu0 %v866_v34  ;;  %v1161_v43 = vrot.slane %v1159_v28, 3  ;;  %v2337_v30 = vld [vmem:[#allocation6 + $0x200] ss:$8 sps:$4 sm:$0xff]  }
 0x150   :  { %v741_v45 = vrot.slane %v717_v35, 4  ;;  %v689_v46 = vadd.f32 %v2131_v36, %v2651_v12  ;;  %v2133_v55 = vadd.f32 %v636_v42, %v2632_v57  ;;  %v1157_v59 = vor.u32 %v1156_v39, %v1153_v38 }
 0x151   :  { %v740_v47 = vsel %vm732_vm3, %v735_v2, %v739_v40  ;;  %v690_v58 = vadd.f32 %v2132_v41, %v2647_v10  ;;  %v1164_v60 = vrot.slane %v1162_v29, 4  ;;  %v706_v48 = vmax.f32 %v688_v54, 0.0  ;;  %v2340_v41 = vld [vmem:[#allocation6 + $0x210] ss:$8 sps:$4 sm:$0xff]  }
 0x152   :  { %765 = vst [vmem:[#allocation2 + $0x20] sm:$0xff] %v740_v47  ;;  %v742_v56 = vsel %vm732_vm3, %v737_v8, %v741_v45  ;;  %v691_v62 = vadd.f32 %v2133_v55, %v2651_v12  ;;  %v1134_v63 = vshrl.u32 %v777_v44, 16  ;;  %v1137_v2 = vshll.u32 %v777_v44, 16 }
 0x153   :  { %773 = vst [vmem:[#allocation2 + $0x20] sm:$0xf0] %v2461_v0  ;;  %766 = vst [vmem:[#allocation2 + $0x28] sm:$0xff] %v742_v56  ;;  %v708_v49 = vmax.f32 %v690_v58, 0.0  ;;  %v2703_v57 = vor.u32 %v1164_v60, %v1161_v43  ;;  %v1142_v3 = vshrl.u32 %v2668_v50, 16  ;;  %v707_v5 = vmax.f32 %v689_v46, 0.0 }
 0x154   :  { %774 = vst [vmem:[#allocation2 + $0x28] sm:$0xf0] %v2461_v0  ;;  %v709_v6 = vmax.f32 %v691_v62, 0.0  ;;  %v640_v11 = vpop.f32.mrb[20].mxu0  ;;  %v1136_v13 = vrot.slane %v1134_v63, 3  ;;  %v1145_v8 = vshll.u32 %v2668_v50, 16 }
 0x155   :  { %v718_v14 = vpack.c.bf16 %v708_v49, %v706_v48  ;;  %v663_v15 = vadd.f32 %v640_v11, %v2636_v1  ;;  %v642_v16 = vpop.f32.mrb[21].mxu0  ;;  %v1166_v51 = vsel %vm246_vm1, %v1157_v59, %v2703_v57  ;;  %v1139_v17 = vrot.slane %v1137_v2, 4  ;;  %v2345_v46 = vld [vmem:[#allocation6 + $0x224] ss:$8 sps:$4 sm:$0xff]  }
 0x156   :  { %v719_v18 = vpack.c.bf16 %v709_v6, %v707_v5  ;;  %v664_v52 = vadd.f32 %v642_v16, %v2638_v4  ;;  %1423 = vmatprep.mubr.bf16.mxu1 %v1166_v51  ;;  %v1144_v0 = vrot.slane %v1142_v3, 3  ;;  %v1147_v20 = vrot.slane %v1145_v8, 4  ;;  %v644_v21 = vpop.f32.mrb[22].mxu0  ;;  %v2343_v5 = vld [vmem:[#allocation6 + $0x220] ss:$8 sps:$4 sm:$0xff]  }
 0x157   :  { %v743_v22 = vrot.slane %v718_v14, 4  ;;  %v692_v24 = vadd.f32 %v2647_v10, %v663_v15  ;;  %v1140_v1 = vor.u32 %v1139_v17, %v1136_v13  ;;  %v645_v25 = vpop.f32.mrb[23].mxu0  ;;  %v1473_v50 = vld [vmem:[#allocation2 + $0x8] sm:$0xf0] }
 0x158   :  { %v745_v26 = vrot.slane %v719_v18, 4  ;;  %v693_v27 = vadd.f32 %v2651_v12, %v664_v52  ;;  %v1148_v31 = vor.u32 %v1147_v20, %v1144_v0 }
 0x159   :  { %v2719_v4 = vsel %vm732_vm3, %v739_v40, %v743_v22  ;;  %v710_v32 = vmax.f32 %v692_v24, 0.0 }
 0x15a   :  { %v2722_v34 = vsel %vm732_vm3, %v741_v45, %v745_v26  ;;  %v711_v35 = vmax.f32 %v693_v27, 0.0  ;;  %v1149_v36 = vsel %vm246_vm1, %v1140_v1, %v1148_v31  ;;  %v2725_v37 = vld [vmem:[#allocation2 + $0x20] sm:$0xff]  ;;  %v874_v58 = vrot.slane %v2719_v4, 4  ;;  %v2346_v1 = vld [vmem:[#allocation6 + $0x230] ss:$8 sps:$4 sm:$0xff]  }
 0x15b   :  { %v720_v10 = vpack.c.bf16 %v710_v32, %v710_v32  ;;  %1424 = vmatmul.mubr.bf16.vlgmr.msra.gmra.mrb[20].mxu1 %v1149_v36  ;;  %v2727_v38 = vld [vmem:[#allocation2 + $0x28] sm:$0xff]  ;;  %v870_v12 = vrot.slane %v2725_v37, 4  ;;  %v1168_v39 = vshrl.u32 %v2725_v37, 16  ;;  %v1171_v40 = vshll.u32 %v2725_v37, 16 }
 0x15c   :  { %v721_v54 = vpack.c.bf16 %v711_v35, %v711_v35  ;;  %1787 = vmatpush1.bf16.msra.mxu1 %v2337_v30  ;;  %v872_v42 = vrot.slane %v2727_v38, 4  ;;  %v1177_v43 = vshrl.u32 %v2727_v38, 16  ;;  %v1180_v44 = vshll.u32 %v2727_v38, 16  ;;  %v2351_v30 = vld [vmem:[#allocation6 + $0x244] ss:$8 sps:$4 sm:$0xff]  }
 0x15d   :  { %v747_v45 = vrot.slane %v720_v10, 4  ;;  %1788 = vmatprep.subr.bf16.mxu1 %v2342_v33  ;;  %v1170_v55 = vrot.slane %v1168_v39, 3  ;;  %v1173_v47 = vrot.slane %v1171_v40, 4  ;;  %v871_v63 = vsel %vm732_vm3, %v865_v23, %v870_v12  ;;  %v2348_v23 = vld [vmem:[#allocation6 + $0x234] ss:$8 sps:$4 sm:$0xff]  }
 0x15e   :  { %v749_v59 = vrot.slane %v721_v54, 4  ;;  %v873_v60 = vsel %vm732_vm3, %v868_v53, %v872_v42  ;;  %v1179_v56 = vrot.slane %v1177_v43, 3  ;;  %v1182_v48 = vrot.slane %v1180_v44, 4  ;;  %v2349_v54 = vld [vmem:[#allocation6 + $0x240] ss:$8 sps:$4 sm:$0xff]  }
 0x15f   :  { %v2748_v62 = vsel %vm732_vm3, %v743_v22, %v747_v45  ;;  %1094 = vmatprep.mubr.bf16.mxu0 %v873_v60  ;;  %v1174_v49 = vor.u32 %v1173_v47, %v1170_v55  ;;  %v876_v2 = vrot.slane %v2722_v34, 4  ;;  %v1195_v11 = vshrl.u32 %v2722_v34, 16 }
 0x160   :  { %v2757_v53 = vsel %vm732_vm3, %v745_v26, %v749_v59  ;;  %1789 = vmatpush1.bf16.msra.mxu1 %v2340_v41  ;;  %1095 = vmatmul.mubr.bf16.gmra.mrb[28].mxu0 %v871_v63  ;;  %v1183_v6 = vor.u32 %v1182_v48, %v1179_v56  ;;  %v1198_v13 = vshll.u32 %v2722_v34, 16  ;;  %v1186_v51 = vshrl.u32 %v2719_v4, 16  ;;  %v2352_v56 = vld [vmem:[#allocation6 + $0x250] ss:$8 sps:$4 sm:$0xff]  }
 0x161   :  { %1790 = vmatprep.subr.bf16.mxu1 %v2345_v46  ;;  %v1175_v14 = vsel %vm246_vm1, %v1148_v31, %v1174_v49  ;;  %v877_v15 = vsel %vm732_vm3, %v872_v42, %v876_v2  ;;  %v880_v16 = vrot.slane %v2757_v53, 4  ;;  %v1197_v18 = vrot.slane %v1195_v11, 3  ;;  %v2354_v46 = vld [vmem:[#allocation6 + $0x254] ss:$8 sps:$4 sm:$0xff]  }
 0x162   :  { %v1184_v17 = vsel %vm246_vm1, %v2703_v57, %v1183_v6  ;;  %1104 = vmatprep.mubr.bf16.mxu0 %v877_v15  ;;  %v1200_v52 = vrot.slane %v1198_v13, 4  ;;  %v1189_v0 = vshll.u32 %v2719_v4, 16  ;;  %v1188_v21 = vrot.slane %v1186_v51, 3 }
 0x163   :  { %1433 = vmatprep.mubr.bf16.mxu1 %v1184_v17  ;;  %v881_v20 = vsel %vm732_vm3, %v876_v2, %v880_v16  ;;  %v878_v22 = vrot.slane %v2748_v62, 4  ;;  %v1213_v24 = vshrl.u32 %v2757_v53, 16  ;;  %v1216_v57 = vshll.u32 %v2757_v53, 16  ;;  %v2358_v53 = vld [vmem:[#allocation6 + $0x270] ss:$8 sps:$4 sm:$0xff]  }
 0x164   :  { %1791 = vmatpush1.bf16.msra.mxu1 %v2343_v5  ;;  %v1201_v25 = vor.u32 %v1200_v52, %v1197_v18  ;;  %v1191_v26 = vrot.slane %v1189_v0, 4  ;;  %v1204_v27 = vshrl.u32 %v2748_v62, 16  ;;  %v1207_v32 = vshll.u32 %v2748_v62, 16  ;;  %v2370_v62 = vld [vmem:[#allocation6 + $0x2b0] ss:$8 sps:$4 sm:$0xff]  }
 0x165   :  { %1434 = vmatmul.mubr.bf16.gmra.mrb[24].mxu1 %v1175_v14  ;;  %1792 = vmatprep.subr.bf16.mxu1 %v2348_v23  ;;  %v879_v31 = vsel %vm732_vm3, %v874_v58, %v878_v22  ;;  %v1215_v4 = vrot.slane %v1213_v24, 3  ;;  %v1218_v34 = vrot.slane %v1216_v57, 4  ;;  %v875_v36 = vsel %vm732_vm3, %v870_v12, %v874_v58  ;;  %v2355_v23 = vld [vmem:[#allocation6 + $0x260] ss:$8 sps:$4 sm:$0xff]  }
 0x166   :  { %v1202_v33 = vsel %vm246_vm1, %v1183_v6, %v1201_v25  ;;  %v1206_v35 = vrot.slane %v1204_v27, 3  ;;  %v1209_v10 = vrot.slane %v1207_v32, 4  ;;  %v1192_v41 = vor.u32 %v1191_v26, %v1188_v21  ;;  %v2361_v26 = vld [vmem:[#allocation6 + $0x280] ss:$8 sps:$4 sm:$0xff]  }
 0x167   :  { %1443 = vmatprep.mubr.bf16.mxu1 %v1202_v33  ;;  %v1219_v42 = vor.u32 %v1218_v34, %v1215_v4  ;;  %v1529_v45 = vrot.slane %v1142_v3, 4  ;;  %v1532_v47 = vrot.slane %v1145_v8, 5  ;;  %v1582_v48 = vrot.slane %v1195_v11, 4  ;;  %v2357_v3 = vld [vmem:[#allocation6 + $0x264] ss:$8 sps:$4 sm:$0xff]  }
 0x168   :  { %1793 = vmatpush1.bf16.msra.mxu1 %v2346_v1  ;;  %1105 = vmatmul.mubr.bf16.gmra.mrb[32].mxu0 %v875_v36  ;;  %v1210_v55 = vor.u32 %v1209_v10, %v1206_v35  ;;  %v1193_v60 = vsel %vm246_vm1, %v1174_v49, %v1192_v41  ;;  %v1585_v63 = vrot.slane %v1198_v13, 5  ;;  %v1573_v2 = vrot.slane %v1186_v51, 4  ;;  %v2360_v11 = vld [vmem:[#allocation6 + $0x274] ss:$8 sps:$4 sm:$0xff]   ;;  %v1472_v34 = vld [vmem:[#allocation2] sm:$0xf0] }
 0x169   :  { %1794 = vmatprep.subr.bf16.mxu1 %v2351_v30  ;;  %1114 = vmatprep.mubr.bf16.mxu0 %v881_v20  ;;  %v1220_v59 = vsel %vm246_vm1, %v1201_v25, %v1219_v42  ;;  %v2789_v58 = vor.u32 %v1532_v47, %v1529_v45  ;;  %v1576_v5 = vrot.slane %v1189_v0, 5  ;;  %v1600_v6 = vrot.slane %v1213_v24, 4  ;;  %v2366_v30 = vld [vmem:[#allocation6 + $0x294] ss:$8 sps:$4 sm:$0xff]   ;;  %v2376_v35 = vld [vmem:[#allocation6 + $0x2d0] ss:$8 sps:$4 sm:$0xff]  }
 0x16a   :  { %v1211_v12 = vsel %vm246_vm1, %v1192_v41, %v1210_v55  ;;  %v1603_v8 = vrot.slane %v1216_v57, 5  ;;  %v1591_v14 = vrot.slane %v1204_v27, 4  ;;  %v1594_v15 = vrot.slane %v1207_v32, 5  ;;  %v2373_v32 = vld [vmem:[#allocation6 + $0x2c0] ss:$8 sps:$4 sm:$0xff]  }
 0x16b   :  { %v2792_v17 = vor.u32 %v1585_v63, %v1582_v48  ;;  %v1536_v13 = vshrl.u32 %v1473_v50, 16  ;;  %v1539_v51 = vshll.u32 %v1473_v50, 16  ;;  %v2798_v18 = vor.u32 %v1576_v5, %v1573_v2  ;;  %v2378_v33 = vld [vmem:[#allocation6 + $0x2d4] ss:$8 sps:$4 sm:$0xff]   ;;  %v2381_v36 = vld [vmem:[#allocation6 + $0x2e4] ss:$8 sps:$4 sm:$0xff]  }
 0x16c   :  { %1795 = vmatpush1.bf16.msra.mxu1 %v2349_v54  ;;  %v2794_v49 = vor.u32 %v1603_v8, %v1600_v6  ;;  %v2800_v52 = vor.u32 %v1594_v15, %v1591_v14  ;;  %v1546_v1 = vrot.slane %v1159_v28, 4  ;;  %v1549_v25 = vrot.slane %v1162_v29, 5  ;;  %v2369_v28 = vld [vmem:[#allocation6 + $0x2a4] ss:$8 sps:$4 sm:$0xff]   ;;  %v2372_v29 = vld [vmem:[#allocation6 + $0x2b4] ss:$8 sps:$4 sm:$0xff]  }
 0x16d   :  { %1444 = vmatmul.mubr.bf16.gmra.mrb[28].mxu1 %v1193_v60  ;;  %1796 = vmatprep.subr.bf16.mxu1 %v2354_v46  ;;  %v1538_v21 = vrot.slane %v1536_v13, 4  ;;  %v1541_v24 = vrot.slane %v1539_v51, 5  ;;  %v1519_v10 = vshrl.u32 %v1472_v34, 16  ;;  %v1522_v54 = vshll.u32 %v1472_v34, 16  ;;  %v2379_v41 = vld [vmem:[#allocation6 + $0x2e0] ss:$8 sps:$4 sm:$0xff]  }
 0x16e   :  { %1453 = vmatprep.mubr.bf16.mxu1 %v1220_v59  ;;  %v2805_v0 = vsel %vm1517_vm4, %v2792_v17, %v2794_v49  ;;  %v2810_v20 = vsel %vm1517_vm4, %v2798_v18, %v2800_v52  ;;  %v1550_v27 = vor.u32 %v1549_v25, %v1546_v1  ;;  %v1567_v47 = vrot.slane %v1180_v44, 5  ;;  %v2382_v59 = vld [vmem:[#allocation6 + $0x2f0] ss:$8 sps:$4 sm:$0xff]  }
 0x16f   :  { %v1542_v57 = vor.u32 %v1541_v24, %v1538_v21  ;;  %v1521_v45 = vrot.slane %v1519_v10, 4  ;;  %v1524_v46 = vrot.slane %v1522_v54, 5  ;;  %v1555_v48 = vrot.slane %v1168_v39, 4  ;;  %v1483_v2 = vld [vmem:[#allocation2 + $0x58] sm:$0x1] }
 0x170   :  { %1797 = vmatpush1.bf16.msra.mxu1 %v2352_v56  ;;  %1115 = vmatmul.mubr.bf16.gmra.mrb[36].mxu0 %v879_v31  ;;  %v2364_v31 = vld [vmem:[#allocation6 + $0x290] ss:$8 sps:$4 sm:$0xff]   ;;  %v1558_v63 = vrot.slane %v1171_v40, 5  ;;  %v1612_v37 = vshll.u32 %v1483_v2, 16 }
 0x171   :  { %1124 = vmatprep.mubr.bf16.mxu0 %v880_v16  ;;  %1798 = vmatprep.subr.bf16.mxu1 %v2357_v3  ;;  %v2363_v16 = vld [vmem:[#allocation6 + $0x284] ss:$8 sps:$4 sm:$0xff]   ;;  %v1551_v4 = vsel %vm1517_vm4, %v1542_v57, %v1550_v27  ;;  %v1482_v5 = vld [vmem:[#allocation2 + $0x50] sm:$0x1] }
 0x172   :  { %v1559_v38 = vor.u32 %v1558_v63, %v1555_v48  ;;  %v1614_v40 = vrot.slane %v1612_v37, 5  ;;  %v1607_v6 = vshll.u32 %v1482_v5, 16 }
 0x174   :  { %1799 = vmatpush1.bf16.msra.mxu1 %v2355_v23  ;;  %v1560_v44 = vsel %vm1517_vm4, %v2789_v58, %v1559_v38  ;;  %v1578_v39 = vsel %vm1517_vm4, %v1559_v38, %v2798_v18  ;;  %v1609_v50 = vrot.slane %v1607_v6, 5 }
 0x175   :  { %1454 = vmatmul.mubr.bf16.gmra.mrb[32].mxu1 %v1211_v12  ;;  %1800 = vmatprep.subr.bf16.mxu1 %v2360_v11  ;;  %v1525_v12 = vor.u32 %v1524_v46, %v1521_v45 }
 0x176   :  { %1463 = vmatprep.mubr.bf16.mxu1 %v1219_v42  ;;  %v2384_v42 = vld [vmem:[#allocation6 + $0x2f4] ss:$8 sps:$4 sm:$0xff]   ;;  %v1610_v8 = vsel %vm1517_vm4, %v2800_v52, %v1609_v50 }
 0x177   :  { %v1534_v56 = vsel %vm1517_vm4, %v1525_v12, %v2789_v58  ;;  %v1615_v58 = vsel %vm1517_vm4, %v2794_v49, %v1614_v40 }
 0x178   :  { %1801 = vmatpush1.bf16.msra.mxu1 %v2358_v53  ;;  %1125 = vmatmul.mubr.bf16.gmra.mrb[40].mxu0 %v878_v22  ;;  %v2375_v22 = vld [vmem:[#allocation6 + $0x2c4] ss:$8 sps:$4 sm:$0xff]  }
 0x179   :  { %1802 = vmatprep.subr.bf16.mxu1 %v2363_v16 }
 0x17c   :  { %1803 = vmatpush1.bf16.msra.mxu1 %v2361_v26 }
 0x17d   :  { %1464 = vmatmul.mubr.bf16.gmra.mrb[36].mxu1 %v1210_v55  ;;  %1804 = vmatprep.subr.bf16.mxu1 %v2366_v30  ;;  %v1564_v55 = vrot.slane %v1177_v43, 4 }
 0x17e   :  { %1818 = vmatprep.mubr.bf16.mxu1 %v1551_v4 }
 0x17f   :  { %v1568_v60 = vor.u32 %v1567_v47, %v1564_v55 }
 0x180   :  { %1805 = vmatpush1.bf16.msra.mxu1 %v2364_v31 }
 0x181   :  { %1806 = vmatprep.subr.bf16.mxu1 %v2369_v28  ;;  %v1569_v43 = vsel %vm1517_vm4, %v1550_v27, %v1568_v60  ;;  %v1587_v3 = vsel %vm1517_vm4, %v1568_v60, %v2792_v17 }
 0x184   :  { %1807 = vmatpush1.bf16.msra.mxu1 %v2367_v19 }
 0x185   :  { %1808 = vmatprep.subr.bf16.mxu1 %v2372_v29  ;;  %v51_v29 = vld [vmem:[%s2914_s4] sm:$0x3]  ;;  %s2462_s4 = smov [#allocation8]  }
 0x186   :  { %s1955_s22 = sshll.u32 %s2462_s4, 4  ;;  %s1956_s22 = int_to_ptr.vmem [resolvable:$true] %s1955_s22 }
 0x187   :  { %s2429_s23 = scalar_lea.vmem %s1956_s22, 2560  ;;  %p2434_p3 = scmp.lt.s32.totalorder %s1956_s22, %s1956_s22 }
 0x188   :  { %1809 = vmatpush1.bf16.msra.mxu1 %v2370_v62  ;;  %v2865_v62 = vrot.slane %v51_v29, %v668_v7  ;;  %p2430_p2 = scmp.ne.s32.totalorder %s1956_s22, %s2429_s23  ;;  %p2435_p4 = scmp.lt.s32.totalorder %s2429_s23, %s2429_s23 }
 0x189   :  { %1810 = vmatprep.subr.bf16.mxu1 %v2375_v22 }
 0x18a   :  { %p2436_p5 = por %p2435_p4, %p2434_p3 }
 0x18c   :  { %1811 = vmatpush1.bf16.msra.mxu1 %v2373_v32  ;;  %v2869_v32 = vrot.slane %v51_v29, %v672_v9  ;;  %p2437_p6 = pnand %p2436_p5, %p2430_p2 }
 0x18d   :  { %1812 = vmatprep.subr.bf16.mxu1 %v2378_v33 }
 0x190   :  { %1813 = vmatpush1.bf16.msra.mxu1 %v2376_v35 }
 0x191   :  { %1814 = vmatprep.subr.bf16.mxu1 %v2381_v36 }
 0x194   :  { %1815 = vmatpush1.bf16.msra.mxu1 %v2379_v41 }
 0x195   :  { %1816 = vmatprep.subr.bf16.mxu1 %v2384_v42 }
 0x198   :  { %1817 = vmatpush1.bf16.msra.mxu1 %v2382_v59 }
 0x19b   :  { %1819 = vmatmul.mubr.bf16.vlgmr.msra.gmra.mrb[20].mxu1 %v1534_v56 }
 0x19c   :  { %1828 = vmatprep.mubr.bf16.mxu1 %v1569_v43 }
 0x1a3   :  { %1829 = vmatmul.mubr.bf16.gmra.mrb[24].mxu1 %v1560_v44 }
 0x1a4   :  { %1838 = vmatprep.mubr.bf16.mxu1 %v1587_v3 }
 0x1ab   :  { %1839 = vmatmul.mubr.bf16.gmra.mrb[28].mxu1 %v1578_v39 }
 0x1ac   :  { %1848 = vmatprep.mubr.bf16.mxu1 %v2805_v0 }
 0x1b3   :  { %1849 = vmatmul.mubr.bf16.gmra.mrb[32].mxu1 %v2810_v20 }
 0x1b4   :  { %1858 = vmatprep.mubr.bf16.mxu1 %v1615_v58 }
 0x1bb   :  { %1859 = vmatmul.mubr.bf16.gmra.mrb[40].mxu1 %v1610_v8 }
 0x222   :  { %v1086_v14 = vpop.f32.mrb[24].mxu0 }
 0x223   :  { %v1088_v15 = vpop.f32.mrb[25].mxu0 }
 0x224   :  { %v1090_v23 = vpop.f32.mrb[26].mxu0 }
 0x225   :  { %v1092_v17 = vpop.f32.mrb[27].mxu0 }
 0x233   :  { %v1096_v11 = vpop.f32.mrb[28].mxu0 }
 0x234   :  { %v1098_v13 = vpop.f32.mrb[29].mxu0 }
 0x235   :  { %v1100_v51 = vpop.f32.mrb[30].mxu0 }
 0x236   :  { %v1102_v18 = vpop.f32.mrb[31].mxu0 }
 0x23b   :  { %v1106_v0 = vpop.f32.mrb[32].mxu0 }
 0x23c   :  { %v2842_v53 = vpop.f32.mrb[33].mxu0 }
 0x23d   :  { %v2844_v20 = vpop.f32.mrb[34].mxu0 }
 0x23e   :  { %v2846_v49 = vpop.f32.mrb[35].mxu0 }
 0x243   :  { %v2848_v16 = vpop.f32.mrb[36].mxu0 }
 0x244   :  { %v2850_v21 = vpop.f32.mrb[37].mxu0 }
 0x245   :  { %v2852_v52 = vpop.f32.mrb[38].mxu0 }
 0x246   :  { %v2854_v24 = vpop.f32.mrb[39].mxu0 }
 0x24b   :  { %v1126_v1 = vpop.f32.mrb[40].mxu0 }
 0x24c   :  { %v1128_v25 = vpop.f32.mrb[41].mxu0 }
 0x24d   :  { %v1130_v26 = vpop.f32.mrb[42].mxu0 }
 0x24e   :  { %v1131_v57 = vpop.f32.mrb[43].mxu0 }
 0x250   :  { %v1465_v27 = vpop.f32.mrb[36].mxu1 }
 0x251   :  { %v2856_v30 = vadd.f32 %v1465_v27, %v1126_v1  ;;  %v1467_v31 = vpop.f32.mrb[37].mxu1 }
 0x252   :  { %v2858_v4 = vadd.f32 %v1467_v31, %v1128_v25  ;;  %v1469_v28 = vpop.f32.mrb[38].mxu1 }
 0x253   :  { %v1470_v19 = vpop.f32.mrb[39].mxu1 }
 0x26e   :  { %v1820_v22 = vpop.f32.mrb[20].mxu1 }
 0x26f   :  { %v2134_v33 = vadd.f32 %v1820_v22, %v1086_v14  ;;  %v1822_v34 = vpop.f32.mrb[21].mxu1 }
 0x270   :  { %v2135_v35 = vadd.f32 %v1822_v34, %v1088_v15  ;;  %v1824_v36 = vpop.f32.mrb[22].mxu1 }
 0x271   :  { %v1896_v10 = vadd.f32 %v2134_v33, %v2865_v62  ;;  %v2136_v54 = vadd.f32 %v1824_v36, %v1090_v23  ;;  %v1826_v41 = vpop.f32.mrb[23].mxu1 }
 0x272   :  { %v1897_v42 = vadd.f32 %v2135_v35, %v2869_v32  ;;  %v2137_v45 = vadd.f32 %v1826_v41, %v1092_v17 }
 0x273   :  { %v1914_v46 = vmax.f32 %v1896_v10, 0.0  ;;  %v1898_v7 = vadd.f32 %v2136_v54, %v2865_v62 }
 0x274   :  { %v1915_v55 = vmax.f32 %v1897_v42, 0.0  ;;  %v1899_v47 = vadd.f32 %v2137_v45, %v2869_v32 }
 0x275   :  { %1932 = vst [vmem:[#allocation8] sm:$0xff] %v1914_v46  ;;  %v1916_v61 = vmax.f32 %v1898_v7, 0.0 }
 0x276   :  { %1933 = vst [vmem:[#allocation8 + $0x8] sm:$0xff] %v1915_v55  ;;  %v1917_v9 = vmax.f32 %v1899_v47, 0.0  ;;  %v1830_v59 = vpop.f32.mrb[24].mxu1 }
 0x277   :  { %1934 = vst [vmem:[#allocation8 + $0x10] sm:$0xff] %v1916_v61  ;;  %v2138_v12 = vadd.f32 %v1830_v59, %v1096_v11  ;;  %v1832_v60 = vpop.f32.mrb[25].mxu1 }
 0x278   :  { %1935 = vst [vmem:[#allocation8 + $0x18] sm:$0xff] %v1917_v9  ;;  %v2139_v56 = vadd.f32 %v1832_v60, %v1098_v13  ;;  %v1834_v48 = vpop.f32.mrb[26].mxu1 }
 0x279   :  { %v1900_v63 = vadd.f32 %v2138_v12, %v2865_v62  ;;  %v2140_v43 = vadd.f32 %v1834_v48, %v1100_v51  ;;  %v1836_v38 = vpop.f32.mrb[27].mxu1 }
 0x27a   :  { %v1901_v44 = vadd.f32 %v2139_v56, %v2869_v32  ;;  %v2141_v3 = vadd.f32 %v1836_v38, %v1102_v18 }
 0x27b   :  { %v1918_v2 = vmax.f32 %v1900_v63, 0.0  ;;  %v1902_v39 = vadd.f32 %v2140_v43, %v2865_v62 }
 0x27c   :  { %v1919_v37 = vmax.f32 %v1901_v44, 0.0  ;;  %v1903_v40 = vadd.f32 %v2141_v3, %v2869_v32 }
 0x27d   :  { %1936 = vst [vmem:[#allocation8 + $0x20] sm:$0xff] %v1918_v2  ;;  %v1920_v5 = vmax.f32 %v1902_v39, 0.0 }
 0x27e   :  { %1937 = vst [vmem:[#allocation8 + $0x28] sm:$0xff] %v1919_v37  ;;  %v1921_v6 = vmax.f32 %v1903_v40, 0.0  ;;  %v1840_v58 = vpop.f32.mrb[28].mxu1 }
 0x27f   :  { %1938 = vst [vmem:[#allocation8 + $0x30] sm:$0xff] %v1920_v5  ;;  %v2142_v50 = vadd.f32 %v1840_v58, %v1106_v0  ;;  %v1842_v8 = vpop.f32.mrb[29].mxu1 }
 0x280   :  { %1939 = vst [vmem:[#allocation8 + $0x38] sm:$0xff] %v1921_v6  ;;  %v2143_v14 = vadd.f32 %v1842_v8, %v2842_v53  ;;  %v1844_v15 = vpop.f32.mrb[30].mxu1 }
 0x281   :  { %v1904_v23 = vadd.f32 %v2142_v50, %v2865_v62  ;;  %v2144_v17 = vadd.f32 %v1844_v15, %v2844_v20  ;;  %v1846_v11 = vpop.f32.mrb[31].mxu1 }
 0x282   :  { %v1905_v13 = vadd.f32 %v2143_v14, %v2869_v32  ;;  %v2145_v51 = vadd.f32 %v1846_v11, %v2846_v49 }
 0x283   :  { %v1922_v18 = vmax.f32 %v1904_v23, 0.0  ;;  %v1906_v1 = vadd.f32 %v2144_v17, %v2865_v62 }
 0x284   :  { %v1923_v25 = vmax.f32 %v1905_v13, 0.0  ;;  %v1907_v0 = vadd.f32 %v2145_v51, %v2869_v32 }
 0x285   :  { %1940 = vst [vmem:[#allocation8 + $0x40] sm:$0xff] %v1922_v18  ;;  %v1924_v26 = vmax.f32 %v1906_v1, 0.0 }
 0x286   :  { %1941 = vst [vmem:[#allocation8 + $0x48] sm:$0xff] %v1923_v25  ;;  %v1925_v53 = vmax.f32 %v1907_v0, 0.0  ;;  %v1850_v57 = vpop.f32.mrb[32].mxu1 }
 0x287   :  { %1942 = vst [vmem:[#allocation8 + $0x50] sm:$0xff] %v1924_v26  ;;  %v2146_v27 = vadd.f32 %v1850_v57, %v2848_v16  ;;  %v1852_v20 = vpop.f32.mrb[33].mxu1 }
 0x288   :  { %1943 = vst [vmem:[#allocation8 + $0x58] sm:$0xff] %v1925_v53  ;;  %v2147_v31 = vadd.f32 %v1852_v20, %v2850_v21  ;;  %v1854_v28 = vpop.f32.mrb[34].mxu1 }
 0x289   :  { %v1908_v49 = vadd.f32 %v2146_v27, %v2865_v62  ;;  %v2148_v19 = vadd.f32 %v1854_v28, %v2852_v52  ;;  %v1856_v29 = vpop.f32.mrb[35].mxu1 }
 0x28a   :  { %v1909_v22 = vadd.f32 %v2147_v31, %v2869_v32  ;;  %v2149_v33 = vadd.f32 %v1856_v29, %v2854_v24 }
 0x28b   :  { %v1926_v34 = vmax.f32 %v1908_v49, 0.0  ;;  %v1910_v35 = vadd.f32 %v2148_v19, %v2865_v62 }
 0x28c   :  { %v1927_v36 = vmax.f32 %v1909_v22, 0.0  ;;  %v1911_v16 = vadd.f32 %v2149_v33, %v2869_v32 }
 0x28d   :  { %1944 = vst [vmem:[#allocation8 + $0x60] sm:$0xff] %v1926_v34  ;;  %v1928_v10 = vmax.f32 %v1910_v35, 0.0 }
 0x28e   :  { %1945 = vst [vmem:[#allocation8 + $0x68] sm:$0xff] %v1927_v36  ;;  %v1929_v21 = vmax.f32 %v1911_v16, 0.0  ;;  %v1860_v54 = vpop.f32.mrb[40].mxu1 }
 0x28f   :  { %1946 = vst [vmem:[#allocation8 + $0x70] sm:$0xff] %v1928_v10  ;;  %v1883_v41 = vadd.f32 %v1860_v54, %v2856_v30  ;;  %v1862_v52 = vpop.f32.mrb[41].mxu1 }
 0x290   :  { %1947 = vst [vmem:[#allocation8 + $0x78] sm:$0xff] %v1929_v21  ;;  %v1884_v42 = vadd.f32 %v1862_v52, %v2858_v4  ;;  %v1864_v45 = vpop.f32.mrb[42].mxu1 }
 0x291   :  { %v1912_v24 = vadd.f32 %v2865_v62, %v1883_v41  ;;  %v1865_v46 = vpop.f32.mrb[43].mxu1 }
 0x292   :  { %v1913_v7 = vadd.f32 %v2869_v32, %v1884_v42 }
 0x293   :  { %v1930_v55 = vmax.f32 %v1912_v24, 0.0 }
 0x294   :  { %v1931_v47 = vmax.f32 %v1913_v7, 0.0 }
 0x295   :  { %1948 = vst [vmem:[#allocation8 + $0x80] sm:$0xff] %v1930_v55 }
 0x296   :  { %1949 = vst [vmem:[#allocation8 + $0x88] sm:$0xff] %v1931_v47 }
 0x297   :  { %2440 = shalt.err (!%p2437_p6)
}
 0x298   :  { %s2441_s26 = scalar_lea.hbm %s2915_s5, 2560 }
 0x299   :  { %p2442_p7 = scmp.ne.s32.totalorder %s2915_s5, %s2441_s26  ;;  %p2445_p8 = scmp.lt.u32.totalorder %s2441_s26, %s2915_s5 }
 0x29b   :  { %p2447_p9 = pnand %p2445_p8, %p2442_p7 }
 0x29d   :  { %2450 = shalt.err (!%p2447_p9)
}
 0x29e   :  { %s2463_s6 = smov 256   ;;  %s2464_s7 = smov 16  }
 0x29f   :  { %1961 = dma.vmem_to_hbm [thread:$0]  %s1956_s22, 2560, %s2915_s5, [#allocation5], %s2463_s6, %s2463_s6, %s2464_s7  }
 0x2a0   :  { %2455 = dma.done.wait [#allocation5], 2560  }
 0x2a1   :  { %2456 = vsyncadd [#allocation5], 4294964736 }
 0x2a2   :  { %1965 = vsyncpa [#allocation4], 1 }
 0x2a3   :  { %1966 = vsyncpa [#allocation7], 1 }
 0x2a4   :  { %1967 = vsyncpa [#allocation5], 1 }

</bundles_post_ra>
